<compile_context>
chip_gen: v5e
topology: v5e:2x2
jax: 0.10.0
libtpu: 0.0.40
codegen_flags: <defaults>
</compile_context>

<pallas_src>
import math
import numpy as np
import jax
import jax.numpy as jnp
from jax.experimental import pallas as pl
from jax.experimental.pallas import tpu as pltpu

# ----------------------------- config -------------------------------------
B = 2          # batch
T = 64         # sequence length
N_HEAD = 4
C = 128        # n_embd
D = C // N_HEAD          # head_dim = 32
RMS_EPS = 1.1920929e-07  # torch.finfo(float32).eps (F.rms_norm default)


# ----------------------------- kernel --------------------------------------
def _rms_norm(t, eps=RMS_EPS):
    return t * jax.lax.rsqrt(jnp.mean(t * t, axis=-1, keepdims=True) + eps)


def block_kernel(x_ref, wqkv_ref, wo_ref, wfc_ref, wp2_ref,
                 mblk_ref, swap_ref, cos_ref, sin_ref, bias_ref, o_ref):
    x = x_ref[0]                      # (T, C) f32
    cosf = cos_ref[...]               # (T, C) f32, per-head tiled [cos, cos]
    sinf = sin_ref[...]               # (T, C) f32, per-head tiled [sin, sin]
    bias = bias_ref[...]              # (T, T) f32 additive causal mask
    mblk = mblk_ref[...]              # (C, C) f32 block-diag, entries 1/D
    swap = swap_ref[...]              # (C, C) bf16 signed half-rotation perm

    # ---------------- attention branch ----------------
    xn = _rms_norm(x)
    qkv = jnp.dot(xn.astype(jnp.bfloat16), wqkv_ref[...],
                  preferred_element_type=jnp.float32)        # (T, 3C)
    q = qkv[:, :C]
    k = qkv[:, C:2 * C]
    v = qkv[:, 2 * C:]

    # per-head RMS norm of q,k for all heads at once:
    # (q*q) @ mblk broadcasts each head's mean-square to all of its lanes.
    def head_rms(t):
        ms = jnp.dot(t * t, mblk, preferred_element_type=jnp.float32)
        return t * jax.lax.rsqrt(ms + RMS_EPS)

    # rotary on the full (T, C) tensor:
    #   y = t * cos_full + (t @ S) * sin_full,  S carries the half-swap & sign
    def rope(t):
        t_sw = jnp.dot(t.astype(jnp.bfloat16), swap,
                       preferred_element_type=jnp.float32)
        return t * cosf + t_sw * sinf

    qr = rope(head_rms(q)).astype(jnp.bfloat16)              # (T, C)
    kr = rope(head_rms(k)).astype(jnp.bfloat16)
    vb = v.astype(jnp.bfloat16)

    scale = jnp.float32(1.0 / math.sqrt(D))
    attn = jnp.zeros((T, C), jnp.float32)
    for h in range(N_HEAD):           # static unrolled loop over heads
        qh = qr[:, h * D:(h + 1) * D]                        # (T, D) bf16
        kh = kr[:, h * D:(h + 1) * D]
        vh = vb[:, h * D:(h + 1) * D]

        # scores = qh @ kh^T without materializing a transpose
        s = jax.lax.dot_general(qh, kh, (((1,), (1,)), ((), ())),
                                preferred_element_type=jnp.float32)
        s = s * scale + bias
        m = jnp.max(s, axis=-1, keepdims=True)
        p = jnp.exp(s - m)
        p = p * pl.reciprocal(jnp.sum(p, axis=-1, keepdims=True), approx=True)

        ho = jnp.dot(p.astype(jnp.bfloat16), vh,
                     preferred_element_type=jnp.float32)     # (T, D)
        # accumulate through row-slices of W_o: avoids a lane concat of heads
        attn = attn + jnp.dot(ho.astype(jnp.bfloat16),
                              wo_ref[h * D:(h + 1) * D, :],
                              preferred_element_type=jnp.float32)

    x1 = x + attn

    # ---------------- MLP branch ----------------
    x1n = _rms_norm(x1)
    hmid = jnp.dot(x1n.astype(jnp.bfloat16), wfc_ref[...],
                   preferred_element_type=jnp.float32)       # (T, 4C)
    hmid = jnp.square(jnp.maximum(hmid, 0.0))                # relu(x)^2
    mlp_out = jnp.dot(hmid.astype(jnp.bfloat16), wp2_ref[...],
                      preferred_element_type=jnp.float32)    # (T, C)

    o_ref[0] = x1 + mlp_out


# ----------------------------- wrapper --------------------------------------
def block_forward(x, wqkv, wo, wfc, wp2, mblk, swap, cos_full, sin_full, bias):
    full = lambda shape: pl.BlockSpec(shape, lambda b: (0,) * len(shape))
    return pl.pallas_call(
        block_kernel,
        out_shape=jax.ShapeDtypeStruct((B, T, C), jnp.float32),
        grid_spec=pltpu.PrefetchScalarGridSpec(
            num_scalar_prefetch=0,
            grid=(B,),
            in_specs=[
                pl.BlockSpec((1, T, C), lambda b: (b, 0, 0)),
                full((C, 3 * C)),            # fused W_qkv   (bf16)
                full((C, C)),                # W_o           (bf16)
                full((C, 4 * C)),            # W_fc          (bf16)
                full((4 * C, C)),            # W_proj2       (bf16)
                full((C, C)),                # block-diag 1/D (f32)
                full((C, C)),                # signed half-swap perm (bf16)
                full((T, C)),                # cos table, lane-dense
                full((T, C)),                # sin table, lane-dense
                full((T, T)),                # additive causal bias
            ],
            out_specs=pl.BlockSpec((1, T, C), lambda b: (b, 0, 0)),
        ),
        compiler_params=pltpu.CompilerParams(
            dimension_semantics=("parallel",)),
    )(x, wqkv, wo, wfc, wp2, mblk, swap, cos_full, sin_full, bias)


# ----------------------------- reference (pure JAX, f32) --------------------
def block_reference(x, params, cos, sin):
    wq, wk, wv, wo, wfc, wp2 = params

    def rms(t):
        return t * jax.lax.rsqrt(jnp.mean(t * t, axis=-1, keepdims=True) + RMS_EPS)

    xn = rms(x)
    q = (xn @ wq).reshape(B, T, N_HEAD, D)
    k = (xn @ wk).reshape(B, T, N_HEAD, D)
    v = (xn @ wv).reshape(B, T, N_HEAD, D)
    q, k = rms(q), rms(k)

    c = cos[None, :, None, :]
    s = sin[None, :, None, :]

    def rope(t):
        t1, t2 = t[..., :D // 2], t[..., D // 2:]
        return jnp.concatenate([t1 * c + t2 * s, -t1 * s + t2 * c], axis=-1)

    q, k = rope(q), rope(k)
    scores = jnp.einsum("bqhd,bkhd->bhqk", q, k) / math.sqrt(D)
    mask = jnp.tril(jnp.ones((T, T), dtype=bool))
    scores = jnp.where(mask[None, None], scores, -jnp.inf)
    p = jax.nn.softmax(scores, axis=-1)
    y = jnp.einsum("bhqk,bkhd->bqhd", p, v).reshape(B, T, C)
    x1 = x + y @ wo

    x1n = rms(x1)
    h = jnp.square(jax.nn.relu(x1n @ wfc))
    return x1 + h @ wp2


# ----------------------------- main -----------------------------------------
if __name__ == "__main__":
    key = jax.random.PRNGKey(0)
    kx, kq, kk, kv, ko, kf, kp = jax.random.split(key, 7)

    x = jax.random.normal(kx, (B, T, C), dtype=jnp.float32)

    # NOTE: the torch __init__ zeroes the c_proj weights; we instead use small
    # deterministic random values so the kernel exercises every code path.
    # Weights are bf16-rounded once; kernel consumes bf16, reference uses the
    # identical (rounded) values in f32 so the comparison isolates kernel math.
    std = 0.02

    def mkw(k, shape):
        w = jax.random.normal(k, shape, jnp.float32) * std
        return w.astype(jnp.bfloat16)

    wq_b = mkw(kq, (C, C))
    wk_b = mkw(kk, (C, C))
    wv_b = mkw(kv, (C, C))
    wo_b = mkw(ko, (C, C))
    wfc_b = mkw(kf, (C, 4 * C))
    wp2_b = mkw(kp, (4 * C, C))

    wqkv_b = jnp.concatenate([wq_b, wk_b, wv_b], axis=1)     # (C, 3C) bf16

    # Rotary tables (bf16-rounded like the torch Rotary cache, used in f32).
    inv_freq = 1.0 / (10000.0 ** (jnp.arange(0, D, 2, dtype=jnp.float32) / D))
    t = jnp.arange(T, dtype=jnp.float32)
    freqs = jnp.outer(t, inv_freq)                           # (T, D//2)
    cos_h = jnp.cos(freqs).astype(jnp.bfloat16).astype(jnp.float32)
    sin_h = jnp.sin(freqs).astype(jnp.bfloat16).astype(jnp.float32)

    # Lane-dense (T, C) tables: per head the half-rotation uses [cos, cos] and
    # [sin, sin]; the sign of the second half lives in the swap matrix.
    cos_full = jnp.tile(jnp.concatenate([cos_h, cos_h], axis=1), (1, N_HEAD))
    sin_full = jnp.tile(jnp.concatenate([sin_h, sin_h], axis=1), (1, N_HEAD))

    # Signed half-swap permutation S:  (t @ S)[:, c] = +t2 on first half lanes,
    # -t1 on second half lanes of each head block.
    S_np = np.zeros((C, C), np.float32)
    for h in range(N_HEAD):
        for j in range(D // 2):
            S_np[h * D + D // 2 + j, h * D + j] = 1.0
            S_np[h * D + j, h * D + D // 2 + j] = -1.0
    swap = jnp.asarray(S_np).astype(jnp.bfloat16)

    # Block-diagonal per-head averaging matrix (entries 1/D inside each head).
    head_id = np.arange(C) // D
    mblk = jnp.asarray(
        (head_id[:, None] == head_id[None, :]).astype(np.float32) / D)

    # Additive causal bias (0 on/below diagonal, -1e30 above).
    mask_np = np.tril(np.ones((T, T), bool))
    bias = jnp.asarray(np.where(mask_np, 0.0, -1e30).astype(np.float32))

    out = block_forward(x, wqkv_b, wo_b, wfc_b, wp2_b,
                        mblk, swap, cos_full, sin_full, bias)
    out = jax.block_until_ready(out)

    params_f32 = tuple(w.astype(jnp.float32)
                       for w in (wq_b, wk_b, wv_b, wo_b, wfc_b, wp2_b))
    ref = block_reference(x, params_f32, cos_h, sin_h)

    assert out.shape == (B, T, C)
    assert jnp.allclose(out, ref, rtol=5e-3, atol=5e-3), (
        f"max abs err {jnp.max(jnp.abs(out - ref))}")
    print("KERNEL_OK")
</pallas_src>

<mosaic_0001>
module attributes {stable_mosaic.version = 11 : i64} {
  func.func @block_kernel(%arg0: i32, %arg1: memref<1x64x128xf32, #tpu.memory_space<vmem>>, %arg2: memref<128x384xbf16, #tpu.memory_space<vmem>>, %arg3: memref<128x128xbf16, #tpu.memory_space<vmem>>, %arg4: memref<128x512xbf16, #tpu.memory_space<vmem>>, %arg5: memref<512x128xbf16, #tpu.memory_space<vmem>>, %arg6: memref<128x128xf32, #tpu.memory_space<vmem>>, %arg7: memref<128x128xbf16, #tpu.memory_space<vmem>>, %arg8: memref<64x128xf32, #tpu.memory_space<vmem>>, %arg9: memref<64x128xf32, #tpu.memory_space<vmem>>, %arg10: memref<64x64xf32, #tpu.memory_space<vmem>>, %arg11: memref<1x64x128xf32, #tpu.memory_space<vmem>>) attributes {dimension_semantics = [#tpu.dimension_semantics<parallel>], iteration_bounds = array<i64: 2>, scalar_prefetch = 0 : i64, scratch_operands = 0 : i64, tpu.core_type = #tpu.core_type<tc>, window_params = [{transform_indices = @transform_0, window_bounds = array<i64: 1, 64, 128>}, {pipeline_mode = #tpu.pipeline_mode<synchronous>, transform_indices = @transform_1, window_bounds = array<i64: 128, 384>}, {pipeline_mode = #tpu.pipeline_mode<synchronous>, transform_indices = @transform_2, window_bounds = array<i64: 128, 128>}, {pipeline_mode = #tpu.pipeline_mode<synchronous>, transform_indices = @transform_3, window_bounds = array<i64: 128, 512>}, {pipeline_mode = #tpu.pipeline_mode<synchronous>, transform_indices = @transform_4, window_bounds = array<i64: 512, 128>}, {pipeline_mode = #tpu.pipeline_mode<synchronous>, transform_indices = @transform_5, window_bounds = array<i64: 128, 128>}, {pipeline_mode = #tpu.pipeline_mode<synchronous>, transform_indices = @transform_6, window_bounds = array<i64: 128, 128>}, {pipeline_mode = #tpu.pipeline_mode<synchronous>, transform_indices = @transform_7, window_bounds = array<i64: 64, 128>}, {pipeline_mode = #tpu.pipeline_mode<synchronous>, transform_indices = @transform_8, window_bounds = array<i64: 64, 128>}, {pipeline_mode = #tpu.pipeline_mode<synchronous>, transform_indices = @transform_9, window_bounds = array<i64: 64, 64>}, {transform_indices = @transform_10, window_bounds = array<i64: 1, 64, 128>}]} {
    %c0 = arith.constant 0 : index
    %c0_0 = arith.constant 0 : index
    %c0_1 = arith.constant 0 : index
    %0 = vector.load %arg1[%c0, %c0_0, %c0_1] : memref<1x64x128xf32, #tpu.memory_space<vmem>>, vector<1x64x128xf32>
    %1 = vector.shape_cast %0 : vector<1x64x128xf32> to vector<64x128xf32>
    %c0_2 = arith.constant 0 : index
    %c0_3 = arith.constant 0 : index
    %2 = vector.load %arg8[%c0_2, %c0_3] : memref<64x128xf32, #tpu.memory_space<vmem>>, vector<64x128xf32>
    %c0_4 = arith.constant 0 : index
    %c0_5 = arith.constant 0 : index
    %3 = vector.load %arg9[%c0_4, %c0_5] : memref<64x128xf32, #tpu.memory_space<vmem>>, vector<64x128xf32>
    %c0_6 = arith.constant 0 : index
    %c0_7 = arith.constant 0 : index
    %4 = vector.load %arg10[%c0_6, %c0_7] : memref<64x64xf32, #tpu.memory_space<vmem>>, vector<64x64xf32>
    %c0_8 = arith.constant 0 : index
    %c0_9 = arith.constant 0 : index
    %5 = vector.load %arg6[%c0_8, %c0_9] : memref<128x128xf32, #tpu.memory_space<vmem>>, vector<128x128xf32>
    %c0_10 = arith.constant 0 : index
    %c0_11 = arith.constant 0 : index
    %6 = vector.load %arg7[%c0_10, %c0_11] : memref<128x128xbf16, #tpu.memory_space<vmem>>, vector<128x128xbf16>
    %7 = arith.mulf %1, %1 : vector<64x128xf32>
    %cst = arith.constant dense<0.000000e+00> : vector<64xf32>
    %8 = vector.multi_reduction <add>, %7, %cst [1] : vector<64x128xf32> to vector<64xf32>
    %9 = vector.shape_cast %8 : vector<64xf32> to vector<64x1xf32>
    %cst_12 = arith.constant 1.280000e+02 : f32
    %10 = vector.broadcast %cst_12 : f32 to vector<64x1xf32>
    %11 = arith.divf %9, %10 : vector<64x1xf32>
    %cst_13 = arith.constant 1.1920929E-7 : f32
    %12 = vector.broadcast %cst_13 : f32 to vector<64x1xf32>
    %13 = arith.addf %11, %12 : vector<64x1xf32>
    %14 = math.rsqrt %13 : vector<64x1xf32>
    %15 = vector.broadcast %14 : vector<64x1xf32> to vector<64x128xf32>
    %16 = arith.mulf %1, %15 : vector<64x128xf32>
    %17 = arith.truncf %16 : vector<64x128xf32> to vector<64x128xbf16>
    %c0_14 = arith.constant 0 : index
    %c0_15 = arith.constant 0 : index
    %18 = vector.load %arg2[%c0_14, %c0_15] : memref<128x384xbf16, #tpu.memory_space<vmem>>, vector<128x384xbf16>
    %cst_16 = arith.constant dense<0.000000e+00> : vector<64x384xf32>
    %19 = tpu.matmul %17, %18, %cst_16 {dimension_numbers = #tpu.dot_dimension_numbers<[1], [0], [0], [1], [0, 0, 1, 1], [], []>} : vector<64x128xbf16>, vector<128x384xbf16>, vector<64x384xf32> -> vector<64x384xf32>
    %20 = vector.extract_strided_slice %19 {offsets = [0, 0], sizes = [64, 128], strides = [1, 1]} : vector<64x384xf32> to vector<64x128xf32>
    %21 = vector.extract_strided_slice %19 {offsets = [0, 128], sizes = [64, 128], strides = [1, 1]} : vector<64x384xf32> to vector<64x128xf32>
    %22 = vector.extract_strided_slice %19 {offsets = [0, 256], sizes = [64, 128], strides = [1, 1]} : vector<64x384xf32> to vector<64x128xf32>
    %23 = arith.mulf %20, %20 : vector<64x128xf32>
    %cst_17 = arith.constant dense<0.000000e+00> : vector<64x128xf32>
    %24 = tpu.matmul %23, %5, %cst_17 {dimension_numbers = #tpu.dot_dimension_numbers<[1], [0], [0], [1], [0, 0, 1, 1], [], []>} : vector<64x128xf32>, vector<128x128xf32>, vector<64x128xf32> -> vector<64x128xf32>
    %cst_18 = arith.constant 1.1920929E-7 : f32
    %25 = vector.broadcast %cst_18 : f32 to vector<64x128xf32>
    %26 = arith.addf %24, %25 : vector<64x128xf32>
    %27 = math.rsqrt %26 : vector<64x128xf32>
    %28 = arith.mulf %20, %27 : vector<64x128xf32>
    %29 = arith.truncf %28 : vector<64x128xf32> to vector<64x128xbf16>
    %cst_19 = arith.constant dense<0.000000e+00> : vector<64x128xf32>
    %30 = tpu.matmul %29, %6, %cst_19 {dimension_numbers = #tpu.dot_dimension_numbers<[1], [0], [0], [1], [0, 0, 1, 1], [], []>} : vector<64x128xbf16>, vector<128x128xbf16>, vector<64x128xf32> -> vector<64x128xf32>
    %31 = arith.mulf %28, %2 : vector<64x128xf32>
    %32 = arith.mulf %30, %3 : vector<64x128xf32>
    %33 = arith.addf %31, %32 : vector<64x128xf32>
    %34 = arith.truncf %33 : vector<64x128xf32> to vector<64x128xbf16>
    %35 = arith.mulf %21, %21 : vector<64x128xf32>
    %cst_20 = arith.constant dense<0.000000e+00> : vector<64x128xf32>
    %36 = tpu.matmul %35, %5, %cst_20 {dimension_numbers = #tpu.dot_dimension_numbers<[1], [0], [0], [1], [0, 0, 1, 1], [], []>} : vector<64x128xf32>, vector<128x128xf32>, vector<64x128xf32> -> vector<64x128xf32>
    %cst_21 = arith.constant 1.1920929E-7 : f32
    %37 = vector.broadcast %cst_21 : f32 to vector<64x128xf32>
    %38 = arith.addf %36, %37 : vector<64x128xf32>
    %39 = math.rsqrt %38 : vector<64x128xf32>
    %40 = arith.mulf %21, %39 : vector<64x128xf32>
    %41 = arith.truncf %40 : vector<64x128xf32> to vector<64x128xbf16>
    %cst_22 = arith.constant dense<0.000000e+00> : vector<64x128xf32>
    %42 = tpu.matmul %41, %6, %cst_22 {dimension_numbers = #tpu.dot_dimension_numbers<[1], [0], [0], [1], [0, 0, 1, 1], [], []>} : vector<64x128xbf16>, vector<128x128xbf16>, vector<64x128xf32> -> vector<64x128xf32>
    %43 = arith.mulf %40, %2 : vector<64x128xf32>
    %44 = arith.mulf %42, %3 : vector<64x128xf32>
    %45 = arith.addf %43, %44 : vector<64x128xf32>
    %46 = arith.truncf %45 : vector<64x128xf32> to vector<64x128xbf16>
    %47 = arith.truncf %22 : vector<64x128xf32> to vector<64x128xbf16>
    %cst_23 = arith.constant 0.000000e+00 : f32
    %48 = vector.broadcast %cst_23 : f32 to vector<64x128xf32>
    %49 = vector.extract_strided_slice %34 {offsets = [0, 0], sizes = [64, 32], strides = [1, 1]} : vector<64x128xbf16> to vector<64x32xbf16>
    %50 = vector.extract_strided_slice %46 {offsets = [0, 0], sizes = [64, 32], strides = [1, 1]} : vector<64x128xbf16> to vector<64x32xbf16>
    %51 = vector.extract_strided_slice %47 {offsets = [0, 0], sizes = [64, 32], strides = [1, 1]} : vector<64x128xbf16> to vector<64x32xbf16>
    %cst_24 = arith.constant dense<0.000000e+00> : vector<64x64xf32>
    %52 = tpu.matmul %49, %50, %cst_24 {dimension_numbers = #tpu.dot_dimension_numbers<[1], [1], [0], [0], [0, 0, 1, 0], [], []>} : vector<64x32xbf16>, vector<64x32xbf16>, vector<64x64xf32> -> vector<64x64xf32>
    %cst_25 = arith.constant 0.176776692 : f32
    %53 = vector.broadcast %cst_25 : f32 to vector<64x64xf32>
    %54 = arith.mulf %52, %53 : vector<64x64xf32>
    %55 = arith.addf %54, %4 : vector<64x64xf32>
    %cst_26 = arith.constant dense<0xFF800000> : vector<64xf32>
    %56 = vector.multi_reduction <maximumf>, %55, %cst_26 [1] : vector<64x64xf32> to vector<64xf32>
    %57 = vector.shape_cast %56 : vector<64xf32> to vector<64x1xf32>
    %58 = vector.broadcast %57 : vector<64x1xf32> to vector<64x64xf32>
    %59 = arith.subf %55, %58 : vector<64x64xf32>
    %60 = math.exp %59 : vector<64x64xf32>
    %cst_27 = arith.constant dense<0.000000e+00> : vector<64xf32>
    %61 = vector.multi_reduction <add>, %60, %cst_27 [1] : vector<64x64xf32> to vector<64xf32>
    %62 = vector.shape_cast %61 : vector<64xf32> to vector<64x1xf32>
    %63 = tpu.reciprocal %62 {approx = true} : vector<64x1xf32> -> vector<64x1xf32>
    %64 = vector.broadcast %63 : vector<64x1xf32> to vector<64x64xf32>
    %65 = arith.mulf %60, %64 : vector<64x64xf32>
    %66 = arith.truncf %65 : vector<64x64xf32> to vector<64x64xbf16>
    %cst_28 = arith.constant dense<0.000000e+00> : vector<64x32xf32>
    %67 = tpu.matmul %66, %51, %cst_28 {dimension_numbers = #tpu.dot_dimension_numbers<[1], [0], [0], [1], [0, 0, 1, 1], [], []>} : vector<64x64xbf16>, vector<64x32xbf16>, vector<64x32xf32> -> vector<64x32xf32>
    %68 = arith.truncf %67 : vector<64x32xf32> to vector<64x32xbf16>
    %c0_29 = arith.constant 0 : index
    %c0_30 = arith.constant 0 : index
    %69 = vector.load %arg3[%c0_29, %c0_30] : memref<128x128xbf16, #tpu.memory_space<vmem>>, vector<32x128xbf16>
    %cst_31 = arith.constant dense<0.000000e+00> : vector<64x128xf32>
    %70 = tpu.matmul %68, %69, %cst_31 {dimension_numbers = #tpu.dot_dimension_numbers<[1], [0], [0], [1], [0, 0, 1, 1], [], []>} : vector<64x32xbf16>, vector<32x128xbf16>, vector<64x128xf32> -> vector<64x128xf32>
    %71 = arith.addf %48, %70 : vector<64x128xf32>
    %72 = vector.extract_strided_slice %34 {offsets = [0, 32], sizes = [64, 32], strides = [1, 1]} : vector<64x128xbf16> to vector<64x32xbf16>
    %73 = vector.extract_strided_slice %46 {offsets = [0, 32], sizes = [64, 32], strides = [1, 1]} : vector<64x128xbf16> to vector<64x32xbf16>
    %74 = vector.extract_strided_slice %47 {offsets = [0, 32], sizes = [64, 32], strides = [1, 1]} : vector<64x128xbf16> to vector<64x32xbf16>
    %cst_32 = arith.constant dense<0.000000e+00> : vector<64x64xf32>
    %75 = tpu.matmul %72, %73, %cst_32 {dimension_numbers = #tpu.dot_dimension_numbers<[1], [1], [0], [0], [0, 0, 1, 0], [], []>} : vector<64x32xbf16>, vector<64x32xbf16>, vector<64x64xf32> -> vector<64x64xf32>
    %cst_33 = arith.constant 0.176776692 : f32
    %76 = vector.broadcast %cst_33 : f32 to vector<64x64xf32>
    %77 = arith.mulf %75, %76 : vector<64x64xf32>
    %78 = arith.addf %77, %4 : vector<64x64xf32>
    %cst_34 = arith.constant dense<0xFF800000> : vector<64xf32>
    %79 = vector.multi_reduction <maximumf>, %78, %cst_34 [1] : vector<64x64xf32> to vector<64xf32>
    %80 = vector.shape_cast %79 : vector<64xf32> to vector<64x1xf32>
    %81 = vector.broadcast %80 : vector<64x1xf32> to vector<64x64xf32>
    %82 = arith.subf %78, %81 : vector<64x64xf32>
    %83 = math.exp %82 : vector<64x64xf32>
    %cst_35 = arith.constant dense<0.000000e+00> : vector<64xf32>
    %84 = vector.multi_reduction <add>, %83, %cst_35 [1] : vector<64x64xf32> to vector<64xf32>
    %85 = vector.shape_cast %84 : vector<64xf32> to vector<64x1xf32>
    %86 = tpu.reciprocal %85 {approx = true} : vector<64x1xf32> -> vector<64x1xf32>
    %87 = vector.broadcast %86 : vector<64x1xf32> to vector<64x64xf32>
    %88 = arith.mulf %83, %87 : vector<64x64xf32>
    %89 = arith.truncf %88 : vector<64x64xf32> to vector<64x64xbf16>
    %cst_36 = arith.constant dense<0.000000e+00> : vector<64x32xf32>
    %90 = tpu.matmul %89, %74, %cst_36 {dimension_numbers = #tpu.dot_dimension_numbers<[1], [0], [0], [1], [0, 0, 1, 1], [], []>} : vector<64x64xbf16>, vector<64x32xbf16>, vector<64x32xf32> -> vector<64x32xf32>
    %91 = arith.truncf %90 : vector<64x32xf32> to vector<64x32xbf16>
    %c32 = arith.constant 32 : index
    %c0_37 = arith.constant 0 : index
    %92 = vector.load %arg3[%c32, %c0_37] : memref<128x128xbf16, #tpu.memory_space<vmem>>, vector<32x128xbf16>
    %cst_38 = arith.constant dense<0.000000e+00> : vector<64x128xf32>
    %93 = tpu.matmul %91, %92, %cst_38 {dimension_numbers = #tpu.dot_dimension_numbers<[1], [0], [0], [1], [0, 0, 1, 1], [], []>} : vector<64x32xbf16>, vector<32x128xbf16>, vector<64x128xf32> -> vector<64x128xf32>
    %94 = arith.addf %71, %93 : vector<64x128xf32>
    %95 = vector.extract_strided_slice %34 {offsets = [0, 64], sizes = [64, 32], strides = [1, 1]} : vector<64x128xbf16> to vector<64x32xbf16>
    %96 = vector.extract_strided_slice %46 {offsets = [0, 64], sizes = [64, 32], strides = [1, 1]} : vector<64x128xbf16> to vector<64x32xbf16>
    %97 = vector.extract_strided_slice %47 {offsets = [0, 64], sizes = [64, 32], strides = [1, 1]} : vector<64x128xbf16> to vector<64x32xbf16>
    %cst_39 = arith.constant dense<0.000000e+00> : vector<64x64xf32>
    %98 = tpu.matmul %95, %96, %cst_39 {dimension_numbers = #tpu.dot_dimension_numbers<[1], [1], [0], [0], [0, 0, 1, 0], [], []>} : vector<64x32xbf16>, vector<64x32xbf16>, vector<64x64xf32> -> vector<64x64xf32>
    %cst_40 = arith.constant 0.176776692 : f32
    %99 = vector.broadcast %cst_40 : f32 to vector<64x64xf32>
    %100 = arith.mulf %98, %99 : vector<64x64xf32>
    %101 = arith.addf %100, %4 : vector<64x64xf32>
    %cst_41 = arith.constant dense<0xFF800000> : vector<64xf32>
    %102 = vector.multi_reduction <maximumf>, %101, %cst_41 [1] : vector<64x64xf32> to vector<64xf32>
    %103 = vector.shape_cast %102 : vector<64xf32> to vector<64x1xf32>
    %104 = vector.broadcast %103 : vector<64x1xf32> to vector<64x64xf32>
    %105 = arith.subf %101, %104 : vector<64x64xf32>
    %106 = math.exp %105 : vector<64x64xf32>
    %cst_42 = arith.constant dense<0.000000e+00> : vector<64xf32>
    %107 = vector.multi_reduction <add>, %106, %cst_42 [1] : vector<64x64xf32> to vector<64xf32>
    %108 = vector.shape_cast %107 : vector<64xf32> to vector<64x1xf32>
    %109 = tpu.reciprocal %108 {approx = true} : vector<64x1xf32> -> vector<64x1xf32>
    %110 = vector.broadcast %109 : vector<64x1xf32> to vector<64x64xf32>
    %111 = arith.mulf %106, %110 : vector<64x64xf32>
    %112 = arith.truncf %111 : vector<64x64xf32> to vector<64x64xbf16>
    %cst_43 = arith.constant dense<0.000000e+00> : vector<64x32xf32>
    %113 = tpu.matmul %112, %97, %cst_43 {dimension_numbers = #tpu.dot_dimension_numbers<[1], [0], [0], [1], [0, 0, 1, 1], [], []>} : vector<64x64xbf16>, vector<64x32xbf16>, vector<64x32xf32> -> vector<64x32xf32>
    %114 = arith.truncf %113 : vector<64x32xf32> to vector<64x32xbf16>
    %c64 = arith.constant 64 : index
    %c0_44 = arith.constant 0 : index
    %115 = vector.load %arg3[%c64, %c0_44] : memref<128x128xbf16, #tpu.memory_space<vmem>>, vector<32x128xbf16>
    %cst_45 = arith.constant dense<0.000000e+00> : vector<64x128xf32>
    %116 = tpu.matmul %114, %115, %cst_45 {dimension_numbers = #tpu.dot_dimension_numbers<[1], [0], [0], [1], [0, 0, 1, 1], [], []>} : vector<64x32xbf16>, vector<32x128xbf16>, vector<64x128xf32> -> vector<64x128xf32>
    %117 = arith.addf %94, %116 : vector<64x128xf32>
    %118 = vector.extract_strided_slice %34 {offsets = [0, 96], sizes = [64, 32], strides = [1, 1]} : vector<64x128xbf16> to vector<64x32xbf16>
    %119 = vector.extract_strided_slice %46 {offsets = [0, 96], sizes = [64, 32], strides = [1, 1]} : vector<64x128xbf16> to vector<64x32xbf16>
    %120 = vector.extract_strided_slice %47 {offsets = [0, 96], sizes = [64, 32], strides = [1, 1]} : vector<64x128xbf16> to vector<64x32xbf16>
    %cst_46 = arith.constant dense<0.000000e+00> : vector<64x64xf32>
    %121 = tpu.matmul %118, %119, %cst_46 {dimension_numbers = #tpu.dot_dimension_numbers<[1], [1], [0], [0], [0, 0, 1, 0], [], []>} : vector<64x32xbf16>, vector<64x32xbf16>, vector<64x64xf32> -> vector<64x64xf32>
    %cst_47 = arith.constant 0.176776692 : f32
    %122 = vector.broadcast %cst_47 : f32 to vector<64x64xf32>
    %123 = arith.mulf %121, %122 : vector<64x64xf32>
    %124 = arith.addf %123, %4 : vector<64x64xf32>
    %cst_48 = arith.constant dense<0xFF800000> : vector<64xf32>
    %125 = vector.multi_reduction <maximumf>, %124, %cst_48 [1] : vector<64x64xf32> to vector<64xf32>
    %126 = vector.shape_cast %125 : vector<64xf32> to vector<64x1xf32>
    %127 = vector.broadcast %126 : vector<64x1xf32> to vector<64x64xf32>
    %128 = arith.subf %124, %127 : vector<64x64xf32>
    %129 = math.exp %128 : vector<64x64xf32>
    %cst_49 = arith.constant dense<0.000000e+00> : vector<64xf32>
    %130 = vector.multi_reduction <add>, %129, %cst_49 [1] : vector<64x64xf32> to vector<64xf32>
    %131 = vector.shape_cast %130 : vector<64xf32> to vector<64x1xf32>
    %132 = tpu.reciprocal %131 {approx = true} : vector<64x1xf32> -> vector<64x1xf32>
    %133 = vector.broadcast %132 : vector<64x1xf32> to vector<64x64xf32>
    %134 = arith.mulf %129, %133 : vector<64x64xf32>
    %135 = arith.truncf %134 : vector<64x64xf32> to vector<64x64xbf16>
    %cst_50 = arith.constant dense<0.000000e+00> : vector<64x32xf32>
    %136 = tpu.matmul %135, %120, %cst_50 {dimension_numbers = #tpu.dot_dimension_numbers<[1], [0], [0], [1], [0, 0, 1, 1], [], []>} : vector<64x64xbf16>, vector<64x32xbf16>, vector<64x32xf32> -> vector<64x32xf32>
    %137 = arith.truncf %136 : vector<64x32xf32> to vector<64x32xbf16>
    %c96 = arith.constant 96 : index
    %c0_51 = arith.constant 0 : index
    %138 = vector.load %arg3[%c96, %c0_51] : memref<128x128xbf16, #tpu.memory_space<vmem>>, vector<32x128xbf16>
    %cst_52 = arith.constant dense<0.000000e+00> : vector<64x128xf32>
    %139 = tpu.matmul %137, %138, %cst_52 {dimension_numbers = #tpu.dot_dimension_numbers<[1], [0], [0], [1], [0, 0, 1, 1], [], []>} : vector<64x32xbf16>, vector<32x128xbf16>, vector<64x128xf32> -> vector<64x128xf32>
    %140 = arith.addf %117, %139 : vector<64x128xf32>
    %141 = arith.addf %1, %140 : vector<64x128xf32>
    %142 = arith.mulf %141, %141 : vector<64x128xf32>
    %cst_53 = arith.constant dense<0.000000e+00> : vector<64xf32>
    %143 = vector.multi_reduction <add>, %142, %cst_53 [1] : vector<64x128xf32> to vector<64xf32>
    %144 = vector.shape_cast %143 : vector<64xf32> to vector<64x1xf32>
    %cst_54 = arith.constant 1.280000e+02 : f32
    %145 = vector.broadcast %cst_54 : f32 to vector<64x1xf32>
    %146 = arith.divf %144, %145 : vector<64x1xf32>
    %cst_55 = arith.constant 1.1920929E-7 : f32
    %147 = vector.broadcast %cst_55 : f32 to vector<64x1xf32>
    %148 = arith.addf %146, %147 : vector<64x1xf32>
    %149 = math.rsqrt %148 : vector<64x1xf32>
    %150 = vector.broadcast %149 : vector<64x1xf32> to vector<64x128xf32>
    %151 = arith.mulf %141, %150 : vector<64x128xf32>
    %152 = arith.truncf %151 : vector<64x128xf32> to vector<64x128xbf16>
    %c0_56 = arith.constant 0 : index
    %c0_57 = arith.constant 0 : index
    %153 = vector.load %arg4[%c0_56, %c0_57] : memref<128x512xbf16, #tpu.memory_space<vmem>>, vector<128x512xbf16>
    %cst_58 = arith.constant dense<0.000000e+00> : vector<64x512xf32>
    %154 = tpu.matmul %152, %153, %cst_58 {dimension_numbers = #tpu.dot_dimension_numbers<[1], [0], [0], [1], [0, 0, 1, 1], [], []>} : vector<64x128xbf16>, vector<128x512xbf16>, vector<64x512xf32> -> vector<64x512xf32>
    %cst_59 = arith.constant 0.000000e+00 : f32
    %155 = vector.broadcast %cst_59 : f32 to vector<64x512xf32>
    %156 = arith.maximumf %154, %155 : vector<64x512xf32>
    %157 = arith.mulf %156, %156 : vector<64x512xf32>
    %158 = arith.truncf %157 : vector<64x512xf32> to vector<64x512xbf16>
    %c0_60 = arith.constant 0 : index
    %c0_61 = arith.constant 0 : index
    %159 = vector.load %arg5[%c0_60, %c0_61] : memref<512x128xbf16, #tpu.memory_space<vmem>>, vector<512x128xbf16>
    %cst_62 = arith.constant dense<0.000000e+00> : vector<64x128xf32>
    %160 = tpu.matmul %158, %159, %cst_62 {dimension_numbers = #tpu.dot_dimension_numbers<[1], [0], [0], [1], [0, 0, 1, 1], [], []>} : vector<64x512xbf16>, vector<512x128xbf16>, vector<64x128xf32> -> vector<64x128xf32>
    %161 = arith.addf %141, %160 : vector<64x128xf32>
    %c0_63 = arith.constant 0 : index
    %c0_64 = arith.constant 0 : index
    %c0_65 = arith.constant 0 : index
    %162 = vector.load %arg11[%c0_63, %c0_64, %c0_65] : memref<1x64x128xf32, #tpu.memory_space<vmem>>, vector<1x64x128xf32>
    %163 = vector.shape_cast %162 : vector<1x64x128xf32> to vector<64x128xf32>
    %164 = vector.shape_cast %161 : vector<64x128xf32> to vector<1x64x128xf32>
    tpu.vector_store %arg11[%c0_63, %c0_64, %c0_65], %164 {strides = array<i32>} : memref<1x64x128xf32, #tpu.memory_space<vmem>>, vector<1x64x128xf32>,
    return
  }
  func.func @transform_0(%arg0: i32) -> (i32, i32, i32) {
    %c0_i32 = arith.constant 0 : i32
    %c0_i32_0 = arith.constant 0 : i32
    %c0_i32_1 = arith.constant 0 : i32
    return %arg0, %c0_i32, %c0_i32_0 : i32, i32, i32
  }
  func.func @transform_1(%arg0: i32) -> (i32, i32) {
    %c0_i32 = arith.constant 0 : i32
    %c0_i32_0 = arith.constant 0 : i32
    %c0_i32_1 = arith.constant 0 : i32
    return %c0_i32, %c0_i32_0 : i32, i32
  }
  func.func @transform_2(%arg0: i32) -> (i32, i32) {
    %c0_i32 = arith.constant 0 : i32
    %c0_i32_0 = arith.constant 0 : i32
    %c0_i32_1 = arith.constant 0 : i32
    return %c0_i32, %c0_i32_0 : i32, i32
  }
  func.func @transform_3(%arg0: i32) -> (i32, i32) {
    %c0_i32 = arith.constant 0 : i32
    %c0_i32_0 = arith.constant 0 : i32
    %c0_i32_1 = arith.constant 0 : i32
    return %c0_i32, %c0_i32_0 : i32, i32
  }
  func.func @transform_4(%arg0: i32) -> (i32, i32) {
    %c0_i32 = arith.constant 0 : i32
    %c0_i32_0 = arith.constant 0 : i32
    %c0_i32_1 = arith.constant 0 : i32
    return %c0_i32, %c0_i32_0 : i32, i32
  }
  func.func @transform_5(%arg0: i32) -> (i32, i32) {
    %c0_i32 = arith.constant 0 : i32
    %c0_i32_0 = arith.constant 0 : i32
    %c0_i32_1 = arith.constant 0 : i32
    return %c0_i32, %c0_i32_0 : i32, i32
  }
  func.func @transform_6(%arg0: i32) -> (i32, i32) {
    %c0_i32 = arith.constant 0 : i32
    %c0_i32_0 = arith.constant 0 : i32
    %c0_i32_1 = arith.constant 0 : i32
    return %c0_i32, %c0_i32_0 : i32, i32
  }
  func.func @transform_7(%arg0: i32) -> (i32, i32) {
    %c0_i32 = arith.constant 0 : i32
    %c0_i32_0 = arith.constant 0 : i32
    %c0_i32_1 = arith.constant 0 : i32
    return %c0_i32, %c0_i32_0 : i32, i32
  }
  func.func @transform_8(%arg0: i32) -> (i32, i32) {
    %c0_i32 = arith.constant 0 : i32
    %c0_i32_0 = arith.constant 0 : i32
    %c0_i32_1 = arith.constant 0 : i32
    return %c0_i32, %c0_i32_0 : i32, i32
  }
  func.func @transform_9(%arg0: i32) -> (i32, i32) {
    %c0_i32 = arith.constant 0 : i32
    %c0_i32_0 = arith.constant 0 : i32
    %c0_i32_1 = arith.constant 0 : i32
    return %c0_i32, %c0_i32_0 : i32, i32
  }
  func.func @transform_10(%arg0: i32) -> (i32, i32, i32) {
    %c0_i32 = arith.constant 0 : i32
    %c0_i32_0 = arith.constant 0 : i32
    %c0_i32_1 = arith.constant 0 : i32
    return %arg0, %c0_i32, %c0_i32_0 : i32, i32, i32
  }
}

</mosaic_0001>

<bundles_post_ra>
// kernel: tpu_custom_call.1
= control target key start
LH: loop header
LB: loop body
LE: loop exit
PB: predicated region body
PF: predicated region fallthrough
CT: control target
= control target key end

     0   :  { %s6479_s0 = inlined_call_operand.hbm [shape: f32[2,64,128], index: 0, kind: input, shape index: {}]   ;;  %s6480_s1 = inlined_call_operand.hbm [shape: bf16[128,384], index: 1, kind: input, shape index: {}]   ;;  %s6481_s2 = inlined_call_operand.hbm [shape: bf16[128,128], index: 2, kind: input, shape index: {}]   ;;  %s6482_s3 = inlined_call_operand.hbm [shape: bf16[128,512], index: 3, kind: input, shape index: {}]   ;;  %s6483_s4 = inlined_call_operand.hbm [shape: bf16[512,128], index: 4, kind: input, shape index: {}]   ;;  %s6484_s5 = inlined_call_operand.hbm [shape: f32[128,128], index: 5, kind: input, shape index: {}]   ;;  %s6485_s6 = inlined_call_operand.hbm [shape: bf16[128,128], index: 6, kind: input, shape index: {}]   ;;  %s6486_s7 = inlined_call_operand.hbm [shape: f32[64,128], index: 7, kind: input, shape index: {}]   ;;  %s6487_s8 = inlined_call_operand.hbm [shape: f32[64,128], index: 8, kind: input, shape index: {}]   ;;  %s6488_s9 = inlined_call_operand.hbm [shape: f32[64,64], index: 9, kind: input, shape index: {}]   ;;  %s6489_s10 = inlined_call_operand.hbm [shape: f32[2,64,128], index: 10, kind: output, shape index: {}]  }
   0x1   :  { %6494 = sst [smem:[#allocation28_spill]] %s6480_s1 }
   0x2   :  { %6495 = sst [smem:[#allocation29_spill]] %s6481_s2 }
   0x3   :  { %6496 = sst [smem:[#allocation30_spill]] %s6482_s3 }
   0x4   :  { %6497 = sst [smem:[#allocation31_spill]] %s6489_s10 }
   0x5   :  { %15 = vsyncpa [#allocation3], 0 }
   0x6   :  { %17 = vsyncpa [#allocation3 + $0x1], 0 }
   0x7   :  { %18 = vsyncpa [#allocation6], 0 }
   0x8   :  { %19 = vsyncpa [#allocation9], 0 }
   0x9   :  { %20 = vsyncpa [#allocation12], 0 }
   0xa   :  { %21 = vsyncpa [#allocation15], 0 }
   0xb   :  { %22 = vsyncpa [#allocation18], 0 }
   0xc   :  { %23 = vsyncpa [#allocation4], 0 }
   0xd   :  { %25 = vsyncpa [#allocation4 + $0x1], 0  ;;  %s5198_s13 = smov 0   ;;  %s5200_s14 = smov 0  }
   0xe   :  { %s5202_s15 = smov 0   ;;  %s5204_s16 = smov 0  }
   0xf LB: > { %s6498_s1 = sld [smem:[#allocation28_spill]]  ;;  %s5222_s20 = sadd.s32 4294967295, %s5118_s16   ;;  %s5118_s16 = sphi %s5204_s16, %s6522_s16   ;;  %s5114_s15 = sphi %s5202_s15, %s6521_s15   ;;  %s5110_s14 = sphi %s5200_s14, %s6520_s14   ;;  %s5106_s13 = sphi %s5198_s13, %s6519_s13  }
  0x10   : > { %p3750_p0 = scmp.ge.s32.totalorder %s5118_s16, 1  ;;  %p52_p1 = scmp.eq.s32.totalorder %s5222_s20, 0 }
  0x11   : > { %p277_p2 = scmp.lt.s32.totalorder %s5118_s16, 3  ;;  %s5120_s22 = smov [#allocation5]  }
  0x12   : > { %s290_s23 = sshll.u32 %s5120_s22, 4  ;;  %s6501_s3 = sld [smem:[#allocation30_spill]]  ;;  %s291_s23 = int_to_ptr.vmem [resolvable:$true] %s290_s23 }
  0x13   : > { %p5227_p3 = pnand %p3750_p0, %p277_p2  ;;  %s5121_s28 = smov [#allocation8]  }
  0x14   : > { %s318_s29 = sshll.u32 %s5121_s28, 4  ;;  %s5122_s30 = smov 192   ;;  %s319_s29 = int_to_ptr.vmem [resolvable:$true] %s318_s29 }
  0x15   : > { %s288_s19 = sshll.u32 %s6498_s1, 4  ;;  %p4419_p4 = pneg %p5227_p3  ;;  %s289_s19 = int_to_ptr.hbm [resolvable:$true] %s288_s19 }
  0x16   : > { %s6499_s21 = scalar_select %p5227_p3, 1, 0 }
  0x17   : > { %p5239_p6 = pnand %p4419_p4, %p52_p1  ;;  %s5123_s11 = smov 12  }
  0x18   : > { %6500 = sst [smem:[#allocation27_spill]] %s6499_s21  ;;  %s316_s26 = sshll.u32 %s6501_s3, 4  ;;  %s317_s26 = int_to_ptr.hbm [resolvable:$true] %s316_s26 }
  0x19   : > { %4422 = dma.hbm_to_vmem [thread:$0]  (!%p5239_p6), %s289_s19, 3072, %s291_s23, [#allocation6], %s5122_s30, %s5122_s30, %s5123_s11  }
  0x1a   : > { %s5124_s12 = smov 256   ;;  %s5125_s17 = smov 16  }
  0x1b   : > { %4428 = dma.hbm_to_vmem [thread:$0]  (!%p5239_p6), %s317_s26, 4096, %s319_s29, [#allocation9], %s5124_s12, %s5124_s12, %s5125_s17  }
  0x1c   : > { %s344_s24 = sshll.u32 %s6484_s5, 4  ;;  %s5126_s25 = smov [#allocation11]   ;;  %s345_s24 = int_to_ptr.hbm [resolvable:$true] %s344_s24 }
  0x1d   : > { %s346_s1 = sshll.u32 %s5126_s25, 4  ;;  %s372_s10 = sshll.u32 %s6486_s7, 4  ;;  %s347_s1 = int_to_ptr.vmem [resolvable:$true] %s346_s1  ;;  %s373_s10 = int_to_ptr.hbm [resolvable:$true] %s372_s10 }
  0x1e   : > { %s6492_s21 = smov 128   ;;  %s6493_s19 = smov 8  }
  0x1f   : > { %4434 = dma.hbm_to_vmem [thread:$0]  (!%p5239_p6), %s345_s24, 2048, %s347_s1, [#allocation12], %s6492_s21, %s6492_s21, %s6493_s19  }
  0x20   : > { %s5129_s23 = smov [#allocation14]   ;;  %s6503_s2 = sld [smem:[#allocation29_spill]] }
  0x21   : > { %s374_s26 = sshll.u32 %s5129_s23, 4  ;;  %s5130_s3 = smov [#allocation7]   ;;  %s375_s26 = int_to_ptr.vmem [resolvable:$true] %s374_s26 }
  0x22   : > { %4440 = dma.hbm_to_vmem [thread:$0]  (!%p5239_p6), %s373_s10, 1024, %s375_s26, [#allocation15], %s6492_s21, %s6492_s21, %s6493_s19  }
  0x23   : > { %s304_s12 = sshll.u32 %s5130_s3, 4  ;;  %s330_s18 = sshll.u32 %s6483_s4, 4  ;;  %s305_s12 = int_to_ptr.vmem [resolvable:$true] %s304_s12  ;;  %s331_s18 = int_to_ptr.hbm [resolvable:$true] %s330_s18 }
  0x24   : > { %s5131_s22 = smov 64   ;;  %s5132_s24 = smov 4  }
  0x25   : > { %s5133_s25 = smov [#allocation10]   ;;  %s358_s10 = sshll.u32 %s6485_s6, 4  ;;  %s359_s10 = int_to_ptr.hbm [resolvable:$true] %s358_s10 }
  0x26   : > { %s302_s11 = sshll.u32 %s6503_s2, 4  ;;  %s332_s28 = sshll.u32 %s5133_s25, 4  ;;  %s303_s11 = int_to_ptr.hbm [resolvable:$true] %s302_s11  ;;  %s333_s28 = int_to_ptr.vmem [resolvable:$true] %s332_s28 }
  0x27   : > { %4425 = dma.hbm_to_vmem [thread:$0]  (!%p5239_p6), %s303_s11, 1024, %s305_s12, [#allocation6], %s5131_s22, %s5131_s22, %s5132_s24  }
  0x28   : > { %4431 = dma.hbm_to_vmem [thread:$0]  (!%p5239_p6), %s331_s18, 4096, %s333_s28, [#allocation9], %s5131_s22, %s5131_s22, %s5132_s24  }
  0x29   : > { %s386_s3 = sshll.u32 %s6487_s8, 4  ;;  %s5134_s17 = smov [#allocation13]   ;;  %s387_s3 = int_to_ptr.hbm [resolvable:$true] %s386_s3 }
  0x2a   : > { %s360_s11 = sshll.u32 %s5134_s17, 4  ;;  %s5135_s12 = smov [#allocation16]   ;;  %s361_s11 = int_to_ptr.vmem [resolvable:$true] %s360_s11 }
  0x2b   : > { %4437 = dma.hbm_to_vmem [thread:$0]  (!%p5239_p6), %s359_s10, 1024, %s361_s11, [#allocation12], %s5131_s22, %s5131_s22, %s5132_s24  }
  0x2c   : > { %s388_s1 = sshll.u32 %s5135_s12, 4  ;;  %s400_s28 = sshll.u32 %s6488_s9, 4  ;;  %s389_s1 = int_to_ptr.vmem [resolvable:$true] %s388_s1  ;;  %s401_s28 = int_to_ptr.hbm [resolvable:$true] %s400_s28 }
  0x2d   : > { %4443 = dma.hbm_to_vmem [thread:$0]  (!%p5239_p6), %s387_s3, 1024, %s389_s1, [#allocation15], %s6492_s21, %s6492_s21, %s6493_s19  }
  0x2e   : > { %s5136_s22 = smov [#allocation17]   ;;  %s3749_s23 = sadd.s32 4294967294, %s5118_s16  }
  0x2f   : > { %s402_s24 = sshll.u32 %s5136_s22, 4  ;;  %s5296_s29 = sadd.s32 1, %s5118_s16   ;;  %s403_s24 = int_to_ptr.vmem [resolvable:$true] %s402_s24 }
  0x30   : > { %4446 = dma.hbm_to_vmem [thread:$0]  (!%p5239_p6), %s401_s28, 1024, %s403_s24, [#allocation18], %s6492_s21, %s6492_s21, %s6493_s19  }
  0x31   : > { %s38_s10 = sadd.s32 1, %s5114_s15  ;;  %s35_s26 = ssub.s32 %s5118_s16, %s5296_s29 }
  0x32   : > { %p45_p7 = scmp.ne.s32.totalorder %s5114_s15, %s5110_s14  ;;  %p36_p8 = scmp.eq.s32.totalorder %s35_s26, 0 }
  0x33   : > { %p46_p9 = scmp.eq.s32.totalorder %s5118_s16, 0  ;;  %p51_p10 = scmp.ne.s32.totalorder %s5110_s14, %s5106_s13 }
  0x34   : > { %p264_p11 = scmp.eq.s32.totalorder %s5222_s20, 1  ;;  %p270_p0 = scmp.eq.s32.totalorder %s3749_s23, 1 }
  0x35   : > { %s5308_s30 = scalar_select %p36_p8, %s5114_s15, %s38_s10  }
  0x36   : > { %p5312_p12 = por %p52_p1, %p51_p10  ;;  %p5316_p13 = por %p264_p11, %p45_p7 }
  0x37   : > { %p47_p2 = por %p46_p9, %p45_p7  ;;  %s416_s17 = sand.u32 1, %s5114_s15  }
  0x38   : > { %p5321_p4 = por %p270_p0, %p51_p10  ;;  %p4464_p6 = scmp.lt.s32.totalorder %s5118_s16, 2 }
  0x39   : > { %s3761_s12 = sshll.u32 %s416_s17, 6  ;;  %s4245_s1 = sshll.u32 %s5118_s16, 6 }
  0x3a   : > { %s425_s28 = scalar_lea.hbm %s6479_s0, %s4245_s1  ;;  %s420_s24 = scalar_lea.vmem [#allocation2], %s3761_s12 }
  0x3b   : > { %s426_s22 = sshll.u32 %s425_s28, 4  ;;  %s428_s10 = sshll.u32 %s420_s24, 4  ;;  %s427_s22 = int_to_ptr.hbm [resolvable:$true] %s426_s22  ;;  %s429_s10 = int_to_ptr.vmem [resolvable:$true] %s428_s10 }
  0x3c   : > { %p5330_p8 = pnand %p4464_p6, %p47_p2  ;;  %s417_s26 = scalar_lea.sflag [#allocation3], %s416_s17 }
  0x3d   : > { %s5002_s21 = sshra.s32 %s427_s22, 4  ;;  %s5009_s12 = scalar_lea.hbm %s6479_s0, 128  ;;  %s5003_s21 = int_to_ptr.hbm [resolvable:$true] %s5002_s21 }
  0x3e   : > { %s5004_s19 = scalar_lea.hbm %s5003_s21, 64  ;;  %p5006_p9 = pneg %p5330_p8 }
  0x3f   : > { %p5005_p7 = scmp.ne.s32.totalorder %s5003_s21, %s5004_s19  ;;  %p5010_p0 = scmp.lt.s32.totalorder %s5003_s21, %s6479_s0 }
  0x40   : > { %p5011_p2 = scmp.lt.s32.totalorder %s5009_s12, %s5004_s19 }
  0x41   : > { %p5007_p10 = pnand %p5006_p9, %p5005_p7 }
  0x42   : > { %p5012_p6 = por %p5011_p2, %p5010_p0 }
  0x43   : > { %p5008_p11 = pneg %p5007_p10 }
  0x45   : > { %p5013_p5 = pnand %p5012_p6, %p5008_p11 }
  0x47   : > { %5016 = shalt.err (!%p5013_p5)
}
  0x48   : > { %s6508_s17 = smov 8   ;;  %s6509_s24 = smov 128  }
  0x49   : > { %4450 = dma.hbm_to_vmem [thread:$0]  (!%p5330_p8), %s427_s22, 1024, %s429_s10, %s417_s26, %s6509_s24, %s6509_s24, %s6508_s17  }
  0x4a   : > { %440 = sbr.rel (%p5227_p3) target bundleno = 2940 (0xb7c), region = 60  ;;  %s5350_s1 = sand.u32 (!%p5227_p3), 1, %s5110_s14  }
  0x4b   : > { %s3765_s21 = sshll.u32 (!%p5227_p3), %s5350_s1, 6  ;;  %s443_s19 = scalar_lea.sflag (!%p5227_p3), [#allocation3], %s5350_s1 }
  0x4c   : > { %s5356_s18 = scalar_lea.vmem (!%p5227_p3), [#allocation2], %s3765_s21 }
  0x4f   : > { %5077 = dma.done.wait (%p5312_p12), %s443_s19, 1024  }
  0x50   : > { %5079 = vsyncadd (%p5312_p12), %s443_s19, 4294966272 }
  0x51   : > { %5081 = dma.done.wait (%p52_p1), [#allocation6], 4096  }
  0x52   : > { %5083 = vsyncadd (%p52_p1), [#allocation6], 4294963200 }
  0x53   : > { %5085 = dma.done.wait (%p52_p1), [#allocation9], 8192  }
  0x54   : > { %5087 = vsyncadd (%p52_p1), [#allocation9], 4294959104 }
  0x55   : > { %5089 = dma.done.wait (%p52_p1), [#allocation12], 3072  }
  0x56   : > { %5091 = vsyncadd (%p52_p1), [#allocation12], 4294964224 }
  0x57   : > { %5093 = dma.done.wait (%p52_p1), [#allocation15], 2048  }
  0x58   : > { %5095 = vsyncadd (%p52_p1), [#allocation15], 4294965248 }
  0x59   : > { %5097 = dma.done.wait (%p52_p1), [#allocation18], 1024  }
  0x5a   : > { %5099 = vsyncadd (%p52_p1), [#allocation18], 4294966272  ;;  %v5383_v0 = vld [vmem:[%s5356_s18 + $0x20] sm:$0xff]  ;;  %v5386_v1 = vld [vmem:[%s5356_s18 + $0x10] sm:$0xff]  ;;  %v5137_v23 = vmov 128.0   ;;  %s5138_s2 = smov 96  }
  0x5b   : > { %v5389_v2 = vld [vmem:[%s5356_s18] sm:$0xff]  ;;  %v598_v3 = vmul.f32 %v5383_v0, %v5383_v0  ;;  %v596_v4 = vmul.f32 %v5386_v1, %v5386_v1  ;;  %v5398_v6 = vld [vmem:[%s5356_s18 + $0x28] sm:$0xff]  ;;  %v5401_v7 = vld [vmem:[%s5356_s18 + $0x18] sm:$0xff]  ;;  %4530 = vrcp.f32 %v5137_v23  ;;  %s5139_s27 = smov 32   ;;  %s5140_s22 = smov 64  }
  0x5c   : > { %v594_v5 = vmul.f32 %v5389_v2, %v5389_v2  ;;  %v5404_v8 = vld [vmem:[%s5356_s18 + $0x8] sm:$0xff]  ;;  %v599_v9 = vmul.f32 %v5398_v6, %v5398_v6  ;;  %v597_v10 = vmul.f32 %v5401_v7, %v5401_v7  ;;  %v5413_v12 = vld [vmem:[%s5356_s18 + $0x38] sm:$0xff]  ;;  %v5416_v13 = vld [vmem:[%s5356_s18 + $0x30] sm:$0xff]  ;;  %s6428_s10 = scalar_lea.vmem [#allocation19], %s3765_s21  ;;  %s4350_s23 = sshll.u32 %s5222_s20, 6 }
  0x5d   : > { %610 = vadd.xlane.f32.xlu2 %v598_v3  ;;  %606 = vadd.xlane.f32.xlu1 %v596_v4  ;;  %v595_v11 = vmul.f32 %v5404_v8, %v5404_v8  ;;  %v601_v14 = vmul.f32 %v5413_v12, %v5413_v12  ;;  %v600_v15 = vmul.f32 %v5416_v13, %v5416_v13  ;;  %v3862_v16 = vld [vmem:[#allocation5 + $0xa8] sm:$0xf]  ;;  %v4276_v17 = vld [vmem:[#allocation5 + $0xb0] sm:$0xf0]  ;;  %v4275_v18 = vld [vmem:[#allocation5 + $0xac] sm:$0xf] }
  0x5e   : > { %602 = vadd.xlane.f32.xlu0 %v594_v5  ;;  %v3863_v19 = vor.u32 %v4276_v17, %v3862_v16  ;;  %v3864_v20 = vld [vmem:[#allocation5 + $0xb4] sm:$0xf0]  ;;  %v3870_v21 = vld [vmem:[#allocation5 + $0xb0] sm:$0xf]  ;;  %v4277_v22 = vld [vmem:[#allocation5 + $0xb8] sm:$0xf0] }
  0x5f   : > { %v3867_v24 = vor.u32 %v4275_v18, %v3864_v20  ;;  %v3871_v25 = vor.u32 %v4277_v22, %v3870_v21  ;;  %v3850_v26 = vld [vmem:[#allocation5 + $0x90] sm:$0xf]  ;;  %v4273_v27 = vld [vmem:[#allocation5 + $0x98] sm:$0xf0]  ;;  %v4272_v28 = vld [vmem:[#allocation5 + $0x94] sm:$0xf] }
  0x60   : > { %893 = vmatpush.bf16.msra.mxu0 %v3863_v19  ;;  %4351 = vmatpush.bf16.msra.mxu3 %v3863_v19  ;;  %v3851_v29 = vor.u32 %v4273_v27, %v3850_v26  ;;  %v3852_v30 = vld [vmem:[#allocation5 + $0x9c] sm:$0xf0]  ;;  %v3858_v31 = vld [vmem:[#allocation5 + $0x98] sm:$0xf]  ;;  %v4274_v32 = vld [vmem:[#allocation5 + $0xa0] sm:$0xf0] }
  0x61   : > { %922 = vmatpush.bf16.msra.mxu1 %v3867_v24  ;;  %951 = vmatpush.bf16.msra.mxu2 %v3871_v25  ;;  %v3855_v33 = vor.u32 %v4272_v28, %v3852_v30  ;;  %v3859_v34 = vor.u32 %v4274_v32, %v3858_v31  ;;  %v5422_v35 = vpop.eup %4530  ;;  %v3838_v36 = vld [vmem:[#allocation5 + $0x78] sm:$0xf]  ;;  %v4270_v37 = vld [vmem:[#allocation5 + $0x80] sm:$0xf0]  ;;  %v4269_v38 = vld [vmem:[#allocation5 + $0x7c] sm:$0xf] }
  0x62   : > { %v3839_v39 = vor.u32 %v4270_v37, %v3838_v36  ;;  %v3840_v40 = vld [vmem:[#allocation5 + $0x84] sm:$0xf0]  ;;  %v3846_v41 = vld [vmem:[#allocation5 + $0x80] sm:$0xf]  ;;  %v4271_v42 = vld [vmem:[#allocation5 + $0x88] sm:$0xf0]  ;;  %vm623_vm0 = vweird.f32 %v5422_v35 }
  0x63   : > { %v3843_v43 = vor.u32 %v4269_v38, %v3840_v40  ;;  %v3847_v44 = vor.u32 %v4271_v42, %v3846_v41  ;;  %v619_v45 = vmul.f32 128.0, %v5422_v35  ;;  %v3826_v46 = vld [vmem:[#allocation5 + $0x60] sm:$0xf]  ;;  %v4267_v47 = vld [vmem:[#allocation5 + $0x68] sm:$0xf0]  ;;  %s6517_s25 = sld [smem:[#allocation31_spill]] }
  0x64   : > { %894 = vmatpush.bf16.msra.mxu0 %v3851_v29  ;;  %4352 = vmatpush.bf16.msra.mxu3 %v3851_v29  ;;  %v4266_v48 = vld [vmem:[#allocation5 + $0x64] sm:$0xf]  ;;  %v3827_v49 = vor.u32 %v4267_v47, %v3826_v46  ;;  %v3828_v50 = vld [vmem:[#allocation5 + $0x6c] sm:$0xf0]  ;;  %v3834_v51 = vld [vmem:[#allocation5 + $0x68] sm:$0xf] }
  0x65   : > { %612 = vadd.xlane.f32.xlu2 %v599_v9  ;;  %608 = vadd.xlane.f32.xlu1 %v597_v10  ;;  %v4268_v52 = vld [vmem:[#allocation5 + $0x70] sm:$0xf0]  ;;  %v3831_v53 = vor.u32 %v4266_v48, %v3828_v50  ;;  %v620_v55 = vsub.f32 1.0, %v619_v45  ;;  %v3814_v56 = vld [vmem:[#allocation5 + $0x48] sm:$0xf]  ;;  %s3587_s17 = sshll.u32 %s6428_s10, 4  ;;  %s3588_s17 = int_to_ptr.vmem [resolvable:$true] %s3587_s17 }
  0x66   : > { %604 = vadd.xlane.f32.xlu0 %v595_v11  ;;  %923 = vmatpush.bf16.msra.mxu1 %v3855_v33  ;;  %v3835_v54 = vor.u32 %v4268_v52, %v3834_v51  ;;  %v4264_v57 = vld [vmem:[#allocation5 + $0x50] sm:$0xf0]  ;;  %v4263_v58 = vld [vmem:[#allocation5 + $0x4c] sm:$0xf]  ;;  %v3816_v60 = vld [vmem:[#allocation5 + $0x54] sm:$0xf0] }
  0x67   : > { %952 = vmatpush.bf16.msra.mxu2 %v3859_v34  ;;  %v3815_v59 = vor.u32 %v4264_v57, %v3814_v56  ;;  %v3822_v61 = vld [vmem:[#allocation5 + $0x50] sm:$0xf]  ;;  %v4265_v62 = vld [vmem:[#allocation5 + $0x58] sm:$0xf0]  ;;  %v3819_v63 = vor.u32 %v4263_v58, %v3816_v60  ;;  %v621_v4 = vmul.f32 %v5422_v35, %v620_v55  ;;  %v4260_v10 = vld [vmem:[#allocation5 + $0x34] sm:$0xf] }
  0x68   : > { %895 = vmatpush.bf16.msra.mxu0 %v3839_v39  ;;  %4353 = vmatpush.bf16.msra.mxu3 %v3839_v39  ;;  %v3823_v3 = vor.u32 %v4265_v62, %v3822_v61  ;;  %v3802_v5 = vld [vmem:[#allocation5 + $0x30] sm:$0xf]  ;;  %v4261_v9 = vld [vmem:[#allocation5 + $0x38] sm:$0xf0]  ;;  %v4262_v16 = vld [vmem:[#allocation5 + $0x40] sm:$0xf0] }
  0x69   : > { %v3803_v11 = vor.u32 %v4261_v9, %v3802_v5  ;;  %v622_v19 = vadd.f32 %v5422_v35, %v621_v4  ;;  %v3790_v20 = vld [vmem:[#allocation5 + $0x18] sm:$0xf]  ;;  %v4258_v21 = vld [vmem:[#allocation5 + $0x20] sm:$0xf0]  ;;  %v4257_v22 = vld [vmem:[#allocation5 + $0x1c] sm:$0xf]  ;;  %s3586_s28 = scalar_lea.hbm %s6517_s25, %s4350_s23 }
  0x6a   : > { %924 = vmatpush.bf16.msra.mxu1 %v3843_v43  ;;  %v3791_v23 = vor.u32 %v4258_v21, %v3790_v20  ;;  %v3792_v24 = vld [vmem:[#allocation5 + $0x24] sm:$0xf0]  ;;  %v3798_v25 = vld [vmem:[#allocation5 + $0x20] sm:$0xf]  ;;  %v4259_v26 = vld [vmem:[#allocation5 + $0x28] sm:$0xf0] }
  0x6b   : > { %953 = vmatpush.bf16.msra.mxu2 %v3847_v44  ;;  %v3795_v27 = vor.u32 %v4257_v22, %v3792_v24  ;;  %v3799_v28 = vor.u32 %v4259_v26, %v3798_v25  ;;  %v5429_v29 = vsel %vm623_vm0, %v5422_v35, %v622_v19  ;;  %v3778_v30 = vld [vmem:[#allocation5] sm:$0xf]  ;;  %v4255_v31 = vld [vmem:[#allocation5 + $0x8] sm:$0xf0]  ;;  %v4254_v32 = vld [vmem:[#allocation5 + $0x4] sm:$0xf] }
  0x6c   : > { %896 = vmatpush.bf16.msra.mxu0 %v3827_v49  ;;  %4354 = vmatpush.bf16.msra.mxu3 %v3827_v49  ;;  %v3779_v36 = vor.u32 %v4255_v31, %v3778_v30  ;;  %v3780_v37 = vld [vmem:[#allocation5 + $0xc] sm:$0xf0]  ;;  %v3786_v38 = vld [vmem:[#allocation5 + $0x8] sm:$0xf]  ;;  %v4256_v39 = vld [vmem:[#allocation5 + $0x10] sm:$0xf0] }
  0x6d   : > { %616 = vadd.xlane.f32.xlu1 %v601_v14  ;;  %v3804_v14 = vld [vmem:[#allocation5 + $0x3c] sm:$0xf0]  ;;  %v3783_v42 = vor.u32 %v4254_v32, %v3780_v37  ;;  %v3787_v43 = vor.u32 %v4256_v39, %v3786_v38  ;;  %v5548_v24 = vld [vmem:[#allocation11 + $0x30] sm:$0xff]  ;;  %s3589_s24 = sshll.u32 %s3586_s28, 4  ;;  %s3575_s20 = scalar_lea.sflag [#allocation4], %s5350_s1  ;;  %s3590_s24 = int_to_ptr.hbm [resolvable:$true] %s3589_s24 }
  0x6e   : > { %614 = vadd.xlane.f32.xlu0 %v600_v15  ;;  %925 = vmatpush.bf16.msra.mxu1 %v3831_v53  ;;  %v3810_v15 = vld [vmem:[#allocation5 + $0x38] sm:$0xf]  ;;  %v3807_v17 = vor.u32 %v4260_v10, %v3804_v14  ;;  %s5046_s21 = sshra.s32 %s3590_s24, 4  ;;  %s5047_s21 = int_to_ptr.hbm [resolvable:$true] %s5046_s21 }
  0x6f   : > { %954 = vmatpush.bf16.msra.mxu2 %v3835_v54  ;;  %v3811_v18 = vor.u32 %v4262_v16, %v3810_v15  ;;  %s5048_s19 = scalar_lea.hbm %s5047_s21, 64  ;;  %p5053_p12 = scmp.lt.s32.totalorder %s5047_s21, %s6517_s25 }
  0x70   : > { %897 = vmatpush.bf16.msra.mxu0 %v3815_v59  ;;  %4355 = vmatpush.bf16.msra.mxu3 %v3815_v59  ;;  %p5049_p1 = scmp.ne.s32.totalorder %s5047_s21, %s5048_s19 }
  0x72   : > { %926 = vmatpush.bf16.msra.mxu1 %v3819_v63  ;;  %p5050_p3 = pnand %p5049_p1, %p5316_p13 }
  0x73   : > { %955 = vmatpush.bf16.msra.mxu2 %v3823_v3 }
  0x74   : > { %898 = vmatpush.bf16.msra.mxu0 %v3803_v11  ;;  %4356 = vmatpush.bf16.msra.mxu3 %v3803_v11  ;;  %p5051_p5 = pneg %p5050_p3 }
  0x76   : > { %927 = vmatpush.bf16.msra.mxu1 %v3807_v17 }
  0x77   : > { %956 = vmatpush.bf16.msra.mxu2 %v3811_v18 }
  0x78   : > { %899 = vmatpush.bf16.msra.mxu0 %v3791_v23  ;;  %4357 = vmatpush.bf16.msra.mxu3 %v3791_v23 }
  0x7a   : > { %928 = vmatpush.bf16.msra.mxu1 %v3795_v27 }
  0x7b   : > { %957 = vmatpush.bf16.msra.mxu2 %v3799_v28 }
  0x7c   : > { %900 = vmatpush.bf16.msra.mxu0 %v3779_v36  ;;  %4358 = vmatpush.bf16.msra.mxu3 %v3779_v36 }
  0x7e   : > { %929 = vmatpush.bf16.msra.mxu1 %v3783_v42 }
  0x7f   : > { %958 = vmatpush.bf16.msra.mxu2 %v3787_v43 }
  0xd0   : > { %v611_v33 = vpop.xlane.xlu2 %610  ;;  %v607_v34 = vpop.xlane.xlu1 %606 }
  0xd1   : > { %v629_v40 = vmul.f32 %v5429_v29, %v611_v33  ;;  %v603_v41 = vpop.xlane.xlu0 %602  ;;  %v627_v46 = vmul.f32 %v5429_v29, %v607_v34 }
  0xd2   : > { %v625_v44 = vmul.f32 %v5429_v29, %v603_v41 }
  0xd3   : > { %v637_v35 = vadd.f32 1.1920929e-07, %v629_v40  ;;  %v5442_v57 = vadd.f32 1.1920929e-07, %v627_v46 }
  0xd4   : > { %v5433_v45 = vadd.f32 1.1920929e-07, %v625_v44 }
  0xd5   : > { %4532 = vrsqrt.f32 %v637_v35  ;;  %vm687_vm1 = vweird.f32 %v637_v35 }
  0xd6   : > { %4534 = vrsqrt.f32 %v5433_v45  ;;  %vm647_vm7 = vweird.f32 %v5433_v45 }
  0xd8   : > { %v613_v47 = vpop.xlane.xlu2 %612  ;;  %v609_v48 = vpop.xlane.xlu1 %608 }
  0xd9   : > { %v630_v49 = vmul.f32 %v5429_v29, %v613_v47  ;;  %v628_v50 = vmul.f32 %v5429_v29, %v609_v48  ;;  %v605_v51 = vpop.xlane.xlu0 %604 }
  0xda   : > { %v626_v52 = vmul.f32 %v5429_v29, %v605_v51 }
  0xdb   : > { %v4533_v53 = vpop.eup %4532  ;;  %v638_v54 = vadd.f32 1.1920929e-07, %v630_v49  ;;  %v5440_v55 = vadd.f32 1.1920929e-07, %v628_v50 }
  0xdc   : > { %v682_v56 = vmul.f32 %v4533_v53, %v637_v35  ;;  %v634_v58 = vadd.f32 1.1920929e-07, %v626_v52  ;;  %v5444_v59 = vpop.eup %4534  ;;  %vm688_vm2 = vweird.f32 %v4533_v53 }
  0xdd   : > { %4536 = vrsqrt.f32 %v638_v54  ;;  %v642_v61 = vmul.f32 %v5444_v59, %v5433_v45  ;;  %vm5460_vm3 = vmor %vm687_vm1, %vm688_vm2  ;;  %vm697_vm4 = vweird.f32 %v638_v54  ;;  %vm648_vm6 = vweird.f32 %v5444_v59 }
  0xde   : > { %v683_v60 = vmul.f32 %v4533_v53, %v682_v56  ;;  %4538 = vrsqrt.f32 %v5440_v55  ;;  %vm649_vm10 = vmor %vm647_vm7, %vm648_vm6  ;;  %vm657_vm11 = vweird.f32 %v634_v58  ;;  %vm677_vm2 = vweird.f32 %v5440_v55 }
  0xdf   : > { %4540 = vrsqrt.f32 %v634_v58  ;;  %v643_v63 = vmul.f32 %v5444_v59, %v642_v61 }
  0xe0   : > { %v684_v62 = vmul.f32 0.5, %v683_v60  ;;  %4542 = vrsqrt.f32 %v5442_v57  ;;  %v617_v3 = vpop.xlane.xlu1 %616 }
  0xe1   : > { %v632_v4 = vmul.f32 %v5429_v29, %v617_v3  ;;  %v615_v5 = vpop.xlane.xlu0 %614  ;;  %v644_v10 = vmul.f32 0.5, %v643_v63 }
  0xe2   : > { %v685_v9 = vsub.f32 1.5, %v684_v62  ;;  %v631_v15 = vmul.f32 %v5429_v29, %v615_v5 }
  0xe3   : > { %v4537_v11 = vpop.eup %4536  ;;  %v5452_v14 = vadd.f32 1.1920929e-07, %v632_v4  ;;  %v645_v21 = vsub.f32 1.5, %v644_v10 }
  0xe4   : > { %v5455_v16 = vpop.eup %4538  ;;  %v692_v17 = vmul.f32 %v4537_v11, %v638_v54  ;;  %v686_v20 = vmul.f32 %v4533_v53, %v685_v9  ;;  %v639_v25 = vadd.f32 1.1920929e-07, %v631_v15  ;;  %vm698_vm5 = vweird.f32 %v4537_v11 }
  0xe5   : > { %v4541_v18 = vpop.eup %4540  ;;  %4544 = vrsqrt.f32 %v5452_v14  ;;  %v672_v27 = vmul.f32 %v5455_v16, %v5440_v55  ;;  %v646_v31 = vmul.f32 %v5444_v59, %v645_v21  ;;  %vm5474_vm8 = vmor %vm697_vm4, %vm698_vm5  ;;  %vm717_vm13 = vweird.f32 %v5452_v14  ;;  %v5513_v21 = vld [vmem:[#allocation11 + $0x78] sm:$0xff] }
  0xe6   : > { %v5458_v19 = vpop.eup %4542  ;;  %v693_v22 = vmul.f32 %v4537_v11, %v692_v17  ;;  %v652_v23 = vmul.f32 %v4541_v18, %v634_v58  ;;  %4546 = vrsqrt.f32 %v639_v25  ;;  %v690_v34 = vsel %vm5460_vm3, %v4533_v53, %v686_v20  ;;  %988 = vmatpush.msrb.mxu3 %v5513_v21  ;;  %4359 = vmatpush.msrb.mxu1 %v5513_v21 }
  0xe7   : > { %v662_v30 = vmul.f32 %v5458_v19, %v5442_v57  ;;  %vm658_vm9 = vweird.f32 %v4541_v18  ;;  %v673_v39 = vmul.f32 %v5455_v16, %v672_v27  ;;  %v725_v43 = vmul.f32 %v690_v34, %v5383_v0  ;;  %v5560_v27 = vld [vmem:[#allocation11 + $0x18] sm:$0xff] }
  0xe8   : > { %v694_v26 = vmul.f32 0.5, %v693_v22  ;;  %v653_v28 = vmul.f32 %v4541_v18, %v652_v23  ;;  %v650_v45 = vsel %vm649_vm10, %v5444_v59, %v646_v31  ;;  %vm659_vm12 = vmor %vm657_vm11, %vm658_vm9  ;;  %vm707_vm15 = vweird.f32 %v639_v25  ;;  %v5515_v22 = vld [vmem:[#allocation11 + $0x70] sm:$0xff]  ;;  %v5543_v23 = vld [vmem:[#allocation11 + $0x38] sm:$0xff] }
  0xe9   : > { %v663_v42 = vmul.f32 %v5458_v19, %v662_v30  ;;  %v674_v49 = vmul.f32 0.5, %v673_v39  ;;  %v721_v54 = vmul.f32 %v650_v45, %v5389_v2  ;;  %vm678_vm3 = vweird.f32 %v5455_v16  ;;  %989 = vmatpush.msrb.mxu3 %v5515_v22  ;;  %4360 = vmatpush.msrb.mxu1 %v5515_v22  ;;  %v5571_v30 = vld [vmem:[#allocation11 + $0x8] sm:$0xff]  ;;  %v5574_v31 = vld [vmem:[#allocation11] sm:$0xff] }
  0xea   : > { %v695_v32 = vsub.f32 1.5, %v694_v26  ;;  %v654_v33 = vmul.f32 0.5, %v653_v28  ;;  %vm667_vm4 = vweird.f32 %v5442_v57  ;;  %vm668_vm6 = vweird.f32 %v5458_v19  ;;  %vm679_vm7 = vmor %vm677_vm2, %vm678_vm3  ;;  %v5556_v26 = vld [vmem:[#allocation11 + $0x20] sm:$0xff]  ;;  %v5564_v28 = vld [vmem:[#allocation11 + $0x10] sm:$0xff] }
  0xeb   : > { %v4545_v36 = vpop.eup %4544  ;;  %v664_v53 = vmul.f32 0.5, %v663_v42 }
  0xec   : > { %v696_v38 = vmul.f32 %v4537_v11, %v695_v32  ;;  %v655_v40 = vsub.f32 1.5, %v654_v33  ;;  %v712_v41 = vmul.f32 %v4545_v36, %v5452_v14  ;;  %v4547_v47 = vpop.eup %4546  ;;  %vm718_vm14 = vweird.f32 %v4545_v36 }
  0xed   : > { %v702_v51 = vmul.f32 %v4547_v47, %v639_v25  ;;  %vm708_vm0 = vweird.f32 %v4547_v47  ;;  %vm5494_vm1 = vmor %vm717_vm13, %vm718_vm14  ;;  %v665_v2 = vsub.f32 1.5, %v664_v53  ;;  %v5552_v25 = vld [vmem:[#allocation11 + $0x28] sm:$0xff] }
  0xee   : > { %v656_v44 = vmul.f32 %v4541_v18, %v655_v40  ;;  %v713_v35 = vmul.f32 %v4545_v36, %v712_v41  ;;  %v700_v46 = vsel %vm5474_vm8, %v4537_v11, %v696_v38  ;;  %vm709_vm5 = vmor %vm707_vm15, %vm708_vm0 }
  0xef   : > { %v726_v48 = vmul.f32 %v700_v46, %v5398_v6  ;;  %v703_v59 = vmul.f32 %v4547_v47, %v702_v51  ;;  %v675_v6 = vsub.f32 1.5, %v674_v49  ;;  %v666_v9 = vmul.f32 %v5458_v19, %v665_v2  ;;  %vm669_vm8 = vmor %vm667_vm4, %vm668_vm6  ;;  %v4253_v51 = vld [vmem:[#allocation13 + $0x38] sm:$0xff]  ;;  %v4248_v2 = vld [vmem:[#allocation13 + $0x10] sm:$0xff] }
  0xf0   : > { %v714_v50 = vmul.f32 0.5, %v713_v35  ;;  %v660_v52 = vsel %vm659_vm12, %v4541_v18, %v656_v44  ;;  %1169 = vmatpush.bf16.msrb.mxu0 %v4253_v51  ;;  %1371 = vmatpush.bf16.msrb.mxu2 %v4253_v51 }
  0xf1   : > { %v722_v0 = vmul.f32 %v660_v52, %v5404_v8  ;;  %v5490_v56 = vpack.c.bf16 %v726_v48, %v725_v43  ;;  %v704_v62 = vmul.f32 0.5, %v703_v59  ;;  %v676_v3 = vmul.f32 %v5455_v16, %v675_v6  ;;  %v4252_v52 = vld [vmem:[#allocation13 + $0x30] sm:$0xff]  ;;  %v4250_v59 = vld [vmem:[#allocation13 + $0x20] sm:$0xff] }
  0xf2   : > { %v715_v58 = vsub.f32 1.5, %v714_v50  ;;  %v670_v14 = vsel %vm669_vm8, %v5458_v19, %v666_v9  ;;  %v5539_v19 = vld [vmem:[#allocation11 + $0x40] sm:$0xff] }
  0xf3   : > { %v729_v60 = vpack.c.bf16 %v722_v0, %v721_v54  ;;  %911 = vmatmul.bf16.vlgmr.msra.gmra.mxu3 %v5490_v56  ;;  %v705_v8 = vsub.f32 1.5, %v704_v62  ;;  %v680_v57 = vsel %vm679_vm7, %v5455_v16, %v676_v3  ;;  %v723_v18 = vmul.f32 %v670_v14, %v5386_v1  ;;  %v5523_v1 = vld [vmem:[#allocation11 + $0x60] sm:$0xff]  ;;  %v5535_v16 = vld [vmem:[#allocation11 + $0x48] sm:$0xff]  ;;  %v4249_v62 = vld [vmem:[#allocation13 + $0x18] sm:$0xff] }
  0xf4   : > { %v716_v61 = vmul.f32 %v4545_v36, %v715_v58  ;;  %v724_v15 = vmul.f32 %v680_v57, %v5401_v7  ;;  %v5527_v7 = vld [vmem:[#allocation11 + $0x58] sm:$0xff]  ;;  %1170 = vmatpush.bf16.msrb.mxu0 %v4252_v52  ;;  %1372 = vmatpush.bf16.msrb.mxu2 %v4252_v52 }
  0xf5   : > { %901 = vmatmul.bf16.vlgmr.msra.gmra.mxu0 %v729_v60  ;;  %930 = vmatmul.bf16.vlgmr.msra.gmra.mxu1 %v729_v60  ;;  %v706_v4 = vmul.f32 %v4547_v47, %v705_v8 }
  0xf6   : > { %959 = vmatmul.bf16.vlgmr.msra.gmra.mxu2 %v729_v60  ;;  %v720_v5 = vsel %vm5494_vm1, %v4545_v36, %v716_v61  ;;  %v730_v20 = vpack.c.bf16 %v724_v15, %v723_v18 }
  0xf7   : > { %v710_v55 = vsel %vm709_vm5, %v4547_v47, %v706_v4  ;;  %v728_v11 = vmul.f32 %v720_v5, %v5413_v12  ;;  %v5519_v12 = vld [vmem:[#allocation11 + $0x68] sm:$0xff] }
  0xf8   : > { %v727_v10 = vmul.f32 %v710_v55, %v5416_v13  ;;  %990 = vmatpush.msrb.mxu3 %v5519_v12  ;;  %4361 = vmatpush.msrb.mxu1 %v5519_v12  ;;  %v5531_v13 = vld [vmem:[#allocation11 + $0x50] sm:$0xff]  ;;  %v4247_v5 = vld [vmem:[#allocation13 + $0x8] sm:$0xff] }
  0xfa   : > { %v732_v17 = vpack.c.bf16 %v728_v11, %v727_v10  ;;  %991 = vmatpush.msrb.mxu3 %v5523_v1  ;;  %4362 = vmatpush.msrb.mxu1 %v5523_v1  ;;  %v4246_v10 = vld [vmem:[#allocation13] sm:$0xff] }
  0xfc   : > { %992 = vmatpush.msrb.mxu3 %v5527_v7  ;;  %4363 = vmatpush.msrb.mxu1 %v5527_v7 }
  0xfe   : > { %993 = vmatpush.msrb.mxu3 %v5531_v13  ;;  %4364 = vmatpush.msrb.mxu1 %v5531_v13 }
 0x100   : > { %994 = vmatpush.msrb.mxu3 %v5535_v16  ;;  %4365 = vmatpush.msrb.mxu1 %v5535_v16 }
 0x102   : > { %995 = vmatpush.msrb.mxu3 %v5539_v19  ;;  %4366 = vmatpush.msrb.mxu1 %v5539_v19 }
 0x103   : > { %916 = vmatmul.bf16.gmra.mxu3 %v732_v17 }
 0x104   : > { %996 = vmatpush.msrb.mxu3 %v5543_v23  ;;  %4367 = vmatpush.msrb.mxu1 %v5543_v23 }
 0x105   : > { %906 = vmatmul.bf16.gmra.mxu0 %v730_v20  ;;  %935 = vmatmul.bf16.gmra.mxu1 %v730_v20 }
 0x106   : > { %964 = vmatmul.bf16.gmra.mxu2 %v730_v20  ;;  %997 = vmatpush.msrb.mxu3 %v5548_v24 }
 0x107   : > { %4368 = vmatpush.msrb.mxu1 %v5548_v24 }
 0x108   : > { %998 = vmatpush.msrb.mxu3 %v5552_v25 }
 0x109   : > { %4369 = vmatpush.msrb.mxu1 %v5552_v25 }
 0x10a   : > { %999 = vmatpush.msrb.mxu3 %v5556_v26 }
 0x10b   : > { %4370 = vmatpush.msrb.mxu1 %v5556_v26 }
 0x10c   : > { %1000 = vmatpush.msrb.mxu3 %v5560_v27 }
 0x10d   : > { %4371 = vmatpush.msrb.mxu1 %v5560_v27 }
 0x10e   : > { %1001 = vmatpush.msrb.mxu3 %v5564_v28 }
 0x10f   : > { %4372 = vmatpush.msrb.mxu1 %v5564_v28 }
 0x110   : > { %1002 = vmatpush.msrb.mxu3 %v5571_v30 }
 0x111   : > { %4373 = vmatpush.msrb.mxu1 %v5571_v30 }
 0x112   : > { %1003 = vmatpush.msrb.mxu3 %v5574_v31 }
 0x113   : > { %4374 = vmatpush.msrb.mxu1 %v5574_v31 }
 0x115   : > { %940 = vmatmul.bf16.gmra.mxu1 %v5490_v56 }
 0x116   : > { %969 = vmatmul.bf16.gmra.mxu2 %v5490_v56  ;;  %v4251_v56 = vld [vmem:[#allocation13 + $0x28] sm:$0xff] }
 0x117   : > { %1171 = vmatpush.bf16.msrb.mxu0 %v4251_v56  ;;  %1373 = vmatpush.bf16.msrb.mxu2 %v4251_v56 }
 0x11b   : > { %1172 = vmatpush.bf16.msrb.mxu0 %v4250_v59  ;;  %1374 = vmatpush.bf16.msrb.mxu2 %v4250_v59 }
 0x11f   : > { %1173 = vmatpush.bf16.msrb.mxu0 %v4249_v62  ;;  %1375 = vmatpush.bf16.msrb.mxu2 %v4249_v62 }
 0x123   : > { %1174 = vmatpush.bf16.msrb.mxu0 %v4248_v2  ;;  %1376 = vmatpush.bf16.msrb.mxu2 %v4248_v2 }
 0x125   : > { %945 = vmatmul.bf16.gmra.mxu1 %v732_v17 }
 0x126   : > { %974 = vmatmul.bf16.gmra.mxu2 %v732_v17 }
 0x127   : > { %1175 = vmatpush.bf16.msrb.mxu0 %v4247_v5  ;;  %1377 = vmatpush.bf16.msrb.mxu2 %v4247_v5 }
 0x12b   : > { %1176 = vmatpush.bf16.msrb.mxu0 %v4246_v10  ;;  %1378 = vmatpush.bf16.msrb.mxu2 %v4246_v10 }
 0x12f   : > { %1238 = vmatpush.msra.mxu0 %v5513_v21 }
 0x131   : > { %1239 = vmatpush.msra.mxu0 %v5515_v22 }
 0x133   : > { %1240 = vmatpush.msra.mxu0 %v5519_v12 }
 0x135   : > { %1241 = vmatpush.msra.mxu0 %v5523_v1 }
 0x137   : > { %1242 = vmatpush.msra.mxu0 %v5527_v7 }
 0x139   : > { %1243 = vmatpush.msra.mxu0 %v5531_v13 }
 0x13b   : > { %1244 = vmatpush.msra.mxu0 %v5535_v16 }
 0x13d   : > { %1245 = vmatpush.msra.mxu0 %v5539_v19 }
 0x13f   : > { %1246 = vmatpush.msra.mxu0 %v5543_v23 }
 0x141   : > { %1247 = vmatpush.msra.mxu0 %v5548_v24 }
 0x143   : > { %1248 = vmatpush.msra.mxu0 %v5552_v25 }
 0x145   : > { %1249 = vmatpush.msra.mxu0 %v5556_v26 }
 0x147   : > { %1250 = vmatpush.msra.mxu0 %v5560_v27 }
 0x149   : > { %1251 = vmatpush.msra.mxu0 %v5564_v28 }
 0x14b   : > { %1252 = vmatpush.msra.mxu0 %v5571_v30 }
 0x14d   : > { %1253 = vmatpush.msra.mxu0 %v5574_v31 }
 0x172   : > { %v5579_v32 = vpop.f32.mrf.mxu0  ;;  %v5581_v33 = vpop.f32.mrf.mxu1 }
 0x173   : > { %v980_v34 = vmul.f32 %v5579_v32, %v5579_v32 }
 0x175   : > { %1004 = vmatmul.f32.vlgmr.msrb.gmra.mxu3 %v980_v34 }
 0x176   : > { %v5607_v46 = vpop.f32.mrf.mxu3 }
 0x177   : > { %v984_v48 = vmul.f32 %v5607_v46, %v5607_v46 }
 0x179   : > { %v5639_v9 = vpop.f32.mrf.mxu2 }
 0x17a   : > { %v5585_v36 = vpop.f32.mrf.mxu0  ;;  %v5587_v37 = vpop.f32.mrf.mxu1 }
 0x17b   : > { %v981_v38 = vmul.f32 %v5585_v36, %v5585_v36 }
 0x17d   : > { %1007 = vmatmul.f32.gmra.mxu3 %v981_v38 }
 0x17e   : > { %v5615_v50 = vpop.f32.mrf.mxu3 }
 0x17f   : > { %v985_v54 = vmul.f32 %v5615_v50, %v5615_v50 }
 0x181   : > { %v5641_v55 = vpop.f32.mrf.mxu2 }
 0x182   : > { %v5591_v39 = vpop.f32.mrf.mxu0  ;;  %v5593_v40 = vpop.f32.mrf.mxu1 }
 0x183   : > { %v1232_v41 = vmul.f32 %v5593_v40, %v5593_v40  ;;  %v982_v42 = vmul.f32 %v5591_v39, %v5591_v39 }
 0x185   : > { %1010 = vmatmul.f32.gmra.mxu3 %v982_v42  ;;  %1260 = vmatmul.f32.vlgmr.msrb.gmra.mxu1 %v1232_v41 }
 0x186   : > { %v5623_v58 = vpop.f32.mrf.mxu3 }
 0x187   : > { %v986_v6 = vmul.f32 %v5623_v58, %v5623_v58 }
 0x189   : > { %v5643_v11 = vpop.f32.mrf.mxu2 }
 0x18a   : > { %v5599_v43 = vpop.f32.mrf.mxu0  ;;  %v5601_v44 = vpop.f32.mrf.mxu1 }
 0x18b   : > { %v983_v35 = vmul.f32 %v5599_v43, %v5599_v43  ;;  %v1233_v45 = vmul.f32 %v5601_v44, %v5601_v44 }
 0x18d   : > { %1013 = vmatmul.f32.gmra.mxu3 %v983_v35  ;;  %1263 = vmatmul.f32.gmra.mxu1 %v1233_v45 }
 0x18e   : > { %v5631_v63 = vpop.f32.mrf.mxu3 }
 0x18f   : > { %v987_v3 = vmul.f32 %v5631_v63, %v5631_v63 }
 0x191   : > { %v5650_v57 = vpop.f32.mrf.mxu2 }
 0x192   : > { %v5609_v47 = vpop.f32.mrf.mxu1 }
 0x193   : > { %v1234_v49 = vmul.f32 %v5609_v47, %v5609_v47 }
 0x195   : > { %1016 = vmatmul.f32.gmra.mxu3 %v984_v48  ;;  %1266 = vmatmul.f32.gmra.mxu1 %v1234_v49 }
 0x199   : > { %v5657_v14 = vpop.f32.mrf.mxu2 }
 0x19a   : > { %v5617_v53 = vpop.f32.mrf.mxu1 }
 0x19b   : > { %v1235_v0 = vmul.f32 %v5617_v53, %v5617_v53 }
 0x19d   : > { %1019 = vmatmul.f32.gmra.mxu3 %v985_v54  ;;  %1269 = vmatmul.f32.gmra.mxu1 %v1235_v0 }
 0x1a1   : > { %v972_v17 = vpop.f32.mrf.mxu2 }
 0x1a2   : > { %v5625_v60 = vpop.f32.mrf.mxu1  ;;  %v1437_v51 = vpack.c.bf16 %v972_v17, %v972_v17 }
 0x1a3   : > { %v1236_v61 = vmul.f32 %v5625_v60, %v5625_v60 }
 0x1a5   : > { %1022 = vmatmul.f32.gmra.mxu3 %v986_v6  ;;  %1272 = vmatmul.f32.gmra.mxu1 %v1236_v61  ;;  %v1436_v6 = vpack.c.bf16 %v5657_v14, %v5657_v14 }
 0x1a7   : > { %v1655_v17 = vunpack.c.l.b16 %v1436_v6 }
 0x1a9   : > { %v975_v1 = vpop.f32.mrf.mxu2 }
 0x1aa   : > { %v5633_v8 = vpop.f32.mrf.mxu1  ;;  %v1438_v42 = vpack.c.bf16 %v975_v1, %v975_v1 }
 0x1ab   : > { %v1237_v4 = vmul.f32 %v5633_v8, %v5633_v8 }
 0x1ac   : > { %v1657_v61 = vunpack.c.l.b16 %v1438_v42 }
 0x1ad   : > { %1025 = vmatmul.f32.gmra.mxu3 %v987_v3  ;;  %1275 = vmatmul.f32.gmra.mxu1 %v1237_v4  ;;  %v1435_v3 = vpack.c.bf16 %v5650_v57, %v5650_v57  ;;  %v1656_v4 = vunpack.c.l.b16 %v1437_v51 }
 0x1af   : > { %v1654_v57 = vunpack.c.l.b16 %v1435_v3 }
 0x1b1   : > { %v977_v27 = vpop.f32.mrf.mxu2 }
 0x1b2   : > { %v1439_v31 = vpack.c.bf16 %v977_v27, %v977_v27 }
 0x1b4   : > { %v1658_v52 = vunpack.c.l.b16 %v1439_v31 }
 0x1b6   : > { %v5685_v5 = vpack.c.b16 %v1658_v52, %v1657_v61 }
 0x1f8   : > { %v1005_v15 = vpop.f32.mrf.mxu3 }
 0x1f9   : > { %v1006_v18 = vadd.f32 1.1920929e-07, %v1005_v15 }
 0x1fb   : > { %4548 = vrsqrt.f32 %v1006_v18  ;;  %vm1035_vm10 = vweird.f32 %v1006_v18 }
 0x200   : > { %v1008_v20 = vpop.f32.mrf.mxu3 }
 0x201   : > { %v4549_v21 = vpop.eup %4548  ;;  %v1009_v22 = vadd.f32 1.1920929e-07, %v1008_v20  ;;  %v1433_v20 = vpack.c.bf16 %v5641_v55, %v5641_v55 }
 0x202   : > { %v1030_v12 = vmul.f32 %v4549_v21, %v1006_v18  ;;  %vm1036_vm9 = vweird.f32 %v4549_v21 }
 0x203   : > { %4550 = vrsqrt.f32 %v1009_v22  ;;  %vm1037_vm12 = vmor %vm1035_vm10, %vm1036_vm9  ;;  %vm1045_vm13 = vweird.f32 %v1009_v22 }
 0x204   : > { %v1031_v7 = vmul.f32 %v4549_v21, %v1030_v12  ;;  %v1432_v12 = vpack.c.bf16 %v5639_v9, %v5639_v9 }
 0x206   : > { %v1032_v13 = vmul.f32 0.5, %v1031_v7 }
 0x208   : > { %v1011_v16 = vpop.f32.mrf.mxu3  ;;  %v1033_v24 = vsub.f32 1.5, %v1032_v13  ;;  %v1652_v13 = vunpack.c.l.b16 %v1433_v20 }
 0x209   : > { %v4551_v19 = vpop.eup %4550  ;;  %v5665_v23 = vadd.f32 1.1920929e-07, %v1011_v16 }
 0x20a   : > { %v1040_v25 = vmul.f32 %v4551_v19, %v1009_v22  ;;  %v1034_v28 = vmul.f32 %v4549_v21, %v1033_v24  ;;  %vm1046_vm11 = vweird.f32 %v4551_v19 }
 0x20b   : > { %4552 = vrsqrt.f32 %v5665_v23  ;;  %vm1047_vm14 = vmor %vm1045_vm13, %vm1046_vm11  ;;  %vm1055_vm0 = vweird.f32 %v5665_v23 }
 0x20c   : > { %v1041_v26 = vmul.f32 %v4551_v19, %v1040_v25  ;;  %v1038_v49 = vsel %vm1037_vm12, %v4549_v21, %v1034_v28  ;;  %v5692_v21 = vpack.c.b16 %v1656_v4, %v1655_v17  ;;  %v1651_v25 = vunpack.c.l.b16 %v1432_v12 }
 0x20d   : > { %v5674_v56 = vmul.f32 %v1038_v49, %v5579_v32 }
 0x20e   : > { %v1042_v30 = vmul.f32 0.5, %v1041_v26 }
 0x210   : > { %v1043_v34 = vsub.f32 1.5, %v1042_v30  ;;  %v1014_v38 = vpop.f32.mrf.mxu3  ;;  %v5704_v30 = vpack.c.b16 %v1652_v13, %v1651_v25 }
 0x211   : > { %v5668_v41 = vpop.eup %4552  ;;  %v1015_v35 = vadd.f32 1.1920929e-07, %v1014_v38 }
 0x212   : > { %v1044_v45 = vmul.f32 %v4551_v19, %v1043_v34  ;;  %v1050_v48 = vmul.f32 %v5668_v41, %v5665_v23  ;;  %vm1056_vm15 = vweird.f32 %v5668_v41 }
 0x213   : > { %4554 = vrsqrt.f32 %v1015_v35  ;;  %vm1057_vm2 = vmor %vm1055_vm0, %vm1056_vm15  ;;  %vm1065_vm3 = vweird.f32 %v1015_v35 }
 0x214   : > { %v1051_v54 = vmul.f32 %v5668_v41, %v1050_v48  ;;  %v1048_v0 = vsel %vm1047_vm14, %v4551_v19, %v1044_v45 }
 0x215   : > { %v5677_v59 = vmul.f32 %v1048_v0, %v5585_v36  ;;  %v1434_v36 = vpack.c.bf16 %v5643_v11, %v5643_v11 }
 0x216   : > { %v1052_v62 = vmul.f32 0.5, %v1051_v54 }
 0x217   : > { %v1117_v2 = vpack.c.bf16 %v5677_v59, %v5674_v56  ;;  %v1653_v1 = vunpack.c.l.b16 %v1434_v36 }
 0x218   : > { %v1017_v10 = vpop.f32.mrf.mxu3  ;;  %v1053_v14 = vsub.f32 1.5, %v1052_v62 }
 0x219   : > { %v4555_v32 = vpop.eup %4554  ;;  %v1018_v15 = vadd.f32 1.1920929e-07, %v1017_v10  ;;  %1177 = vmatmul.bf16.vlgmr.msrb.gmra.mxu0 %v1117_v2  ;;  %v5699_v16 = vpack.c.b16 %v1654_v57, %v1653_v1 }
 0x21a   : > { %v1060_v18 = vmul.f32 %v4555_v32, %v1015_v35  ;;  %1683 = vmatpush.bf16.msrb.mxu0 %v5685_v5  ;;  %v1054_v7 = vmul.f32 %v5668_v41, %v1053_v14  ;;  %vm1066_vm1 = vweird.f32 %v4555_v32 }
 0x21b   : > { %4556 = vrsqrt.f32 %v1018_v15  ;;  %vm1067_vm4 = vmor %vm1065_vm3, %vm1066_vm1  ;;  %vm1075_vm6 = vweird.f32 %v1018_v15 }
 0x21c   : > { %v1061_v22 = vmul.f32 %v4555_v32, %v1060_v18  ;;  %v1058_v27 = vsel %vm1057_vm2, %v5668_v41, %v1054_v7 }
 0x21d   : > { %v5707_v34 = vmul.f32 %v1058_v27, %v5591_v39  ;;  %v5739_v27 = vld [vmem:[#allocation14] sm:$0xff] }
 0x21e   : > { %v1062_v11 = vmul.f32 0.5, %v1061_v22  ;;  %1684 = vmatpush.bf16.msrb.mxu0 %v5692_v21 }
 0x220   : > { %v1063_v55 = vsub.f32 1.5, %v1062_v11  ;;  %v1020_v19 = vpop.f32.mrf.mxu3  ;;  %v5724_v11 = vld [vmem:[#allocation14 + $0x30] sm:$0xff] }
 0x221   : > { %v4557_v24 = vpop.eup %4556  ;;  %v1021_v9 = vadd.f32 1.1920929e-07, %v1020_v19 }
 0x222   : > { %v1070_v26 = vmul.f32 %v4557_v24, %v1018_v15  ;;  %1685 = vmatpush.bf16.msrb.mxu0 %v5699_v16  ;;  %v1064_v28 = vmul.f32 %v4555_v32, %v1063_v55  ;;  %vm1076_vm5 = vweird.f32 %v4557_v24 }
 0x223   : > { %4558 = vrsqrt.f32 %v1021_v9  ;;  %vm1077_vm8 = vmor %vm1075_vm6, %vm1076_vm5  ;;  %vm1085_vm9 = vweird.f32 %v1021_v9 }
 0x224   : > { %v1071_v31 = vmul.f32 %v4557_v24, %v1070_v26  ;;  %v1068_v23 = vsel %vm1067_vm4, %v4555_v32, %v1064_v28  ;;  %v1231_v26 = vmul.f32 %v5587_v37, %v5587_v37  ;;  %v5741_v28 = vld [vmem:[#allocation16] sm:$0xff] }
 0x225   : > { %v5710_v38 = vmul.f32 %v1068_v23, %v5599_v43 }
 0x226   : > { %v1072_v42 = vmul.f32 0.5, %v1071_v31  ;;  %1686 = vmatpush.bf16.msrb.mxu0 %v5704_v30  ;;  %v1198_v31 = vmul.f32 %v5674_v56, %v5739_v27 }
 0x227   : > { %v1118_v35 = vpack.c.bf16 %v5710_v38, %v5707_v34 }
 0x228   : > { %v1023_v41 = vpop.f32.mrf.mxu3  ;;  %v1073_v49 = vsub.f32 1.5, %v1072_v42 }
 0x229   : > { %v4559_v45 = vpop.eup %4558  ;;  %v1024_v48 = vadd.f32 1.1920929e-07, %v1023_v41  ;;  %1182 = vmatmul.bf16.gmra.mxu0 %v1118_v35  ;;  %v5746_v35 = vld [vmem:[#allocation14 + $0x8] sm:$0xff] }
 0x22a   : > { %v1080_v51 = vmul.f32 %v4559_v45, %v1021_v9  ;;  %v1074_v54 = vmul.f32 %v4557_v24, %v1073_v49  ;;  %vm1086_vm7 = vweird.f32 %v4559_v45  ;;  %v5748_v41 = vld [vmem:[#allocation16 + $0x8] sm:$0xff] }
 0x22b   : > { %4560 = vrsqrt.f32 %v1024_v48  ;;  %vm1087_vm10 = vmor %vm1085_vm9, %vm1086_vm7  ;;  %vm1095_vm12 = vweird.f32 %v1024_v48 }
 0x22c   : > { %v1081_v52 = vmul.f32 %v4559_v45, %v1080_v51  ;;  %v1078_v2 = vsel %vm1077_vm8, %v4557_v24, %v1074_v54  ;;  %v5730_v24 = vld [vmem:[#allocation14 + $0x38] sm:$0xff]  ;;  %v5753_v54 = vld [vmem:[#allocation16 + $0x10] sm:$0xff] }
 0x22d   : > { %v5716_v32 = vmul.f32 %v1078_v2, %v5607_v46 }
 0x22e   : > { %v1082_v39 = vmul.f32 0.5, %v1081_v52 }
 0x230   : > { %v1083_v43 = vsub.f32 1.5, %v1082_v39  ;;  %v1026_v0 = vpop.f32.mrf.mxu3 }
 0x231   : > { %v4561_v6 = vpop.eup %4560  ;;  %v1027_v61 = vadd.f32 1.1920929e-07, %v1026_v0  ;;  %v5755_v0 = vld [vmem:[#allocation14 + $0x10] sm:$0xff] }
 0x232   : > { %v1090_v62 = vmul.f32 %v4561_v6, %v1024_v48  ;;  %v1084_v3 = vmul.f32 %v4559_v45, %v1083_v43  ;;  %vm1096_vm11 = vweird.f32 %v4561_v6  ;;  %v1199_v48 = vmul.f32 %v5677_v59, %v5746_v35 }
 0x233   : > { %4562 = vrsqrt.f32 %v1027_v61  ;;  %vm1097_vm13 = vmor %vm1095_vm12, %vm1096_vm11  ;;  %vm1105_vm15 = vweird.f32 %v1027_v61 }
 0x234   : > { %v1091_v4 = vmul.f32 %v4561_v6, %v1090_v62  ;;  %v1088_v10 = vsel %vm1087_vm10, %v4559_v45, %v1084_v3  ;;  %v1200_v62 = vmul.f32 %v5707_v34, %v5755_v0  ;;  %v5762_v3 = vld [vmem:[#allocation16 + $0x18] sm:$0xff] }
 0x235   : > { %v5719_v36 = vmul.f32 %v1088_v10, %v5615_v50 }
 0x236   : > { %v1092_v15 = vmul.f32 0.5, %v1091_v4  ;;  %v5764_v4 = vld [vmem:[#allocation14 + $0x18] sm:$0xff] }
 0x237   : > { %v1119_v17 = vpack.c.bf16 %v5719_v36, %v5716_v32 }
 0x238   : > { %v1093_v14 = vsub.f32 1.5, %v1092_v15  ;;  %v1201_v15 = vmul.f32 %v5710_v38, %v5764_v4 }
 0x239   : > { %v4563_v18 = vpop.eup %4562  ;;  %1187 = vmatmul.bf16.gmra.mxu0 %v1119_v17 }
 0x23a   : > { %v1100_v20 = vmul.f32 %v4563_v18, %v1027_v61  ;;  %v1094_v57 = vmul.f32 %v4561_v6, %v1093_v14  ;;  %vm1106_vm14 = vweird.f32 %v4563_v18 }
 0x23b   : > { %vm1107_vm0 = vmor %vm1105_vm15, %vm1106_vm14 }
 0x23c   : > { %v1101_v22 = vmul.f32 %v4563_v18, %v1100_v20  ;;  %v1098_v12 = vsel %vm1097_vm13, %v4561_v6, %v1094_v57  ;;  %v5769_v57 = vld [vmem:[#allocation16 + $0x20] sm:$0xff] }
 0x23d   : > { %v1115_v46 = vmul.f32 %v1098_v12, %v5623_v58  ;;  %v1230_v58 = vmul.f32 %v5581_v33, %v5581_v33  ;;  %v5771_v12 = vld [vmem:[#allocation14 + $0x20] sm:$0xff] }
 0x23e   : > { %v1102_v1 = vmul.f32 0.5, %v1101_v22 }
 0x23f   : > { %v5727_v50 = vmul.f32 %v1115_v46, %v5724_v11 }
 0x240   : > { %v1103_v7 = vsub.f32 1.5, %v1102_v1 }
 0x242   : > { %v1104_v13 = vmul.f32 %v4563_v18, %v1103_v7  ;;  %v1202_v7 = vmul.f32 %v5716_v32, %v5771_v12 }
 0x244   : > { %v1108_v55 = vsel %vm1107_vm0, %v4563_v18, %v1104_v13 }
 0x245   : > { %v1116_v19 = vmul.f32 %v1108_v55, %v5631_v63  ;;  %v5778_v55 = vld [vmem:[#allocation16 + $0x28] sm:$0xff] }
 0x247   : > { %v1120_v25 = vpack.c.bf16 %v1116_v19, %v1115_v46  ;;  %v5733_v9 = vmul.f32 %v1116_v19, %v5730_v24  ;;  %v5780_v19 = vld [vmem:[#allocation14 + $0x28] sm:$0xff] }
 0x249   : > { %1192 = vmatmul.bf16.gmra.mxu0 %v1120_v25 }
 0x259   : > { %1254 = vmatmul.f32.vlgmr.msra.gmra.mxu0 %v1230_v58  ;;  %v1203_v58 = vmul.f32 %v5719_v36, %v5780_v19 }
 0x261   : > { %1257 = vmatmul.f32.gmra.mxu0 %v1231_v26 }
 0x296   : > { %v1178_v63 = vpop.f32.mrf.mxu0 }
 0x297   : > { %v1206_v23 = vmul.f32 %v1178_v63, %v5741_v28 }
 0x299   : > { %v1214_v42 = vadd.f32 %v1206_v23, %v1198_v31 }
 0x29b   : > { %v1222_v51 = vpack.c.bf16 %v1214_v42, %v1214_v42  ;;  %v5785_v42 = vld [vmem:[#allocation16 + $0x30] sm:$0xff] }
 0x29d   : > { %v1448_v43 = vunpack.c.l.b16 %v1222_v51 }
 0x29e   : > { %v1180_v45 = vpop.f32.mrf.mxu0 }
 0x29f   : > { %v1207_v49 = vmul.f32 %v1180_v45, %v5748_v41 }
 0x2a1   : > { %v1215_v52 = vadd.f32 %v1207_v49, %v1199_v48 }
 0x2a3   : > { %v1223_v39 = vpack.c.bf16 %v1215_v52, %v1215_v52  ;;  %v1261_v52 = vpop.f32.mrf.mxu1 }
 0x2a5   : > { %v1449_v56 = vunpack.c.l.b16 %v1223_v39 }
 0x2a6   : > { %v1183_v6 = vpop.f32.mrf.mxu0 }
 0x2a7   : > { %v5757_v61 = vpack.c.b16 %v1449_v56, %v1448_v43  ;;  %v1208_v2 = vmul.f32 %v1183_v6, %v5753_v54  ;;  %v5791_v43 = vld [vmem:[#allocation16 + $0x38] sm:$0xff] }
 0x2a9   : > { %v1216_v59 = vadd.f32 %v1208_v2, %v1200_v62 }
 0x2ab   : > { %v1224_v14 = vpack.c.bf16 %v1216_v59, %v1216_v59  ;;  %v1264_v2 = vpop.f32.mrf.mxu1 }
 0x2ad   : > { %v1450_v22 = vunpack.c.l.b16 %v1224_v14 }
 0x2ae   : > { %v1185_v10 = vpop.f32.mrf.mxu0 }
 0x2af   : > { %v1209_v17 = vmul.f32 %v1185_v10, %v5762_v3 }
 0x2b1   : > { %v1217_v18 = vadd.f32 %v1209_v17, %v1201_v15 }
 0x2b3   : > { %v1225_v20 = vpack.c.bf16 %v1217_v18, %v1217_v18 }
 0x2b5   : > { %v1451_v34 = vunpack.c.l.b16 %v1225_v20  ;;  %v1265_v20 = vadd.f32 1.1920929e-07, %v1264_v2 }
 0x2b6   : > { %v1188_v46 = vpop.f32.mrf.mxu0 }
 0x2b7   : > { %v5773_v1 = vpack.c.b16 %v1451_v34, %v1450_v22  ;;  %v1210_v13 = vmul.f32 %v1188_v46, %v5769_v57  ;;  %v1267_v22 = vpop.f32.mrf.mxu1  ;;  %v1262_v46 = vadd.f32 1.1920929e-07, %v1261_v52  ;;  %vm1315_vm9 = vweird.f32 %v1265_v20 }
 0x2b9   : > { %v1218_v38 = vadd.f32 %v1210_v13, %v1202_v7  ;;  %vm1305_vm11 = vweird.f32 %v1262_v46 }
 0x2bb   : > { %v1226_v63 = vpack.c.bf16 %v1218_v38, %v1218_v38 }
 0x2bd   : > { %v1452_v45 = vunpack.c.l.b16 %v1226_v63 }
 0x2be   : > { %v1190_v25 = vpop.f32.mrf.mxu0 }
 0x2bf   : > { %v1211_v26 = vmul.f32 %v1190_v25, %v5778_v55 }
 0x2c1   : > { %v1219_v31 = vadd.f32 %v1211_v26, %v1203_v58  ;;  %v1270_v58 = vpop.f32.mrf.mxu1 }
 0x2c2   : > { %v1271_v52 = vadd.f32 1.1920929e-07, %v1270_v58 }
 0x2c3   : > { %v1227_v23 = vpack.c.bf16 %v1219_v31, %v1219_v31 }
 0x2c4   : > { %vm1335_vm15 = vweird.f32 %v1271_v52 }
 0x2c5   : > { %v1453_v32 = vunpack.c.l.b16 %v1227_v23 }
 0x2c6   : > { %v1193_v48 = vpop.f32.mrf.mxu0 }
 0x2c7   : > { %v5787_v49 = vpack.c.b16 %v1453_v32, %v1452_v45  ;;  %v1212_v51 = vmul.f32 %v1193_v48, %v5785_v42 }
 0x2c9   : > { %v1220_v39 = vadd.f32 %v1212_v51, %v5727_v50  ;;  %v1273_v2 = vpop.f32.mrf.mxu1 }
 0x2cb   : > { %v1228_v6 = vpack.c.bf16 %v1220_v39, %v1220_v39 }
 0x2cd   : > { %v1454_v10 = vunpack.c.l.b16 %v1228_v6  ;;  %v1268_v6 = vadd.f32 1.1920929e-07, %v1267_v22 }
 0x2ce   : > { %v1195_v36 = vpop.f32.mrf.mxu0 }
 0x2cf   : > { %v1213_v56 = vmul.f32 %v1195_v36, %v5791_v43 }
 0x2d1   : > { %v1221_v62 = vadd.f32 %v1213_v56, %v5733_v9 }
 0x2d3   : > { %v1229_v59 = vpack.c.bf16 %v1221_v62, %v1221_v62 }
 0x2d5   : > { %v1455_v15 = vunpack.c.l.b16 %v1229_v59 }
 0x2d6   : > { %v1255_v17 = vpop.f32.mrf.mxu0 }
 0x2d7   : > { %v5795_v14 = vpack.c.b16 %v1455_v15, %v1454_v10  ;;  %v1256_v18 = vadd.f32 1.1920929e-07, %v1255_v17 }
 0x2d9   : > { %4564 = vrsqrt.f32 %v1256_v18  ;;  %vm1285_vm2 = vweird.f32 %v1256_v18 }
 0x2da   : > { %4566 = vrsqrt.f32 %v1265_v20 }
 0x2de   : > { %v1258_v50 = vpop.f32.mrf.mxu0 }
 0x2df   : > { %v4565_v34 = vpop.eup %4564  ;;  %v1259_v7 = vadd.f32 1.1920929e-07, %v1258_v50 }
 0x2e0   : > { %v1280_v13 = vmul.f32 %v4565_v34, %v1256_v18  ;;  %v4567_v25 = vpop.eup %4566  ;;  %vm1286_vm1 = vweird.f32 %v4565_v34 }
 0x2e1   : > { %4568 = vrsqrt.f32 %v1259_v7  ;;  %v1310_v45 = vmul.f32 %v4567_v25, %v1265_v20  ;;  %vm1287_vm4 = vmor %vm1285_vm2, %vm1286_vm1  ;;  %vm1295_vm5 = vweird.f32 %v1259_v7  ;;  %vm1316_vm7 = vweird.f32 %v4567_v25 }
 0x2e2   : > { %v1281_v38 = vmul.f32 %v4565_v34, %v1280_v13  ;;  %4570 = vrsqrt.f32 %v1262_v46  ;;  %vm1317_vm10 = vmor %vm1315_vm9, %vm1316_vm7  ;;  %vm1325_vm1 = vweird.f32 %v1268_v6  ;;  %vm1480_vm9 = vcmask 261120  }
 0x2e3   : > { %v1311_v36 = vmul.f32 %v4567_v25, %v1310_v45  ;;  %4572 = vrsqrt.f32 %v1271_v52 }
 0x2e4   : > { %v1282_v9 = vmul.f32 0.5, %v1281_v38  ;;  %4574 = vrsqrt.f32 %v1268_v6 }
 0x2e5   : > { %v1312_v15 = vmul.f32 0.5, %v1311_v36 }
 0x2e6   : > { %v1283_v63 = vsub.f32 1.5, %v1282_v9 }
 0x2e7   : > { %v4569_v26 = vpop.eup %4568  ;;  %v1313_v38 = vsub.f32 1.5, %v1312_v15 }
 0x2e8   : > { %v1290_v31 = vmul.f32 %v4569_v26, %v1259_v7  ;;  %v4571_v23 = vpop.eup %4570  ;;  %v1284_v51 = vmul.f32 %v4565_v34, %v1283_v63  ;;  %vm1296_vm3 = vweird.f32 %v4569_v26  ;;  %v1276_v63 = vpop.f32.mrf.mxu1 }
 0x2e9   : > { %v1300_v48 = vmul.f32 %v4571_v23, %v1262_v46  ;;  %vm1297_vm6 = vmor %vm1295_vm5, %vm1296_vm3  ;;  %v4573_v9 = vpop.eup %4572  ;;  %vm1306_vm8 = vweird.f32 %v4571_v23  ;;  %v1277_v45 = vadd.f32 1.1920929e-07, %v1276_v63 }
 0x2ea   : > { %v1291_v32 = vmul.f32 %v4569_v26, %v1290_v31  ;;  %v1288_v10 = vsel %vm1287_vm4, %v4565_v34, %v1284_v51  ;;  %v4575_v34 = vpop.eup %4574  ;;  %v1330_v58 = vmul.f32 %v4573_v9, %v1271_v52  ;;  %v1314_v31 = vmul.f32 %v4567_v25, %v1313_v38  ;;  %vm1307_vm12 = vmor %vm1305_vm11, %vm1306_vm8 }
 0x2eb   : > { %v1301_v62 = vmul.f32 %v4571_v23, %v1300_v48  ;;  %v5798_v50 = vmul.f32 %v1288_v10, %v5581_v33  ;;  %v1320_v33 = vmul.f32 %v4575_v34, %v1268_v6  ;;  %v1274_v48 = vadd.f32 1.1920929e-07, %v1273_v2 }
 0x2ec   : > { %v1292_v39 = vmul.f32 0.5, %v1291_v32  ;;  %v1318_v32 = vsel %vm1317_vm10, %v4567_v25, %v1314_v31  ;;  %4576 = vrsqrt.f32 %v1277_v45  ;;  %vm1336_vm13 = vweird.f32 %v4573_v9 }
 0x2ed   : > { %v1302_v18 = vmul.f32 0.5, %v1301_v62  ;;  %v1321_v51 = vmul.f32 %v4575_v34, %v1320_v33  ;;  %v5806_v36 = vmul.f32 %v1318_v32, %v5601_v44  ;;  %4578 = vrsqrt.f32 %v1274_v48  ;;  %vm1337_vm0 = vmor %vm1335_vm15, %vm1336_vm13 }
 0x2ee   : > { %v1293_v56 = vsub.f32 1.5, %v1292_v39  ;;  %vm1326_vm14 = vweird.f32 %v4575_v34  ;;  %vm1355_vm5 = vweird.f32 %v1277_v45  ;;  %vm1345_vm7 = vweird.f32 %v1274_v48 }
 0x2ef   : > { %v1303_v7 = vsub.f32 1.5, %v1302_v18  ;;  %v1322_v20 = vmul.f32 0.5, %v1321_v51  ;;  %vm1327_vm2 = vmor %vm1325_vm1, %vm1326_vm14  ;;  %vm1550_vm10 = vcmask 523264  }
 0x2f0   : > { %v1294_v59 = vmul.f32 %v4569_v26, %v1293_v56 }
 0x2f1   : > { %v1323_v46 = vsub.f32 1.5, %v1322_v20 }
 0x2f2   : > { %v1298_v17 = vsel %vm1297_vm6, %v4569_v26, %v1294_v59  ;;  %v1304_v26 = vmul.f32 %v4571_v23, %v1303_v7  ;;  %v4577_v15 = vpop.eup %4576 }
 0x2f3   : > { %v5801_v13 = vmul.f32 %v1298_v17, %v5587_v37  ;;  %v1331_v37 = vmul.f32 %v4573_v9, %v1330_v58  ;;  %v4579_v25 = vpop.eup %4578  ;;  %v1350_v17 = vmul.f32 %v4577_v15, %v1277_v45  ;;  %v1324_v44 = vmul.f32 %v4575_v34, %v1323_v46 }
 0x2f4   : > { %v1308_v39 = vsel %vm1307_vm12, %v4571_v23, %v1304_v26  ;;  %v1340_v23 = vmul.f32 %v4579_v25, %v1274_v48  ;;  %vm1356_vm3 = vweird.f32 %v4577_v15  ;;  %vm1346_vm4 = vweird.f32 %v4579_v25 }
 0x2f5   : > { %v1367_v22 = vpack.c.bf16 %v5801_v13, %v5798_v50  ;;  %v1332_v56 = vmul.f32 0.5, %v1331_v37  ;;  %v1361_v62 = vmul.f32 %v1308_v39, %v5593_v40  ;;  %v1351_v18 = vmul.f32 %v4577_v15, %v1350_v17  ;;  %vm1357_vm6 = vmor %vm1355_vm5, %vm1356_vm3 }
 0x2f6   : > { %v1341_v40 = vmul.f32 %v4579_v25, %v1340_v23  ;;  %v1328_v38 = vsel %vm1327_vm2, %v4575_v34, %v1324_v44  ;;  %vm1347_vm8 = vmor %vm1345_vm7, %vm1346_vm4  ;;  %v1400_v39 = vmul.f32 %v5798_v50, %v5739_v27  ;;  %v1401_v48 = vmul.f32 %v5801_v13, %v5746_v35 }
 0x2f7   : > { %1379 = vmatmul.bf16.vlgmr.msrb.gmra.mxu2 %v1367_v22  ;;  %v1368_v59 = vpack.c.bf16 %v5806_v36, %v1361_v62  ;;  %v1333_v10 = vsub.f32 1.5, %v1332_v56  ;;  %v1352_v58 = vmul.f32 0.5, %v1351_v18  ;;  %v1363_v63 = vmul.f32 %v1328_v38, %v5609_v47 }
 0x2f8   : > { %v1342_v31 = vmul.f32 0.5, %v1341_v40  ;;  %v1402_v27 = vmul.f32 %v1361_v62, %v5755_v0  ;;  %v1403_v23 = vmul.f32 %v5806_v36, %v5764_v4 }
 0x2f9   : > { %v1334_v2 = vmul.f32 %v4573_v9, %v1333_v10  ;;  %v1353_v26 = vsub.f32 1.5, %v1352_v58 }
 0x2fa   : > { %v1343_v37 = vsub.f32 1.5, %v1342_v31 }
 0x2fb   : > { %v1338_v22 = vsel %vm1337_vm0, %v4573_v9, %v1334_v2  ;;  %v1354_v52 = vmul.f32 %v4577_v15, %v1353_v26 }
 0x2fc   : > { %v1364_v7 = vmul.f32 %v1338_v22, %v5617_v53  ;;  %v1344_v6 = vmul.f32 %v4579_v25, %v1343_v37 }
 0x2fd   : > { %v1358_v9 = vsel %vm1357_vm6, %v4577_v15, %v1354_v52 }
 0x2fe   : > { %v1369_v33 = vpack.c.bf16 %v1364_v7, %v1363_v63  ;;  %v1348_v34 = vsel %vm1347_vm8, %v4579_v25, %v1344_v6  ;;  %v1366_v53 = vmul.f32 %v1358_v9, %v5633_v8  ;;  %v1405_v31 = vmul.f32 %v1364_v7, %v5780_v19 }
 0x2ff   : > { %v1365_v32 = vmul.f32 %v1348_v34, %v5625_v60 }
 0x301   : > { %v1370_v47 = vpack.c.bf16 %v1366_v53, %v1365_v32 }
 0x307   : > { %1384 = vmatmul.bf16.gmra.mxu2 %v1368_v59 }
 0x317   : > { %1389 = vmatmul.bf16.gmra.mxu2 %v1369_v33 }
 0x327   : > { %1394 = vmatmul.bf16.gmra.mxu2 %v1370_v47 }
 0x37a   : > { %v1380_v51 = vpop.f32.mrf.mxu2 }
 0x37b   : > { %v1408_v56 = vmul.f32 %v1380_v51, %v5741_v28 }
 0x37d   : > { %v1416_v20 = vadd.f32 %v1408_v56, %v1400_v39 }
 0x37f   : > { %v1424_v10 = vpack.c.bf16 %v1416_v20, %v1416_v20 }
 0x381   : > { %v1468_v46 = vunpack.c.l.b16 %v1424_v10  ;;  %v5861_v10 = vld [vmem:[#allocation17 + $0x8] sm:$0xff] }
 0x382   : > { %v1382_v45 = vpop.f32.mrf.mxu2 }
 0x383   : > { %v1409_v59 = vmul.f32 %v1382_v45, %v5748_v41 }
 0x385   : > { %v1417_v15 = vadd.f32 %v1409_v59, %v1401_v48 }
 0x387   : > { %v1425_v8 = vpack.c.bf16 %v1417_v15, %v1417_v15 }
 0x389   : > { %v1469_v60 = vunpack.c.l.b16 %v1425_v8 }
 0x38a   : > { %v1385_v25 = vpop.f32.mrf.mxu2 }
 0x38b   : > { %v5820_v17 = vpack.c.b16 %v1469_v60, %v1468_v46  ;;  %v1410_v2 = vmul.f32 %v1385_v25, %v5753_v54  ;;  %v1404_v54 = vmul.f32 %v1363_v63, %v5771_v12  ;;  %v1407_v63 = vmul.f32 %v1366_v53, %v5730_v24  ;;  %v5857_v53 = vld [vmem:[#allocation17] sm:$0xff]  ;;  %v5865_v25 = vld [vmem:[#allocation17 + $0x10] sm:$0xff] }
 0x38d   : > { %v1418_v28 = vadd.f32 %v1410_v2, %v1402_v27 }
 0x38f   : > { %v1426_v41 = vpack.c.bf16 %v1418_v28, %v1418_v28 }
 0x391   : > { %v1470_v18 = vunpack.c.l.b16 %v1426_v41 }
 0x392   : > { %v1387_v50 = vpop.f32.mrf.mxu2 }
 0x393   : > { %v1411_v35 = vmul.f32 %v1387_v50, %v5762_v3 }
 0x395   : > { %v1419_v13 = vadd.f32 %v1411_v35, %v1403_v23  ;;  %v5869_v23 = vld [vmem:[#allocation17 + $0x18] sm:$0xff] }
 0x397   : > { %v1427_v44 = vpack.c.bf16 %v1419_v13, %v1419_v13 }
 0x399   : > { %v1471_v22 = vunpack.c.l.b16 %v1427_v44 }
 0x39a   : > { %v1390_v40 = vpop.f32.mrf.mxu2 }
 0x39b   : > { %v5827_v38 = vpack.c.b16 %v1471_v22, %v1470_v18  ;;  %v1412_v58 = vmul.f32 %v1390_v40, %v5769_v57  ;;  %v1406_v57 = vmul.f32 %v1365_v32, %v5724_v11  ;;  %v5873_v18 = vld [vmem:[#allocation17 + $0x20] sm:$0xff] }
 0x39d   : > { %v1420_v0 = vadd.f32 %v1412_v58, %v1404_v54  ;;  %v1497_v24 = vsel %vm1480_vm9, %v5827_v38, 0 }
 0x39f   : > { %v1428_v36 = vpack.c.bf16 %v1420_v0, %v1420_v0  ;;  %v5877_v0 = vld [vmem:[#allocation17 + $0x28] sm:$0xff] }
 0x3a1   : > { %v1472_v26 = vunpack.c.l.b16 %v1428_v36 }
 0x3a2   : > { %v1392_v62 = vpop.f32.mrf.mxu2 }
 0x3a3   : > { %v1413_v4 = vmul.f32 %v1392_v62, %v5778_v55 }
 0x3a5   : > { %v1421_v3 = vadd.f32 %v1413_v4, %v1405_v31 }
 0x3a7   : > { %v1429_v33 = vpack.c.bf16 %v1421_v3, %v1421_v3  ;;  %v5881_v3 = vld [vmem:[#allocation17 + $0x30] sm:$0xff] }
 0x3a9   : > { %v1473_v37 = vunpack.c.l.b16 %v1429_v33 }
 0x3aa   : > { %v1395_v52 = vpop.f32.mrf.mxu2 }
 0x3ab   : > { %v5833_v6 = vpack.c.b16 %v1473_v37, %v1472_v26  ;;  %v1414_v9 = vmul.f32 %v1395_v52, %v5785_v42  ;;  %v1494_v42 = vsel %vm1480_vm9, %v5820_v17, 0 }
 0x3ad   : > { %v1422_v34 = vadd.f32 %v1414_v9, %v1406_v57  ;;  %v1500_v11 = vsel %vm1480_vm9, %v5833_v6, 0  ;;  %v5885_v9 = vld [vmem:[#allocation17 + $0x38] sm:$0xff] }
 0x3af   : > { %v1430_v7 = vpack.c.bf16 %v1422_v34, %v1422_v34 }
 0x3b1   : > { %v1474_v51 = vunpack.c.l.b16 %v1430_v7 }
 0x3b2   : > { %v1397_v12 = vpop.f32.mrf.mxu2 }
 0x3b3   : > { %v1415_v19 = vmul.f32 %v1397_v12, %v5791_v43 }
 0x3b5   : > { %v1423_v55 = vadd.f32 %v1415_v19, %v1407_v63 }
 0x3b7   : > { %v1431_v47 = vpack.c.bf16 %v1423_v55, %v1423_v55 }
 0x3b9   : > { %v1475_v39 = vunpack.c.l.b16 %v1431_v47 }
 0x3bb   : > { %v5839_v56 = vpack.c.b16 %v1475_v39, %v1474_v51 }
 0x3bd   : > { %v1503_v20 = vsel %vm1480_vm9, %v5839_v56, 0 }
 0x3be   : > { %1509 = vmatpush.bf16.xpose.msra.mxu3 %v1503_v20 }
 0x3c6   : > { %1510 = vmatpush.bf16.xpose.msra.mxu3 %v1500_v11 }
 0x3ce   : > { %1511 = vmatpush.bf16.xpose.msra.mxu3 %v1497_v24 }
 0x3d6   : > { %1512 = vmatpush.bf16.xpose.msra.mxu3 %v1494_v42 }
 0x3dd   : > { %3904 = vmatmul.msk.bf16.vlgmr.msra.gmra.mxu3 %vm1480_vm9, %v5757_v61 }
 0x3ed   : > { %3905 = vmatmul.msk.bf16.gmra.mxu3 %vm1480_vm9, %v5773_v1 }
 0x3fd   : > { %3906 = vmatmul.msk.bf16.gmra.mxu3 %vm1480_vm9, %v5787_v49 }
 0x40d   : > { %3907 = vmatmul.msk.bf16.gmra.mxu3 %vm1480_vm9, %v5795_v14 }
 0x460   : > { %v1514_v43 = vpop.f32.mrf.mxu3 }
 0x461   : > { %v1534_v32 = vmul.f32 0.17677669, %v1514_v43 }
 0x463   : > { %v1542_v45 = vadd.f32 %v1534_v32, %v5857_v53 }
 0x465   : > { %v1551_v48 = vsel %vm1550_vm10, %v1542_v45, -inf }
 0x466   : > { %1552 = vmax.xlane.f32.xlu2 %v1551_v48 }
 0x468   : > { %v1516_v59 = vpop.f32.mrf.mxu3 }
 0x469   : > { %v1535_v15 = vmul.f32 0.17677669, %v1516_v59 }
 0x46b   : > { %v1543_v8 = vadd.f32 %v1535_v15, %v5861_v10 }
 0x46d   : > { %v1554_v46 = vsel %vm1550_vm10, %v1543_v8, -inf }
 0x46e   : > { %1555 = vmax.xlane.f32.xlu0 %v1554_v46 }
 0x470   : > { %v1519_v60 = vpop.f32.mrf.mxu3 }
 0x471   : > { %v1536_v2 = vmul.f32 0.17677669, %v1519_v60 }
 0x473   : > { %v1544_v27 = vadd.f32 %v1536_v2, %v5865_v25 }
 0x475   : > { %v1557_v28 = vsel %vm1550_vm10, %v1544_v27, -inf }
 0x476   : > { %1558 = vmax.xlane.f32.xlu1 %v1557_v28 }
 0x478   : > { %v1521_v50 = vpop.f32.mrf.mxu3 }
 0x479   : > { %v1537_v35 = vmul.f32 0.17677669, %v1521_v50 }
 0x47b   : > { %v1545_v41 = vadd.f32 %v1537_v35, %v5869_v23 }
 0x47d   : > { %v1560_v13 = vsel %vm1550_vm10, %v1545_v41, -inf }
 0x47e   : > { %1561 = vmax.xlane.f32.xlu2 %v1560_v13 }
 0x480   : > { %v1524_v44 = vpop.f32.mrf.mxu3 }
 0x481   : > { %v1538_v22 = vmul.f32 0.17677669, %v1524_v44 }
 0x483   : > { %v1546_v40 = vadd.f32 %v1538_v22, %v5873_v18 }
 0x485   : > { %v1563_v58 = vsel %vm1550_vm10, %v1546_v40, -inf }
 0x486   : > { %1564 = vmax.xlane.f32.xlu0 %v1563_v58 }
 0x488   : > { %v1526_v54 = vpop.f32.mrf.mxu3 }
 0x489   : > { %v1539_v62 = vmul.f32 0.17677669, %v1526_v54 }
 0x48b   : > { %v1547_v31 = vadd.f32 %v1539_v62, %v5877_v0 }
 0x48d   : > { %v1566_v4 = vsel %vm1550_vm10, %v1547_v31, -inf }
 0x48e   : > { %1567 = vmax.xlane.f32.xlu1 %v1566_v4 }
 0x490   : > { %v1529_v36 = vpop.f32.mrf.mxu3 }
 0x491   : > { %v1540_v33 = vmul.f32 0.17677669, %v1529_v36 }
 0x493   : > { %v1548_v26 = vadd.f32 %v1540_v33, %v5881_v3 }
 0x495   : > { %v1569_v37 = vsel %vm1550_vm10, %v1548_v26, -inf }
 0x496   : > { %1570 = vmax.xlane.f32.xlu2 %v1569_v37 }
 0x498   : > { %v1531_v52 = vpop.f32.mrf.mxu3 }
 0x499   : > { %v1541_v57 = vmul.f32 0.17677669, %v1531_v52 }
 0x49b   : > { %v1549_v34 = vadd.f32 %v1541_v57, %v5885_v9 }
 0x49d   : > { %v1572_v12 = vsel %vm1550_vm10, %v1549_v34, -inf }
 0x49e   : > { %1573 = vmax.xlane.f32.xlu0 %v1572_v12 }
 0x4d9   : > { %v1553_v63 = vpop.xlane.xlu2 %1552 }
 0x4da   : > { %v1575_v19 = vsub.f32 %v1542_v45, %v1553_v63 }
 0x4dc   : > { %v1583_v7 = vmul.f32 1.442695, %v1575_v19 }
 0x4de   : > { %4580 = vpow2.f32 %v1583_v7 }
 0x4e1   : > { %v1556_v55 = vpop.xlane.xlu0 %1555 }
 0x4e2   : > { %v1576_v47 = vsub.f32 %v1543_v8, %v1556_v55 }
 0x4e4   : > { %v5889_v51 = vpop.eup %4580  ;;  %v1585_v39 = vmul.f32 1.442695, %v1576_v47 }
 0x4e5   : > { %v1599_v20 = vsel %vm1550_vm10, %v5889_v51, 0.0 }
 0x4e6   : > { %4582 = vpow2.f32 %v1585_v39  ;;  %1600 = vadd.xlane.f32.xlu1 %v1599_v20  ;;  %v4279_v39 = vld [vmem:[#allocation7 + $0x8] sm:$0xff] }
 0x4e7   : > { %2037 = vmatpush.bf16.msra.mxu0 %v4279_v39 }
 0x4e9   : > { %v1559_v11 = vpop.xlane.xlu1 %1558 }
 0x4ea   : > { %v1577_v24 = vsub.f32 %v1544_v27, %v1559_v11 }
 0x4ec   : > { %v5893_v42 = vpop.eup %4582  ;;  %v1587_v43 = vmul.f32 1.442695, %v1577_v24 }
 0x4ed   : > { %v1602_v32 = vsel %vm1550_vm10, %v5893_v42, 0.0 }
 0x4ee   : > { %4584 = vpow2.f32 %v1587_v43  ;;  %1603 = vadd.xlane.f32.xlu2 %v1602_v32  ;;  %v4278_v32 = vld [vmem:[#allocation7] sm:$0xff] }
 0x4ef   : > { %2038 = vmatpush.bf16.msra.mxu0 %v4278_v32 }
 0x4f1   : > { %v1562_v45 = vpop.xlane.xlu2 %1561 }
 0x4f2   : > { %v1578_v48 = vsub.f32 %v1545_v41, %v1562_v45 }
 0x4f4   : > { %v5897_v59 = vpop.eup %4584  ;;  %v1589_v15 = vmul.f32 1.442695, %v1578_v48 }
 0x4f5   : > { %v1605_v8 = vsel %vm1550_vm10, %v5897_v59, 0.0 }
 0x4f6   : > { %4586 = vpow2.f32 %v1589_v15  ;;  %1606 = vadd.xlane.f32.xlu0 %v1605_v8 }
 0x4f9   : > { %v1565_v46 = vpop.xlane.xlu0 %1564 }
 0x4fa   : > { %v1579_v60 = vsub.f32 %v1546_v40, %v1565_v46 }
 0x4fc   : > { %v5901_v2 = vpop.eup %4586  ;;  %v1591_v27 = vmul.f32 1.442695, %v1579_v60 }
 0x4fd   : > { %v1608_v28 = vsel %vm1550_vm10, %v5901_v2, 0.0 }
 0x4fe   : > { %4588 = vpow2.f32 %v1591_v27  ;;  %1609 = vadd.xlane.f32.xlu1 %v1608_v28 }
 0x501   : > { %v1568_v50 = vpop.xlane.xlu1 %1567 }
 0x502   : > { %v1580_v35 = vsub.f32 %v1547_v31, %v1568_v50 }
 0x504   : > { %v5905_v41 = vpop.eup %4588  ;;  %v1593_v13 = vmul.f32 1.442695, %v1580_v35 }
 0x505   : > { %v1611_v44 = vsel %vm1550_vm10, %v5905_v41, 0.0 }
 0x506   : > { %4590 = vpow2.f32 %v1593_v13  ;;  %1612 = vadd.xlane.f32.xlu2 %v1611_v44 }
 0x509   : > { %v1571_v22 = vpop.xlane.xlu2 %1570 }
 0x50a   : > { %v1581_v40 = vsub.f32 %v1548_v26, %v1571_v22 }
 0x50c   : > { %v5909_v58 = vpop.eup %4590  ;;  %v1595_v54 = vmul.f32 1.442695, %v1581_v40 }
 0x50d   : > { %v1614_v62 = vsel %vm1550_vm10, %v5909_v58, 0.0 }
 0x50e   : > { %4592 = vpow2.f32 %v1595_v54  ;;  %1615 = vadd.xlane.f32.xlu0 %v1614_v62 }
 0x511   : > { %v1574_v4 = vpop.xlane.xlu0 %1573 }
 0x512   : > { %v1582_v31 = vsub.f32 %v1549_v34, %v1574_v4 }
 0x514   : > { %v5913_v36 = vpop.eup %4592  ;;  %v1597_v33 = vmul.f32 1.442695, %v1582_v31 }
 0x515   : > { %v1617_v37 = vsel %vm1550_vm10, %v5913_v36, 0.0 }
 0x516   : > { %4594 = vpow2.f32 %v1597_v33  ;;  %1618 = vadd.xlane.f32.xlu1 %v1617_v37 }
 0x51c   : > { %v5917_v52 = vpop.eup %4594 }
 0x51d   : > { %v1620_v26 = vsel %vm1550_vm10, %v5917_v52, 0.0 }
 0x51e   : > { %1621 = vadd.xlane.f32.xlu2 %v1620_v26 }
 0x522   : > { %1730 = vrot.lane.b32.xlu0 %v5839_v56, %s5138_s2 }
 0x52a   : > { %1724 = vrot.lane.b32.xlu0 %v5820_v17, %s5138_s2 }
 0x52f   : > { %1728 = vrot.lane.b32.xlu1 %v5833_v6, %s5138_s2 }
 0x532   : > { %1720 = vrot.lane.b32.xlu0 %v5787_v49, %s5138_s2 }
 0x536   : > { %1726 = vrot.lane.b32.xlu2 %v5827_v38, %s5138_s2 }
 0x537   : > { %1718 = vrot.lane.b32.xlu1 %v5773_v1, %s5138_s2 }
 0x53a   : > { %2373 = vrot.lane.b32.xlu0 %v5839_v56, %s5139_s27 }
 0x53e   : > { %1716 = vrot.lane.b32.xlu2 %v5757_v61, %s5138_s2 }
 0x53f   : > { %2072 = vrot.lane.b32.xlu1 %v5833_v6, %s5140_s22 }
 0x542   : > { %2371 = vrot.lane.b32.xlu0 %v5833_v6, %s5139_s27 }
 0x546   : > { %2074 = vrot.lane.b32.xlu2 %v5839_v56, %s5140_s22 }
 0x547   : > { %2070 = vrot.lane.b32.xlu1 %v5827_v38, %s5140_s22 }
 0x54a   : > { %2060 = vrot.lane.b32.xlu0 %v5757_v61, %s5140_s22 }
 0x54e   : > { %1722 = vrot.lane.b32.xlu2 %v5795_v14, %s5138_s2 }
 0x54f   : > { %2369 = vrot.lane.b32.xlu1 %v5827_v38, %s5139_s27 }
 0x552   : > { %2062 = vrot.lane.b32.xlu0 %v5773_v1, %s5140_s22 }
 0x556   : > { %2068 = vrot.lane.b32.xlu2 %v5820_v17, %s5140_s22 }
 0x557   : > { %2359 = vrot.lane.b32.xlu1 %v5757_v61, %s5139_s27 }
 0x559   : > { %v1601_v6 = vpop.xlane.xlu1 %1600 }
 0x55a   : > { %2363 = vrot.lane.b32.xlu0 %v5787_v49, %s5139_s27  ;;  %4596 = vrcp.f32 %v1601_v6 }
 0x55e   : > { %2367 = vrot.lane.b32.xlu2 %v5820_v17, %s5139_s27 }
 0x55f   : > { %2064 = vrot.lane.b32.xlu1 %v5787_v49, %s5140_s22 }
 0x560   : > { %v4597_v56 = vpop.eup %4596 }
 0x561   : > { %v1604_v38 = vpop.xlane.xlu2 %1603  ;;  %v1631_v57 = vmul.f32 %v4597_v56, %v5889_v51 }
 0x562   : > { %4598 = vrcp.f32 %v1604_v38 }
 0x566   : > { %2361 = vrot.lane.b32.xlu2 %v5773_v1, %s5139_s27 }
 0x567   : > { %2365 = vrot.lane.b32.xlu1 %v5795_v14, %s5139_s27 }
 0x568   : > { %v4599_v61 = vpop.eup %4598 }
 0x569   : > { %v1632_v34 = vmul.f32 %v4599_v61, %v5893_v42  ;;  %v1607_v17 = vpop.xlane.xlu0 %1606 }
 0x56a   : > { %4600 = vrcp.f32 %v1607_v17 }
 0x56b   : > { %v1639_v12 = vpack.c.bf16 %v1632_v34, %v1631_v57 }
 0x56d   : > { %3908 = vmatmul.msk.bf16.vlgmr.msrb.gmra.mxu0 %vm1550_vm10, %v1639_v12 }
 0x56e   : > { %2066 = vrot.lane.b32.xlu2 %v5795_v14, %s5140_s22 }
 0x570   : > { %v4601_v63 = vpop.eup %4600 }
 0x571   : > { %v1610_v49 = vpop.xlane.xlu1 %1609  ;;  %v1633_v19 = vmul.f32 %v4601_v63, %v5897_v59 }
 0x572   : > { %4602 = vrcp.f32 %v1610_v49 }
 0x578   : > { %v4603_v1 = vpop.eup %4602 }
 0x579   : > { %v1634_v7 = vmul.f32 %v4603_v1, %v5901_v2  ;;  %v1613_v47 = vpop.xlane.xlu2 %1612 }
 0x57a   : > { %4604 = vrcp.f32 %v1613_v47 }
 0x57b   : > { %v1640_v55 = vpack.c.bf16 %v1634_v7, %v1633_v19 }
 0x57d   : > { %3909 = vmatmul.msk.bf16.gmra.mxu0 %vm1550_vm10, %v1640_v55 }
 0x580   : > { %v4605_v20 = vpop.eup %4604 }
 0x581   : > { %v1616_v51 = vpop.xlane.xlu0 %1615  ;;  %v1635_v11 = vmul.f32 %v4605_v20, %v5905_v41 }
 0x582   : > { %4606 = vrcp.f32 %v1616_v51 }
 0x588   : > { %v4607_v14 = vpop.eup %4606 }
 0x589   : > { %v1636_v24 = vmul.f32 %v4607_v14, %v5909_v58  ;;  %v1619_v43 = vpop.xlane.xlu1 %1618 }
 0x58a   : > { %4608 = vrcp.f32 %v1619_v43 }
 0x58b   : > { %v1641_v42 = vpack.c.bf16 %v1636_v24, %v1635_v11 }
 0x58d   : > { %3910 = vmatmul.msk.bf16.gmra.mxu0 %vm1550_vm10, %v1641_v42 }
 0x590   : > { %v4609_v15 = vpop.eup %4608 }
 0x591   : > { %v1622_v45 = vpop.xlane.xlu2 %1621  ;;  %v1637_v60 = vmul.f32 %v4609_v15, %v5913_v36 }
 0x592   : > { %4610 = vrcp.f32 %v1622_v45 }
 0x594   : > { %v1731_v48 = vpop.permute.xlu0 %1730 }
 0x595   : > { %v1754_v59 = vsel %vm1480_vm9, %v1731_v48, 0 }
 0x596   : > { %1760 = vmatpush.bf16.xpose.msra.mxu1 %v1754_v59 }
 0x598   : > { %v4611_v8 = vpop.eup %4610 }
 0x599   : > { %v1727_v46 = vpop.permute.xlu2 %1726  ;;  %v1638_v2 = vmul.f32 %v4611_v8, %v5917_v52 }
 0x59a   : > { %v1748_v40 = vsel %vm1480_vm9, %v1727_v46, 0 }
 0x59b   : > { %v1642_v27 = vpack.c.bf16 %v1638_v2, %v1637_v60 }
 0x59c   : > { %v1725_v28 = vpop.permute.xlu0 %1724 }
 0x59d   : > { %3911 = vmatmul.msk.bf16.gmra.mxu0 %vm1550_vm10, %v1642_v27  ;;  %v1745_v4 = vsel %vm1480_vm9, %v1725_v28, 0 }
 0x5a1   : > { %v1729_v50 = vpop.permute.xlu1 %1728  ;;  %v1717_v35 = vpop.permute.xlu2 %1716 }
 0x5a2   : > { %v1751_v41 = vsel %vm1480_vm9, %v1729_v50, 0 }
 0x5a3   : > { %1761 = vmatpush.bf16.xpose.msra.mxu1 %v1751_v41 }
 0x5a4   : > { %v1721_v13 = vpop.permute.xlu0 %1720 }
 0x5a9   : > { %v1719_v44 = vpop.permute.xlu1 %1718  ;;  %v2075_v22 = vpop.permute.xlu2 %2074 }
 0x5aa   : > { %v2098_v31 = vsel %vm1480_vm9, %v2075_v22, 0 }
 0x5ab   : > { %1762 = vmatpush.bf16.xpose.msra.mxu1 %v1748_v40 }
 0x5ac   : > { %v2374_v58 = vpop.permute.xlu0 %2373 }
 0x5ad   : > { %v2397_v54 = vsel %vm1480_vm9, %v2374_v58, 0 }
 0x5ae   : > { %2403 = vmatpush.bf16.xpose.msrb.mxu0 %v2397_v54 }
 0x5b1   : > { %v2073_v62 = vpop.permute.xlu1 %2072  ;;  %v1723_v36 = vpop.permute.xlu2 %1722 }
 0x5b2   : > { %v2095_v26 = vsel %vm1480_vm9, %v2073_v62, 0 }
 0x5b3   : > { %1763 = vmatpush.bf16.xpose.msra.mxu1 %v1745_v4 }
 0x5b4   : > { %v2372_v33 = vpop.permute.xlu0 %2371 }
 0x5b5   : > { %v2394_v37 = vsel %vm1480_vm9, %v2372_v33, 0 }
 0x5b6   : > { %2404 = vmatpush.bf16.xpose.msrb.mxu0 %v2394_v37 }
 0x5b9   : > { %v2071_v52 = vpop.permute.xlu1 %2070  ;;  %v2069_v6 = vpop.permute.xlu2 %2068 }
 0x5ba   : > { %3912 = vmatmul.msk.bf16.vlgmr.msra.gmra.mxu1 %vm1480_vm9, %v1717_v35  ;;  %v2092_v61 = vsel %vm1480_vm9, %v2071_v52, 0  ;;  %v2089_v12 = vsel %vm1480_vm9, %v2069_v6, 0 }
 0x5bb   : > { %2104 = vmatpush.bf16.xpose.msrb.mxu1 %v2098_v31 }
 0x5bc   : > { %v2061_v1 = vpop.permute.xlu0 %2060 }
 0x5c1   : > { %v2370_v38 = vpop.permute.xlu1 %2369  ;;  %v2368_v57 = vpop.permute.xlu2 %2367 }
 0x5c2   : > { %v2391_v56 = vsel %vm1480_vm9, %v2370_v38, 0  ;;  %v2388_v34 = vsel %vm1480_vm9, %v2368_v57, 0 }
 0x5c3   : > { %2105 = vmatpush.bf16.xpose.msrb.mxu1 %v2095_v26  ;;  %2405 = vmatpush.bf16.xpose.msrb.mxu0 %v2391_v56 }
 0x5c4   : > { %v2063_v47 = vpop.permute.xlu0 %2062 }
 0x5c9   : > { %v2360_v39 = vpop.permute.xlu1 %2359  ;;  %v2362_v42 = vpop.permute.xlu2 %2361 }
 0x5ca   : > { %3913 = vmatmul.msk.bf16.gmra.mxu1 %vm1480_vm9, %v1719_v44 }
 0x5cb   : > { %2106 = vmatpush.bf16.xpose.msrb.mxu1 %v2092_v61  ;;  %2406 = vmatpush.bf16.xpose.msrb.mxu0 %v2388_v34 }
 0x5cc   : > { %v2364_v40 = vpop.permute.xlu0 %2363 }
 0x5d1   : > { %v2065_v11 = vpop.permute.xlu1 %2064  ;;  %v2067_v45 = vpop.permute.xlu2 %2066 }
 0x5d3   : > { %2107 = vmatpush.bf16.xpose.msrb.mxu1 %v2089_v12 }
 0x5d9   : > { %v2366_v52 = vpop.permute.xlu1 %2365 }
 0x5da   : > { %3914 = vmatmul.msk.bf16.gmra.mxu1 %vm1480_vm9, %v1721_v13 }
 0x5ea   : > { %v1688_v17 = vpop.f32.mrf.mxu0  ;;  %3915 = vmatmul.msk.bf16.gmra.mxu1 %vm1480_vm9, %v1723_v36 }
 0x5f2   : > { %v1690_v49 = vpop.f32.mrf.mxu0 }
 0x5f3   : > { %v1708_v63 = vpack.c.bf16 %v1690_v49, %v1688_v17 }
 0x5f5   : > { %3940 = vmatmul.msk.bf16.vlgmr.msra.gmra.mxu0 %vm1480_vm9, %v1708_v63 }
 0x5fa   : > { %v1693_v19 = vpop.f32.mrf.mxu0  ;;  %3944 = vmatmul.msk.bf16.vlgmr.msrb.gmra.mxu1 %vm1480_vm9, %v2061_v1 }
 0x602   : > { %v1695_v7 = vpop.f32.mrf.mxu0 }
 0x603   : > { %v1709_v55 = vpack.c.bf16 %v1695_v7, %v1693_v19 }
 0x605   : > { %3941 = vmatmul.msk.bf16.gmra.mxu0 %vm1480_vm9, %v1709_v55 }
 0x60a   : > { %v1698_v51 = vpop.f32.mrf.mxu0  ;;  %3945 = vmatmul.msk.bf16.gmra.mxu1 %vm1480_vm9, %v2063_v47 }
 0x612   : > { %v1700_v20 = vpop.f32.mrf.mxu0 }
 0x613   : > { %v1710_v14 = vpack.c.bf16 %v1700_v20, %v1698_v51 }
 0x615   : > { %3942 = vmatmul.msk.bf16.gmra.mxu0 %vm1480_vm9, %v1710_v14 }
 0x61a   : > { %v1703_v24 = vpop.f32.mrf.mxu0  ;;  %3946 = vmatmul.msk.bf16.gmra.mxu1 %vm1480_vm9, %v2065_v11 }
 0x622   : > { %v1705_v43 = vpop.f32.mrf.mxu0 }
 0x623   : > { %v1711_v32 = vpack.c.bf16 %v1705_v43, %v1703_v24 }
 0x625   : > { %3943 = vmatmul.msk.bf16.gmra.mxu0 %vm1480_vm9, %v1711_v32 }
 0x62a   : > { %3947 = vmatmul.msk.bf16.gmra.mxu1 %vm1480_vm9, %v2067_v45 }
 0x635   : > { %3964 = vmatmul.msk.bf16.vlgmr.msrb.gmra.mxu0 %vm1480_vm9, %v2360_v39 }
 0x637   : > { %v1765_v48 = vpop.f32.mrf.mxu1 }
 0x638   : > { %v1785_v59 = vmul.f32 0.17677669, %v1765_v48 }
 0x63a   : > { %v6007_v15 = vadd.f32 %v1785_v59, %v5857_v53 }
 0x63c   : > { %v1801_v8 = vsel %vm1550_vm10, %v6007_v15, -inf }
 0x63d   : > { %1802 = vmax.xlane.f32.xlu0 %v1801_v8 }
 0x63f   : > { %v1767_v46 = vpop.f32.mrf.mxu1 }
 0x640   : > { %v1786_v60 = vmul.f32 0.17677669, %v1767_v46 }
 0x642   : > { %v6012_v2 = vadd.f32 %v1786_v60, %v5861_v10 }
 0x644   : > { %v1804_v27 = vsel %vm1550_vm10, %v6012_v2, -inf }
 0x645   : > { %1805 = vmax.xlane.f32.xlu2 %v1804_v27  ;;  %3965 = vmatmul.msk.bf16.gmra.mxu0 %vm1480_vm9, %v2362_v42 }
 0x647   : > { %v1770_v28 = vpop.f32.mrf.mxu1 }
 0x648   : > { %v1787_v50 = vmul.f32 0.17677669, %v1770_v28 }
 0x64a   : > { %v6018_v35 = vadd.f32 %v1787_v50, %v5865_v25 }
 0x64c   : > { %v1807_v41 = vsel %vm1550_vm10, %v6018_v35, -inf }
 0x64d   : > { %1808 = vmax.xlane.f32.xlu1 %v1807_v41 }
 0x64f   : > { %v1772_v13 = vpop.f32.mrf.mxu1 }
 0x650   : > { %v1788_v44 = vmul.f32 0.17677669, %v1772_v13 }
 0x652   : > { %v6023_v22 = vadd.f32 %v1788_v44, %v5869_v23 }
 0x654   : > { %v1810_v58 = vsel %vm1550_vm10, %v6023_v22, -inf }
 0x655   : > { %1811 = vmax.xlane.f32.xlu0 %v1810_v58  ;;  %3966 = vmatmul.msk.bf16.gmra.mxu0 %vm1480_vm9, %v2364_v40 }
 0x657   : > { %v1775_v54 = vpop.f32.mrf.mxu1 }
 0x658   : > { %v1789_v62 = vmul.f32 0.17677669, %v1775_v54 }
 0x65a   : > { %v6029_v4 = vadd.f32 %v1789_v62, %v5873_v18 }
 0x65c   : > { %v1813_v31 = vsel %vm1550_vm10, %v6029_v4, -inf }
 0x65d   : > { %1814 = vmax.xlane.f32.xlu2 %v1813_v31 }
 0x65f   : > { %v1777_v36 = vpop.f32.mrf.mxu1 }
 0x660   : > { %v1790_v33 = vmul.f32 0.17677669, %v1777_v36 }
 0x662   : > { %v6034_v37 = vadd.f32 %v1790_v33, %v5877_v0 }
 0x664   : > { %v1816_v26 = vsel %vm1550_vm10, %v6034_v37, -inf }
 0x665   : > { %1817 = vmax.xlane.f32.xlu1 %v1816_v26  ;;  %3967 = vmatmul.msk.bf16.gmra.mxu0 %vm1480_vm9, %v2366_v52 }
 0x667   : > { %v1780_v6 = vpop.f32.mrf.mxu1 }
 0x668   : > { %v1791_v38 = vmul.f32 0.17677669, %v1780_v6 }
 0x66a   : > { %v6040_v56 = vadd.f32 %v1791_v38, %v5881_v3 }
 0x66c   : > { %v1819_v61 = vsel %vm1550_vm10, %v6040_v56, -inf }
 0x66d   : > { %1820 = vmax.xlane.f32.xlu0 %v1819_v61 }
 0x66f   : > { %v1782_v57 = vpop.f32.mrf.mxu1 }
 0x670   : > { %v1792_v34 = vmul.f32 0.17677669, %v1782_v57 }
 0x672   : > { %v6045_v12 = vadd.f32 %v1792_v34, %v5885_v9  ;;  %v6049_v49 = vpop.f32.mrf.mxu0 }
 0x674   : > { %v1822_v17 = vsel %vm1550_vm10, %v6045_v12, -inf }
 0x675   : > { %1823 = vmax.xlane.f32.xlu2 %v1822_v17 }
 0x677   : > { %v2109_v63 = vpop.f32.mrf.mxu1 }
 0x678   : > { %v2129_v14 = vmul.f32 0.17677669, %v2109_v63 }
 0x67a   : > { %v6053_v19 = vpop.f32.mrf.mxu0  ;;  %v6070_v11 = vadd.f32 %v2129_v14, %v5857_v53 }
 0x67c   : > { %v2145_v45 = vsel %vm1550_vm10, %v6070_v11, -inf }
 0x67e   : > { %1899 = vrot.lane.b32.xlu1 %v5685_v5, %s5138_s2 }
 0x67f   : > { %v2111_v1 = vpop.f32.mrf.mxu1 }
 0x680   : > { %v2130_v24 = vmul.f32 0.17677669, %v2111_v1 }
 0x681   : > { %1897 = vrot.lane.b32.xlu0 %v5692_v21, %s5138_s2 }
 0x682   : > { %v6059_v55 = vpop.f32.mrf.mxu0  ;;  %v6077_v48 = vadd.f32 %v2130_v24, %v5861_v10 }
 0x684   : > { %v2148_v46 = vsel %vm1550_vm10, %v6077_v48, -inf }
 0x686   : > { %1893 = vrot.lane.b32.xlu1 %v5704_v30, %s5138_s2 }
 0x687   : > { %v2114_v7 = vpop.f32.mrf.mxu1 }
 0x688   : > { %v2131_v32 = vmul.f32 0.17677669, %v2114_v7 }
 0x68a   : > { %v6063_v51 = vpop.f32.mrf.mxu0  ;;  %v6080_v59 = vadd.f32 %v2131_v32, %v5865_v25 }
 0x68c   : > { %v2151_v28 = vsel %vm1550_vm10, %v6080_v59, -inf }
 0x68d   : > { %1895 = vrot.lane.b32.xlu2 %v5699_v16, %s5138_s2 }
 0x68f   : > { %v2116_v47 = vpop.f32.mrf.mxu1 }
 0x690   : > { %v2132_v8 = vmul.f32 0.17677669, %v2116_v47 }
 0x692   : > { %v6067_v20 = vpop.f32.mrf.mxu0  ;;  %v6089_v41 = vadd.f32 %v2132_v8, %v5869_v23 }
 0x694   : > { %v2154_v58 = vsel %vm1550_vm10, %v6089_v41, -inf }
 0x695   : > { %2243 = vrot.lane.b32.xlu2 %v5685_v5, %s5140_s22 }
 0x697   : > { %v2119_v39 = vpop.f32.mrf.mxu1 }
 0x698   : > { %v2133_v60 = vmul.f32 0.17677669, %v2119_v39 }
 0x69a   : > { %v6072_v43 = vpop.f32.mrf.mxu0  ;;  %v6092_v44 = vadd.f32 %v2133_v60, %v5873_v18 }
 0x69c   : > { %v2157_v33 = vsel %vm1550_vm10, %v6092_v44, -inf }
 0x69f   : > { %v2121_v42 = vpop.f32.mrf.mxu1 }
 0x6a0   : > { %v2134_v40 = vmul.f32 0.17677669, %v2121_v42 }
 0x6a2   : > { %v6086_v50 = vpop.f32.mrf.mxu0  ;;  %v6101_v26 = vadd.f32 %v2134_v40, %v5877_v0 }
 0x6a7   : > { %v2124_v27 = vpop.f32.mrf.mxu1 }
 0x6a8   : > { %v2135_v36 = vmul.f32 0.17677669, %v2124_v27 }
 0x6aa   : > { %v6103_v38 = vpop.f32.mrf.mxu0  ;;  %v6106_v57 = vadd.f32 %v2135_v36, %v5881_v3 }
 0x6ab   : > { %2146 = vmax.xlane.f32.xlu0 %v2145_v45 }
 0x6ac   : > { %v2163_v63 = vsel %vm1550_vm10, %v6106_v57, -inf }
 0x6af   : > { %v2126_v6 = vpop.f32.mrf.mxu1 }
 0x6b0   : > { %2149 = vmax.xlane.f32.xlu1 %v2148_v46  ;;  %v1803_v13 = vpop.xlane.xlu0 %1802 }
 0x6b1   : > { %v1825_v62 = vsub.f32 %v6007_v15, %v1803_v13  ;;  %v2136_v15 = vmul.f32 0.17677669, %v2126_v6 }
 0x6b2   : > { %v6122_v24 = vpop.f32.mrf.mxu0 }
 0x6b3   : > { %2152 = vmax.xlane.f32.xlu0 %v2151_v28  ;;  %v1833_v61 = vmul.f32 1.442695, %v1825_v62  ;;  %v6116_v47 = vadd.f32 %v2136_v15, %v5885_v9 }
 0x6b8   : > { %v1806_v54 = vpop.xlane.xlu2 %1805  ;;  %2155 = vmax.xlane.f32.xlu1 %v2154_v58 }
 0x6b9   : > { %v1826_v31 = vsub.f32 %v6012_v2, %v1806_v54  ;;  %v2160_v2 = vsel %vm1550_vm10, %v6101_v26, -inf }
 0x6ba   : > { %v2410_v28 = vpop.f32.mrf.mxu0 }
 0x6bb   : > { %v1835_v52 = vmul.f32 1.442695, %v1826_v31  ;;  %2158 = vmax.xlane.f32.xlu0 %v2157_v33 }
 0x6bd   : > { %4612 = vpow2.f32 %v1835_v52 }
 0x6be   : > { %4614 = vpow2.f32 %v1833_v61 }
 0x6c0   : > { %v1809_v34 = vpop.xlane.xlu1 %1808  ;;  %2161 = vmax.xlane.f32.xlu1 %v2160_v2 }
 0x6c1   : > { %v1827_v17 = vsub.f32 %v6018_v35, %v1809_v34  ;;  %v2166_v35 = vsel %vm1550_vm10, %v6116_v47, -inf }
 0x6c2   : > { %v6141_v36 = vpop.f32.mrf.mxu0 }
 0x6c3   : > { %v6113_v1 = vpop.eup %4612  ;;  %v1837_v7 = vmul.f32 1.442695, %v1827_v17  ;;  %2164 = vmax.xlane.f32.xlu0 %v2163_v63 }
 0x6c4   : > { %v1852_v39 = vsel %vm1550_vm10, %v6113_v1, 0.0  ;;  %v6120_v14 = vpop.eup %4614 }
 0x6c5   : > { %4616 = vpow2.f32 %v1837_v7  ;;  %1853 = vadd.xlane.f32.xlu2 %v1852_v39  ;;  %v1849_v45 = vsel %vm1550_vm10, %v6120_v14, 0.0  ;;  %v2429_v39 = vmul.f32 0.17677669, %v2410_v28 }
 0x6c8   : > { %2167 = vmax.xlane.f32.xlu1 %v2166_v35  ;;  %v1812_v42 = vpop.xlane.xlu0 %1811 }
 0x6c9   : > { %v1828_v32 = vsub.f32 %v6023_v22, %v1812_v42 }
 0x6cb   : > { %v6129_v8 = vpop.eup %4616  ;;  %v1839_v46 = vmul.f32 1.442695, %v1828_v32  ;;  %1850 = vadd.xlane.f32.xlu0 %v1849_v45  ;;  %v6156_v32 = vadd.f32 %v2429_v39, %v5861_v10  ;;  %v2428_v39 = vmul.f32 0.17677669, %v6122_v24 }
 0x6cc   : > { %v1855_v60 = vsel %vm1550_vm10, %v6129_v8, 0.0 }
 0x6cd   : > { %4618 = vpow2.f32 %v1839_v46  ;;  %1856 = vadd.xlane.f32.xlu2 %v1855_v60  ;;  %v2447_v28 = vsel %vm1550_vm10, %v6156_v32, -inf }
 0x6d0   : > { %v1815_v27 = vpop.xlane.xlu2 %1814 }
 0x6d1   : > { %v1829_v13 = vsub.f32 %v6029_v4, %v1815_v27 }
 0x6d3   : > { %v6134_v40 = vpop.eup %4618  ;;  %v1841_v58 = vmul.f32 1.442695, %v1829_v13 }
 0x6d4   : > { %v1858_v22 = vsel %vm1550_vm10, %v6134_v40, 0.0 }
 0x6d5   : > { %4620 = vpow2.f32 %v1841_v58  ;;  %1859 = vadd.xlane.f32.xlu0 %v1858_v22 }
 0x6d8   : > { %v1818_v54 = vpop.xlane.xlu1 %1817 }
 0x6d9   : > { %v1830_v62 = vsub.f32 %v6034_v37, %v1818_v54  ;;  %v2415_v37 = vpop.f32.mrf.mxu0 }
 0x6db   : > { %v6139_v31 = vpop.eup %4620  ;;  %v1843_v33 = vmul.f32 1.442695, %v1830_v62 }
 0x6dc   : > { %v1861_v52 = vsel %vm1550_vm10, %v6139_v31, 0.0 }
 0x6dd   : > { %4622 = vpow2.f32 %v1843_v33  ;;  %1862 = vadd.xlane.f32.xlu2 %v1861_v52 }
 0x6e0   : > { %v1821_v4 = vpop.xlane.xlu0 %1820 }
 0x6e1   : > { %v1831_v6 = vsub.f32 %v6040_v56, %v1821_v4  ;;  %v2418_v56 = vpop.f32.mrf.mxu0 }
 0x6e3   : > { %v6146_v61 = vpop.eup %4622  ;;  %v1845_v15 = vmul.f32 1.442695, %v1831_v6 }
 0x6e4   : > { %v1864_v2 = vsel %vm1550_vm10, %v6146_v61, 0.0 }
 0x6e5   : > { %4624 = vpow2.f32 %v1845_v15  ;;  %1865 = vadd.xlane.f32.xlu0 %v1864_v2 }
 0x6e8   : > { %v1824_v34 = vpop.xlane.xlu2 %1823 }
 0x6e9   : > { %v1832_v17 = vsub.f32 %v6045_v12, %v1824_v34  ;;  %v2431_v12 = vmul.f32 0.17677669, %v2415_v37  ;;  %v2420_v13 = vpop.f32.mrf.mxu0 }
 0x6ea   : > { %v2433_v58 = vmul.f32 0.17677669, %v2420_v13 }
 0x6eb   : > { %v6151_v63 = vpop.eup %4624  ;;  %v1847_v7 = vmul.f32 1.442695, %v1832_v17  ;;  %v6165_v10 = vadd.f32 %v2431_v12, %v5869_v23 }
 0x6ec   : > { %v1867_v35 = vsel %vm1550_vm10, %v6151_v63, 0.0  ;;  %v6170_v33 = vadd.f32 %v2433_v58, %v5877_v0 }
 0x6ed   : > { %4626 = vpow2.f32 %v1847_v7  ;;  %1868 = vadd.xlane.f32.xlu2 %v1867_v35  ;;  %v2453_v22 = vsel %vm1550_vm10, %v6165_v10, -inf  ;;  %v6194_v35 = vadd.f32 %v2428_v39, %v5857_v53 }
 0x6ee   : > { %v2459_v23 = vsel %vm1550_vm10, %v6170_v33, -inf }
 0x6ef   : > { %v2444_v12 = vsel %vm1550_vm10, %v6194_v35, -inf }
 0x6f0   : > { %v1900_v42 = vpop.permute.xlu1 %1899  ;;  %v1896_v60 = vpop.permute.xlu2 %1895 }
 0x6f1   : > { %1921 = vmatpush.bf16.msra.mxu2 %v1900_v42  ;;  %4375 = vmatpush.bf16.msrb.mxu3 %v1900_v42 }
 0x6f3   : > { %v6158_v45 = vpop.eup %4626  ;;  %v1898_v46 = vpop.permute.xlu0 %1897 }
 0x6f4   : > { %v1870_v27 = vsel %vm1550_vm10, %v6158_v45, 0.0 }
 0x6f5   : > { %1871 = vadd.xlane.f32.xlu0 %v1870_v27  ;;  %2448 = vmax.xlane.f32.xlu2 %v2447_v28  ;;  %v2432_v28 = vmul.f32 0.17677669, %v2418_v56 }
 0x6f6   : > { %1922 = vmatpush.bf16.msra.mxu2 %v1898_v46  ;;  %4376 = vmatpush.bf16.msrb.mxu3 %v1898_v46  ;;  %v2430_v46 = vmul.f32 0.17677669, %v6141_v36 }
 0x6f7   : > { %v6207_v58 = vadd.f32 %v2432_v28, %v5873_v18 }
 0x6f8   : > { %v1894_v54 = vpop.permute.xlu1 %1893  ;;  %v2244_v62 = vpop.permute.xlu2 %2243 }
 0x6fa   : > { %1923 = vmatpush.bf16.msra.mxu2 %v1896_v60  ;;  %4377 = vmatpush.bf16.msrb.mxu3 %v1896_v60  ;;  %v6202_v60 = vadd.f32 %v2430_v46, %v5865_v25  ;;  %v2456_v25 = vsel %vm1550_vm10, %v6207_v58, -inf }
 0x6fc   : > { %v2450_v53 = vsel %vm1550_vm10, %v6202_v60, -inf }
 0x6fd   : > { %2454 = vmax.xlane.f32.xlu2 %v2453_v22 }
 0x6fe   : > { %1924 = vmatpush.bf16.msra.mxu2 %v1894_v54  ;;  %4378 = vmatpush.bf16.msrb.mxu3 %v1894_v54 }
 0x702   : > { %2265 = vmatpush.bf16.msrb.mxu2 %v2244_v62 }
 0x705   : > { %2460 = vmax.xlane.f32.xlu2 %v2459_v23 }
 0x709   : > { %2241 = vrot.lane.b32.xlu0 %v5692_v21, %s5140_s22 }
 0x71d   : > { %2239 = vrot.lane.b32.xlu2 %v5699_v16, %s5140_s22 }
 0x71e   : > { %v2147_v52 = vpop.xlane.xlu0 %2146 }
 0x71f   : > { %v2169_v4 = vsub.f32 %v6070_v11, %v2147_v52 }
 0x721   : > { %v2177_v2 = vmul.f32 1.442695, %v2169_v4 }
 0x723   : > { %v2150_v6 = vpop.xlane.xlu1 %2149 }
 0x724   : > { %v2170_v15 = vsub.f32 %v6077_v48, %v2150_v6 }
 0x726   : > { %v2179_v37 = vmul.f32 1.442695, %v2170_v15  ;;  %v6180_v0 = vpop.xlane.xlu0 %2152 }
 0x728   : > { %4628 = vpow2.f32 %v2179_v37 }
 0x729   : > { %4630 = vpow2.f32 %v2177_v2 }
 0x72e   : > { %v6182_v34 = vpop.eup %4628  ;;  %v6184_v17 = vpop.xlane.xlu0 %2158 }
 0x72f   : > { %v6186_v7 = vpop.eup %4630  ;;  %v2196_v11 = vsel %vm1550_vm10, %v6182_v34, 0.0 }
 0x730   : > { %2197 = vadd.xlane.f32.xlu1 %v2196_v11  ;;  %v2193_v48 = vsel %vm1550_vm10, %v6186_v7, 0.0 }
 0x733   : > { %2194 = vadd.xlane.f32.xlu0 %v2193_v48 }
 0x736   : > { %v6196_v42 = vpop.xlane.xlu0 %2164 }
 0x738   : > { %2445 = vmax.xlane.f32.xlu1 %v2444_v12  ;;  %v1854_v24 = vpop.xlane.xlu2 %1853 }
 0x739   : > { %4632 = vrcp.f32 %v1854_v24 }
 0x73e   : > { %v1851_v27 = vpop.xlane.xlu0 %1850 }
 0x73f   : > { %4634 = vrcp.f32 %v1851_v27  ;;  %v4633_v13 = vpop.eup %4632 }
 0x740   : > { %2451 = vmax.xlane.f32.xlu1 %v2450_v53  ;;  %v1882_v22 = vmul.f32 %v4633_v13, %v6113_v1  ;;  %v1857_v23 = vpop.xlane.xlu2 %1856 }
 0x745   : > { %v4635_v36 = vpop.eup %4634 }
 0x746   : > { %v1881_v54 = vmul.f32 %v4635_v36, %v6120_v14 }
 0x748   : > { %v1889_v62 = vpack.c.bf16 %v1882_v22, %v1881_v54  ;;  %2457 = vmax.xlane.f32.xlu1 %v2456_v25  ;;  %v1860_v56 = vpop.xlane.xlu0 %1859 }
 0x749   : > { %4636 = vrcp.f32 %v1860_v56 }
 0x74a   : > { %3916 = vmatmul.msk.bf16.vlgmr.msra.gmra.mxu2 %vm1550_vm10, %v1889_v62  ;;  %4638 = vrcp.f32 %v1857_v23 }
 0x74f   : > { %v4637_v52 = vpop.eup %4636 }
 0x750   : > { %v4639_v4 = vpop.eup %4638  ;;  %v1884_v18 = vmul.f32 %v4637_v52, %v6134_v40  ;;  %v1863_v1 = vpop.xlane.xlu2 %1862 }
 0x751   : > { %v1883_v6 = vmul.f32 %v4639_v4, %v6129_v8  ;;  %v2156_v40 = vpop.xlane.xlu1 %2155  ;;  %v2423_v4 = vpop.f32.mrf.mxu0 }
 0x753   : > { %v1890_v14 = vpack.c.bf16 %v1884_v18, %v1883_v6  ;;  %v2434_v18 = vmul.f32 0.17677669, %v2423_v4 }
 0x758   : > { %v1866_v15 = vpop.xlane.xlu0 %1865 }
 0x759   : > { %4640 = vrcp.f32 %v1866_v15  ;;  %v2162_v52 = vpop.xlane.xlu1 %2161 }
 0x75a   : > { %3917 = vmatmul.msk.bf16.gmra.mxu2 %vm1550_vm10, %v1890_v14  ;;  %4642 = vrcp.f32 %v1863_v1  ;;  %v2425_v1 = vpop.f32.mrf.mxu0 }
 0x75b   : > { %v2435_v15 = vmul.f32 0.17677669, %v2425_v1 }
 0x75f   : > { %v4641_v37 = vpop.eup %4640 }
 0x760   : > { %v1869_v2 = vpop.xlane.xlu2 %1868  ;;  %v4643_v39 = vpop.eup %4642  ;;  %v1886_v11 = vmul.f32 %v4641_v37, %v6146_v61  ;;  %v6254_v37 = vadd.f32 %v2435_v15, %v5885_v9 }
 0x761   : > { %2542 = vrot.lane.b32.xlu1 %v5685_v5, %s5139_s27  ;;  %v1885_v48 = vmul.f32 %v4643_v39, %v6139_v31  ;;  %4644 = vrcp.f32 %v1869_v2  ;;  %v2172_v5 = vsub.f32 %v6089_v41, %v2156_v40  ;;  %v2168_v6 = vpop.xlane.xlu1 %2167 }
 0x762   : > { %v2465_v39 = vsel %vm1550_vm10, %v6254_v37, -inf }
 0x763   : > { %v1891_v12 = vpack.c.bf16 %v1886_v11, %v1885_v48  ;;  %v2183_v31 = vmul.f32 1.442695, %v2172_v5  ;;  %v4280_v5 = vld [vmem:[#allocation7 + $0x10] sm:$0xff] }
 0x767   : > { %v4645_v28 = vpop.eup %4644 }
 0x768   : > { %v2449_v8 = vpop.xlane.xlu2 %2448  ;;  %v1872_v46 = vpop.xlane.xlu0 %1871  ;;  %v1887_v53 = vmul.f32 %v4645_v28, %v6151_v63 }
 0x769   : > { %v2469_v24 = vsub.f32 %v6156_v32, %v2449_v8  ;;  %4646 = vrcp.f32 %v1872_v46  ;;  %2237 = vrot.lane.b32.xlu1 %v5704_v30, %s5140_s22  ;;  %v4281_v8 = vld [vmem:[#allocation7 + $0x18] sm:$0xff] }
 0x76a   : > { %3918 = vmatmul.msk.bf16.gmra.mxu2 %vm1550_vm10, %v1891_v12  ;;  %1984 = vmatpush.bf16.msra.mxu3 %v4281_v8 }
 0x76b   : > { %v2478_v27 = vmul.f32 1.442695, %v2469_v24 }
 0x76d   : > { %4648 = vpow2.f32 %v2478_v27 }
 0x76e   : > { %4650 = vpow2.f32 %v2183_v31  ;;  %1985 = vmatpush.bf16.msra.mxu3 %v4280_v5  ;;  %v2175_v31 = vsub.f32 %v6106_v57, %v6196_v42 }
 0x76f   : > { %v4647_v61 = vpop.eup %4646 }
 0x770   : > { %v1888_v13 = vmul.f32 %v4647_v61, %v6158_v45  ;;  %v2455_v36 = vpop.xlane.xlu2 %2454  ;;  %v2174_v61 = vsub.f32 %v6101_v26, %v2162_v52 }
 0x771   : > { %2540 = vrot.lane.b32.xlu1 %v5692_v21, %s5139_s27  ;;  %v2471_v54 = vsub.f32 %v6165_v10, %v2455_v36  ;;  %v2189_v36 = vmul.f32 1.442695, %v2175_v31 }
 0x772   : > { %v1892_v32 = vpack.c.bf16 %v1888_v13, %v1887_v53  ;;  %v2187_v13 = vmul.f32 1.442695, %v2174_v61 }
 0x773   : > { %v6230_v22 = vpop.eup %4648  ;;  %v2482_v25 = vmul.f32 1.442695, %v2471_v54 }
 0x774   : > { %3919 = vmatmul.msk.bf16.vlgmr.msrb.gmra.mxu3 %vm1550_vm10, %v1892_v32  ;;  %v2495_v41 = vsel %vm1550_vm10, %v6230_v22, 0.0  ;;  %v6238_v45 = vpop.eup %4650 }
 0x775   : > { %2496 = vadd.xlane.f32.xlu2 %v2495_v41  ;;  %4652 = vpow2.f32 %v2482_v25  ;;  %v2202_v10 = vsel %vm1550_vm10, %v6238_v45, 0.0 }
 0x778   : > { %v6236_v63 = vpop.xlane.xlu2 %2460 }
 0x779   : > { %2538 = vrot.lane.b32.xlu1 %v5699_v16, %s5139_s27  ;;  %v6249_v16 = vadd.f32 %v2434_v18, %v5881_v3  ;;  %v2171_v3 = vsub.f32 %v6080_v59, %v6180_v0  ;;  %v2473_v26 = vsub.f32 %v6170_v33, %v6236_v63 }
 0x77b   : > { %v2242_v21 = vpop.permute.xlu0 %2241  ;;  %v6244_v56 = vpop.eup %4652  ;;  %v2462_v14 = vsel %vm1550_vm10, %v6249_v16, -inf  ;;  %v2181_v46 = vmul.f32 1.442695, %v2171_v3  ;;  %v2486_v54 = vmul.f32 1.442695, %v2473_v26 }
 0x77c   : > { %2266 = vmatpush.bf16.msrb.mxu2 %v2242_v21  ;;  %v2501_v23 = vsel %vm1550_vm10, %v6244_v56, 0.0 }
 0x77d   : > { %2203 = vadd.xlane.f32.xlu2 %v2202_v10  ;;  %v2176_v10 = vsub.f32 %v6116_v47, %v2168_v6 }
 0x780   : > { %v2240_v62 = vpop.permute.xlu2 %2239 }
 0x781   : > { %2267 = vmatpush.bf16.msrb.mxu2 %v2240_v62  ;;  %v2191_v62 = vmul.f32 1.442695, %v2176_v10 }
 0x785   : > { %2502 = vadd.xlane.f32.xlu2 %v2501_v23 }
 0x7a3   : > { %v2198_v2 = vpop.xlane.xlu1 %2197  ;;  %2463 = vmax.xlane.f32.xlu1 %v2462_v14 }
 0x7ab   : > { %v2446_v11 = vpop.xlane.xlu1 %2445  ;;  %2466 = vmax.xlane.f32.xlu1 %v2465_v39 }
 0x7ac   : > { %v2468_v48 = vsub.f32 %v6194_v35, %v2446_v11  ;;  %v2173_v11 = vsub.f32 %v6092_v44, %v6184_v17 }
 0x7ae   : > { %v2476_v40 = vmul.f32 1.442695, %v2468_v48  ;;  %v2185_v8 = vmul.f32 1.442695, %v2173_v11 }
 0x7b0   : > { %4654 = vpow2.f32 %v2476_v40 }
 0x7b1   : > { %4656 = vpow2.f32 %v2181_v46 }
 0x7b3   : > { %v2452_v12 = vpop.xlane.xlu1 %2451 }
 0x7b4   : > { %v2470_v9 = vsub.f32 %v6202_v60, %v2452_v12 }
 0x7b6   : > { %v6261_v24 = vpop.eup %4654  ;;  %v2480_v35 = vmul.f32 1.442695, %v2470_v9 }
 0x7b7   : > { %v2492_v27 = vsel %vm1550_vm10, %v6261_v24, 0.0  ;;  %v6266_v59 = vpop.eup %4656 }
 0x7b8   : > { %2493 = vadd.xlane.f32.xlu0 %v2492_v27  ;;  %4658 = vpow2.f32 %v2480_v35  ;;  %v2199_v60 = vsel %vm1550_vm10, %v6266_v59, 0.0 }
 0x7bb   : > { %v2458_v28 = vpop.xlane.xlu1 %2457 }
 0x7bc   : > { %v2472_v0 = vsub.f32 %v6207_v58, %v2458_v28 }
 0x7be   : > { %v2484_v53 = vmul.f32 1.442695, %v2472_v0  ;;  %v6274_v32 = vpop.eup %4658 }
 0x7bf   : > { %v2498_v42 = vsel %vm1550_vm10, %v6274_v32, 0.0 }
 0x7c0   : > { %4660 = vpow2.f32 %v2484_v53  ;;  %2200 = vadd.xlane.f32.xlu0 %v2199_v60 }
 0x7c1   : > { %4662 = vpow2.f32 %v2187_v13 }
 0x7c2   : > { %4664 = vpow2.f32 %v2189_v36 }
 0x7c3   : > { %4666 = vpow2.f32 %v2486_v54 }
 0x7c4   : > { %2536 = vrot.lane.b32.xlu1 %v5704_v30, %s5139_s27  ;;  %v2195_v30 = vpop.xlane.xlu0 %2194  ;;  %s5052_s27 = scalar_lea.hbm %s6517_s25, 128 }
 0x7c5   : > { %4668 = vrcp.f32 %v2195_v30  ;;  %p5054_p8 = scmp.lt.s32.totalorder %s5052_s27, %s5048_s19 }
 0x7c6   : > { %v6278_v58 = vpop.eup %4660  ;;  %4670 = vrcp.f32 %v2198_v2 }
 0x7c7   : > { %v2504_v57 = vsel %vm1550_vm10, %v6278_v58, 0.0  ;;  %v6286_v41 = vpop.eup %4662  ;;  %4672 = vpow2.f32 %v2191_v62  ;;  %p5055_p7 = por %p5054_p8, %p5053_p12 }
 0x7c8   : > { %2505 = vadd.xlane.f32.xlu2 %v2504_v57  ;;  %2499 = vadd.xlane.f32.xlu0 %v2498_v42  ;;  %v6288_v25 = vpop.eup %4664  ;;  %v2208_v33 = vsel %vm1550_vm10, %v6286_v41, 0.0  ;;  %4674 = vpow2.f32 %v2185_v8 }
 0x7c9   : > { %v2211_v63 = vsel %vm1550_vm10, %v6288_v25, 0.0  ;;  %v6295_v52 = vpop.eup %4666  ;;  %p5056_p9 = pnand %p5055_p7, %p5051_p5 }
 0x7ca   : > { %v2507_v6 = vsel %vm1550_vm10, %v6295_v52, 0.0 }
 0x7cb   : > { %v4669_v18 = vpop.eup %4668 }
 0x7cc   : > { %v4671_v1 = vpop.eup %4670  ;;  %v2225_v15 = vmul.f32 %v4669_v18, %v6186_v7 }
 0x7cd   : > { %v1926_v21 = vpop.f32.mrf.mxu2  ;;  %v2226_v14 = vmul.f32 %v4671_v1, %v6182_v34  ;;  %v6302_v39 = vpop.eup %4672 }
 0x7ce   : > { %v2214_v40 = vsel %vm1550_vm10, %v6302_v39, 0.0  ;;  %v6310_v12 = vpop.eup %4674 }
 0x7cf   : > { %v2233_v48 = vpack.c.bf16 %v2226_v14, %v2225_v15  ;;  %v2205_v9 = vsel %vm1550_vm10, %v6310_v12, 0.0 }
 0x7d0   : > { %2209 = vadd.xlane.f32.xlu0 %v2208_v33  ;;  %2212 = vadd.xlane.f32.xlu2 %v2211_v63 }
 0x7d3   : > { %v2543_v23 = vpop.permute.xlu1 %2542 }
 0x7d4   : > { %2564 = vmatpush.bf16.msra.mxu1 %v2543_v23 }
 0x7d5   : > { %v1928_v4 = vpop.f32.mrf.mxu2 }
 0x7d6   : > { %v1946_v47 = vpack.c.bf16 %v1928_v4, %v1926_v21 }
 0x7d8   : > { %2508 = vadd.xlane.f32.xlu0 %v2507_v6  ;;  %3928 = vmatmul.msk.bf16.vlgmr.msra.gmra.mxu3 %vm1480_vm9, %v1946_v47 }
 0x7db   : > { %v2238_v2 = vpop.permute.xlu1 %2237 }
 0x7dc   : > { %2268 = vmatpush.bf16.msrb.mxu2 %v2238_v2 }
 0x7dd   : > { %v1931_v3 = vpop.f32.mrf.mxu2 }
 0x7df   : > { %3948 = vmatmul.msk.bf16.vlgmr.msrb.gmra.mxu2 %vm1550_vm10, %v2233_v48 }
 0x7e0   : > { %2215 = vadd.xlane.f32.xlu0 %v2214_v40  ;;  %v4283_v40 = vld [vmem:[#allocation7 + $0x28] sm:$0xff] }
 0x7e1   : > { %2328 = vmatpush.bf16.msrb.mxu3 %v4283_v40 }
 0x7e3   : > { %v2541_v46 = vpop.permute.xlu1 %2540 }
 0x7e4   : > { %2565 = vmatpush.bf16.msra.mxu1 %v2541_v46 }
 0x7e5   : > { %v1933_v34 = vpop.f32.mrf.mxu2 }
 0x7e6   : > { %v1947_v7 = vpack.c.bf16 %v1933_v34, %v1931_v3 }
 0x7e8   : > { %3929 = vmatmul.msk.bf16.gmra.mxu3 %vm1480_vm9, %v1947_v7  ;;  %v2497_v42 = vpop.xlane.xlu2 %2496 }
 0x7eb   : > { %v2539_v44 = vpop.permute.xlu1 %2538 }
 0x7ec   : > { %2566 = vmatpush.bf16.msra.mxu1 %v2539_v44 }
 0x7ed   : > { %v1936_v17 = vpop.f32.mrf.mxu2 }
 0x7ee   : > { %2206 = vadd.xlane.f32.xlu1 %v2205_v9 }
 0x7f0   : > { %v2204_v21 = vpop.xlane.xlu2 %2203 }
 0x7f5   : > { %v1938_v5 = vpop.f32.mrf.mxu2 }
 0x7f6   : > { %v1948_v27 = vpack.c.bf16 %v1938_v5, %v1936_v17 }
 0x7f7   : > { %v1941_v35 = vpop.f32.mrf.mxu3 }
 0x7f8   : > { %3930 = vmatmul.msk.bf16.gmra.mxu3 %vm1480_vm9, %v1948_v27  ;;  %v2503_v47 = vpop.xlane.xlu2 %2502 }
 0x7ff   : > { %v1943_v28 = vpop.f32.mrf.mxu3 }
 0x800   : > { %v1949_v0 = vpack.c.bf16 %v1943_v28, %v1941_v35 }
 0x808   : > { %3931 = vmatmul.msk.bf16.gmra.mxu3 %vm1480_vm9, %v1949_v0 }
 0x816   : > { %v2464_v61 = vpop.xlane.xlu1 %2463 }
 0x817   : > { %v2474_v31 = vsub.f32 %v6249_v16, %v2464_v61 }
 0x819   : > { %v2488_v53 = vmul.f32 1.442695, %v2474_v31 }
 0x81b   : > { %4676 = vpow2.f32 %v2488_v53 }
 0x81e   : > { %v2467_v60 = vpop.xlane.xlu1 %2466 }
 0x81f   : > { %v2475_v13 = vsub.f32 %v6254_v37, %v2467_v60 }
 0x821   : > { %v6318_v36 = vpop.eup %4676  ;;  %v2490_v26 = vmul.f32 1.442695, %v2475_v13 }
 0x822   : > { %v2510_v57 = vsel %vm1550_vm10, %v6318_v36, 0.0 }
 0x823   : > { %4678 = vpow2.f32 %v2490_v26  ;;  %2511 = vadd.xlane.f32.xlu2 %v2510_v57 }
 0x829   : > { %v6322_v54 = vpop.eup %4678 }
 0x82a   : > { %v2513_v30 = vsel %vm1550_vm10, %v6322_v54, 0.0 }
 0x82b   : > { %2514 = vadd.xlane.f32.xlu0 %v2513_v30  ;;  %v2494_v16 = vpop.xlane.xlu0 %2493  ;;  %v4284_v30 = vld [vmem:[#allocation7 + $0x30] sm:$0xff] }
 0x82c   : > { %4680 = vrcp.f32 %v2494_v16 }
 0x82d   : > { %4682 = vrcp.f32 %v2497_v42 }
 0x82e   : > { %4684 = vrcp.f32 %v2204_v21 }
 0x832   : > { %v4681_v37 = vpop.eup %4680 }
 0x833   : > { %v4683_v10 = vpop.eup %4682  ;;  %v2201_v33 = vpop.xlane.xlu0 %2200  ;;  %v2524_v63 = vmul.f32 %v4681_v37, %v6261_v24 }
 0x834   : > { %4686 = vrcp.f32 %v2201_v33  ;;  %v2525_v62 = vmul.f32 %v4683_v10, %v6230_v22  ;;  %v4685_v4 = vpop.eup %4684 }
 0x835   : > { %v2228_v1 = vmul.f32 %v4685_v4, %v6238_v45  ;;  %4688 = vrcp.f32 %v2503_v47 }
 0x836   : > { %v2537_v23 = vpop.permute.xlu1 %2536  ;;  %v2532_v18 = vpack.c.bf16 %v2525_v62, %v2524_v63 }
 0x837   : > { %2567 = vmatpush.bf16.msra.mxu1 %v2537_v23 }
 0x83a   : > { %v4687_v6 = vpop.eup %4686  ;;  %3968 = vmatmul.msk.bf16.vlgmr.msra.gmra.mxu1 %vm1550_vm10, %v2532_v18 }
 0x83b   : > { %v2227_v15 = vmul.f32 %v4687_v6, %v6266_v59  ;;  %v2500_v14 = vpop.xlane.xlu0 %2499  ;;  %v4689_v24 = vpop.eup %4688  ;;  %v4282_v59 = vld [vmem:[#allocation7 + $0x20] sm:$0xff] }
 0x83c   : > { %4690 = vrcp.f32 %v2500_v14  ;;  %v2527_v3 = vmul.f32 %v4689_v24, %v6244_v56  ;;  %v2506_v46 = vpop.xlane.xlu2 %2505  ;;  %2329 = vmatpush.bf16.msrb.mxu3 %v4282_v59 }
 0x83d   : > { %v2234_v2 = vpack.c.bf16 %v2228_v1, %v2227_v15 }
 0x83f   : > { %3949 = vmatmul.msk.bf16.gmra.mxu2 %vm1550_vm10, %v2234_v2 }
 0x842   : > { %v4691_v22 = vpop.eup %4690 }
 0x843   : > { %v2210_v11 = vpop.xlane.xlu0 %2209  ;;  %v2526_v48 = vmul.f32 %v4691_v22, %v6274_v32 }
 0x845   : > { %v2533_v8 = vpack.c.bf16 %v2527_v3, %v2526_v48 }
 0x84a   : > { %3969 = vmatmul.msk.bf16.gmra.mxu1 %vm1550_vm10, %v2533_v8 }
 0x84b   : > { %v2509_v45 = vpop.xlane.xlu0 %2508 }
 0x84c   : > { %4692 = vrcp.f32 %v2509_v45 }
 0x84d   : > { %4694 = vrcp.f32 %v2506_v46 }
 0x84e   : > { %4696 = vrcp.f32 %v2210_v11 }
 0x852   : > { %v4693_v34 = vpop.eup %4692 }
 0x853   : > { %v4695_v7 = vpop.eup %4694  ;;  %v2529_v44 = vmul.f32 %v4693_v34, %v6295_v52  ;;  %v2216_v61 = vpop.xlane.xlu0 %2215 }
 0x854   : > { %v2528_v17 = vmul.f32 %v4695_v7, %v6278_v58  ;;  %v4697_v5 = vpop.eup %4696  ;;  %v2213_v52 = vpop.xlane.xlu2 %2212 }
 0x855   : > { %v2230_v35 = vmul.f32 %v4697_v5, %v6286_v41 }
 0x856   : > { %v2534_v32 = vpack.c.bf16 %v2529_v44, %v2528_v17 }
 0x85a   : > { %3970 = vmatmul.msk.bf16.gmra.mxu1 %vm1550_vm10, %v2534_v32 }
 0x85b   : > { %v1987_v15 = vpop.f32.mrf.mxu3 }
 0x861   : > { %v2207_v56 = vpop.xlane.xlu1 %2206 }
 0x862   : > { %4698 = vrcp.f32 %v2207_v56  ;;  %v2270_v9 = vpop.f32.mrf.mxu2  ;;  %v2041_v56 = vadd.f32 %v6049_v49, %v1987_v15 }
 0x863   : > { %4700 = vrcp.f32 %v2216_v61  ;;  %v1989_v22 = vpop.f32.mrf.mxu3 }
 0x864   : > { %4702 = vrcp.f32 %v2213_v52  ;;  %v2043_v61 = vadd.f32 %v6053_v19, %v1989_v22 }
 0x868   : > { %v4699_v27 = vpop.eup %4698 }
 0x869   : > { %v2229_v28 = vmul.f32 %v4699_v27, %v6310_v12  ;;  %v4701_v58 = vpop.eup %4700  ;;  %v4285_v12 = vld [vmem:[#allocation7 + $0x38] sm:$0xff] }
 0x86a   : > { %v2272_v0 = vpop.f32.mrf.mxu2  ;;  %v4703_v60 = vpop.eup %4702  ;;  %v2232_v13 = vmul.f32 %v4701_v58, %v6302_v39  ;;  %2627 = vmatpush.bf16.msra.mxu2 %v4285_v12 }
 0x86b   : > { %v2290_v31 = vpack.c.bf16 %v2272_v0, %v2270_v9  ;;  %v2235_v53 = vpack.c.bf16 %v2230_v35, %v2229_v28  ;;  %v2231_v26 = vmul.f32 %v4703_v60, %v6288_v25  ;;  %v1992_v48 = vpop.f32.mrf.mxu3  ;;  %v4724_v28 = vld [vmem:[%s5356_s18] sm:$0xff]  ;;  %v4725_v60 = vld [vmem:[%s5356_s18 + $0x8] sm:$0xff] }
 0x86d   : > { %3950 = vmatmul.msk.bf16.gmra.mxu2 %vm1550_vm10, %v2235_v53  ;;  %3960 = vmatmul.msk.bf16.vlgmr.msrb.gmra.mxu3 %vm1480_vm9, %v2290_v31  ;;  %v2236_v41 = vpack.c.bf16 %v2232_v13, %v2231_v26  ;;  %v2046_v26 = vadd.f32 %v6059_v55, %v1992_v48  ;;  %v4316_v48 = vld [vmem:[#allocation8 + $0xec] sm:$0xf0] }
 0x86e   : > { %2628 = vmatpush.bf16.msra.mxu2 %v4284_v30 }
 0x873   : > { %v1994_v8 = vpop.f32.mrf.mxu3 }
 0x87b   : > { %v1997_v46 = vpop.f32.mrf.mxu3 }
 0x87d   : > { %3951 = vmatmul.msk.bf16.gmra.mxu2 %vm1550_vm10, %v2236_v41 }
 0x883   : > { %v1999_v45 = vpop.f32.mrf.mxu3 }
 0x88b   : > { %v6354_v34 = vpop.f32.mrf.mxu3 }
 0x893   : > { %v6357_v17 = vpop.f32.mrf.mxu3 }
 0x896   : > { %v2512_v57 = vpop.xlane.xlu2 %2511 }
 0x897   : > { %4704 = vrcp.f32 %v2512_v57 }
 0x89d   : > { %v4705_v16 = vpop.eup %4704 }
 0x89e   : > { %v2515_v42 = vpop.xlane.xlu0 %2514  ;;  %v2530_v37 = vmul.f32 %v4705_v16, %v6318_v36 }
 0x89f   : > { %4706 = vrcp.f32 %v2515_v42  ;;  %v4726_v42 = vld [vmem:[%s5356_s18 + $0x10] sm:$0xff] }
 0x8a5   : > { %v4707_v21 = vpop.eup %4706 }
 0x8a6   : > { %v2531_v10 = vmul.f32 %v4707_v21, %v6322_v54  ;;  %v2048_v21 = vadd.f32 %v6063_v51, %v1994_v8  ;;  %v4106_v8 = vld [vmem:[#allocation8 + $0xe8] sm:$0xf] }
 0x8a8   : > { %v2535_v39 = vpack.c.bf16 %v2531_v10, %v2530_v37 }
 0x8aa   : > { %3971 = vmatmul.msk.bf16.gmra.mxu1 %vm1550_vm10, %v2535_v39 }
 0x8b7   : > { %v2569_v25 = vpop.f32.mrf.mxu1 }
 0x8bf   : > { %v2571_v33 = vpop.f32.mrf.mxu1 }
 0x8c0   : > { %v2589_v63 = vpack.c.bf16 %v2571_v33, %v2569_v25  ;;  %v4727_v25 = vld [vmem:[%s5356_s18 + $0x18] sm:$0xff] }
 0x8c2   : > { %v2275_v62 = vpop.f32.mrf.mxu2  ;;  %3980 = vmatmul.msk.bf16.vlgmr.msra.gmra.mxu2 %vm1480_vm9, %v2589_v63 }
 0x8c7   : > { %v2574_v23 = vpop.f32.mrf.mxu1 }
 0x8ca   : > { %v2277_v4 = vpop.f32.mrf.mxu2 }
 0x8cb   : > { %v2291_v18 = vpack.c.bf16 %v2277_v4, %v2275_v62  ;;  %v2051_v62 = vadd.f32 %v6067_v20, %v1997_v46  ;;  %v4317_v46 = vld [vmem:[#allocation8 + $0xf4] sm:$0xf0] }
 0x8cd   : > { %3961 = vmatmul.msk.bf16.gmra.mxu3 %vm1480_vm9, %v2291_v18 }
 0x8cf   : > { %v2576_v47 = vpop.f32.mrf.mxu1 }
 0x8d0   : > { %v2590_v6 = vpack.c.bf16 %v2576_v47, %v2574_v23  ;;  %v4728_v47 = vld [vmem:[%s5356_s18 + $0x20] sm:$0xff] }
 0x8d2   : > { %3981 = vmatmul.msk.bf16.gmra.mxu2 %vm1480_vm9, %v2590_v6 }
 0x8d7   : > { %v2579_v36 = vpop.f32.mrf.mxu1 }
 0x8df   : > { %v2581_v54 = vpop.f32.mrf.mxu1 }
 0x8e0   : > { %v2591_v1 = vpack.c.bf16 %v2581_v54, %v2579_v36  ;;  %v2053_v36 = vadd.f32 %v6072_v43, %v1999_v45  ;;  %v4100_v43 = vld [vmem:[#allocation8 + $0xf0] sm:$0xf0] }
 0x8e2   : > { %3982 = vmatmul.msk.bf16.gmra.mxu2 %vm1480_vm9, %v2591_v1 }
 0x8f0   : > { %v2280_v14 = vpop.f32.mrf.mxu2  ;;  %v2331_v32 = vpop.f32.mrf.mxu3 }
 0x8f1   : > { %v2351_v9 = vadd.f32 %v2331_v32, %v2041_v56  ;;  %v4082_v56 = vld [vmem:[#allocation8 + $0xc0] sm:$0xf] }
 0x8f8   : > { %v2282_v2 = vpop.f32.mrf.mxu2  ;;  %v2333_v35 = vpop.f32.mrf.mxu3 }
 0x8f9   : > { %v2292_v24 = vpack.c.bf16 %v2282_v2, %v2280_v14  ;;  %v2352_v53 = vadd.f32 %v2333_v35, %v2043_v61  ;;  %v4084_v35 = vld [vmem:[#allocation8 + $0xd0] sm:$0xf0]  ;;  %v4313_v61 = vld [vmem:[#allocation8 + $0xd4] sm:$0xf0] }
 0x8fb   : > { %3962 = vmatmul.msk.bf16.gmra.mxu3 %vm1480_vm9, %v2292_v24  ;;  %v4729_v24 = vld [vmem:[%s5356_s18 + $0x28] sm:$0xff] }
 0x900   : > { %v2285_v11 = vpop.f32.mrf.mxu2 }
 0x908   : > { %v2287_v3 = vpop.f32.mrf.mxu2 }
 0x909   : > { %v2293_v40 = vpack.c.bf16 %v2287_v3, %v2285_v11  ;;  %v4098_v11 = vld [vmem:[#allocation8 + $0xe0] sm:$0xf]  ;;  %v4314_v3 = vld [vmem:[#allocation8 + $0xe4] sm:$0xf] }
 0x90a   : > { %v4103_v45 = vor.u32 %v4314_v3, %v4100_v43  ;;  %v4036_v3 = vld [vmem:[#allocation8 + $0x70] sm:$0xf0]  ;;  %v4301_v43 = vld [vmem:[#allocation8 + $0x74] sm:$0xf0] }
 0x90b   : > { %3963 = vmatmul.msk.bf16.gmra.mxu3 %vm1480_vm9, %v2293_v40  ;;  %v4099_v40 = vor.u32 %v4316_v48, %v4098_v11 }
 0x90c   : > { %3019 = vmatpush.bf16.msra.mxu0 %v4103_v45 }
 0x90d   : > { %2990 = vmatpush.bf16.msra.mxu3 %v4099_v40  ;;  %v4042_v40 = vld [vmem:[#allocation8 + $0x68] sm:$0xf] }
 0x90e   : > { %v4043_v45 = vor.u32 %v4301_v43, %v4042_v40 }
 0x927   : > { %v2584_v59 = vpop.f32.mrf.mxu1 }
 0x92f   : > { %v2586_v7 = vpop.f32.mrf.mxu1 }
 0x930   : > { %v2592_v44 = vpack.c.bf16 %v2586_v7, %v2584_v59  ;;  %v4107_v59 = vor.u32 %v4317_v46, %v4106_v8  ;;  %v4315_v7 = vld [vmem:[#allocation8 + $0xec] sm:$0xf] }
 0x932   : > { %3983 = vmatmul.msk.bf16.gmra.mxu2 %vm1480_vm9, %v2592_v44  ;;  %v4108_v44 = vld [vmem:[#allocation8 + $0xf8] sm:$0xf0]  ;;  %3048 = vmatpush.bf16.msrb.mxu1 %v4107_v59  ;;  %v4299_v59 = vld [vmem:[#allocation8 + $0x6c] sm:$0xf] }
 0x933   : > { %v4111_v32 = vor.u32 %v4315_v7, %v4108_v44  ;;  %v4044_v7 = vld [vmem:[#allocation8 + $0x78] sm:$0xf0]  ;;  %v4018_v44 = vld [vmem:[#allocation8 + $0x40] sm:$0xf] }
 0x935   : > { %3077 = vmatpush.bf16.msrb.mxu2 %v4111_v32  ;;  %v4296_v32 = vld [vmem:[#allocation8 + $0x4c] sm:$0xf0] }
 0x945   : > { %v2630_v5 = vpop.f32.mrf.mxu2 }
 0x946   : > { %v2650_v27 = vadd.f32 %v2630_v5, %v2351_v9  ;;  %v4312_v9 = vld [vmem:[#allocation8 + $0xcc] sm:$0xf0]  ;;  %v4310_v5 = vld [vmem:[#allocation8 + $0xc4] sm:$0xf] }
 0x948   : > { %v6361_v0 = vadd.f32 %v4724_v28, %v2650_v27  ;;  %v4083_v27 = vor.u32 %v4312_v9, %v4082_v56  ;;  %v4090_v28 = vld [vmem:[#allocation8 + $0xc8] sm:$0xf]  ;;  %v4294_v56 = vld [vmem:[#allocation8 + $0x44] sm:$0xf]  ;;  %v4730_v9 = vld [vmem:[%s5356_s18 + $0x30] sm:$0xff] }
 0x94a   : > { %v2666_v31 = vmul.f32 %v6361_v0, %v6361_v0  ;;  %2991 = vmatpush.bf16.msra.mxu3 %v4083_v27  ;;  %v4019_v27 = vor.u32 %v4296_v32, %v4018_v44 }
 0x94c   : > { %2674 = vadd.xlane.f32.xlu2 %v2666_v31  ;;  %v4087_v31 = vor.u32 %v4310_v5, %v4084_v35  ;;  %v4020_v35 = vld [vmem:[#allocation8 + $0x50] sm:$0xf0] }
 0x94d   : > { %v2632_v52 = vpop.f32.mrf.mxu2 }
 0x94e   : > { %v2651_v58 = vadd.f32 %v2632_v52, %v2352_v53  ;;  %v4091_v53 = vor.u32 %v4313_v61, %v4090_v28  ;;  %v4311_v52 = vld [vmem:[#allocation8 + $0xcc] sm:$0xf]  ;;  %3020 = vmatpush.bf16.msra.mxu0 %v4087_v31  ;;  %v4026_v28 = vld [vmem:[#allocation8 + $0x48] sm:$0xf]  ;;  %v4297_v61 = vld [vmem:[#allocation8 + $0x54] sm:$0xf0] }
 0x950   : > { %v6367_v13 = vadd.f32 %v4725_v60, %v2651_v58  ;;  %v2336_v49 = vpop.f32.mrf.mxu3  ;;  %v4092_v58 = vld [vmem:[#allocation8 + $0xd8] sm:$0xf0]  ;;  %3049 = vmatpush.bf16.msrb.mxu1 %v4091_v53  ;;  %v4023_v53 = vor.u32 %v4294_v56, %v4020_v35 }
 0x951   : > { %v2353_v12 = vadd.f32 %v2336_v49, %v2046_v26  ;;  %v4095_v60 = vor.u32 %v4311_v52, %v4092_v58  ;;  %v4066_v49 = vld [vmem:[#allocation8 + $0xa0] sm:$0xf]  ;;  %v4308_v26 = vld [vmem:[#allocation8 + $0xac] sm:$0xf0]  ;;  %v4027_v52 = vor.u32 %v4297_v61, %v4026_v28  ;;  %v4295_v58 = vld [vmem:[#allocation8 + $0x4c] sm:$0xf] }
 0x952   : > { %v2667_v41 = vmul.f32 %v6367_v13, %v6367_v13 }
 0x953   : > { %3078 = vmatpush.bf16.msrb.mxu2 %v4095_v60  ;;  %v4028_v60 = vld [vmem:[#allocation8 + $0x58] sm:$0xf0] }
 0x954   : > { %2676 = vadd.xlane.f32.xlu0 %v2667_v41  ;;  %v4306_v41 = vld [vmem:[#allocation8 + $0xa4] sm:$0xf] }
 0x955   : > { %v2635_v19 = vpop.f32.mrf.mxu2 }
 0x956   : > { %v2652_v57 = vadd.f32 %v2635_v19, %v2353_v12  ;;  %v4067_v12 = vor.u32 %v4308_v26, %v4066_v49  ;;  %v4068_v19 = vld [vmem:[#allocation8 + $0xb0] sm:$0xf0]  ;;  %v2058_v49 = vadd.f32 %v6103_v38, %v6357_v17 }
 0x958   : > { %v6373_v30 = vadd.f32 %v4726_v42, %v2652_v57  ;;  %v2338_v16 = vpop.f32.mrf.mxu3  ;;  %v4074_v57 = vld [vmem:[#allocation8 + $0xa8] sm:$0xf]  ;;  %v4309_v42 = vld [vmem:[#allocation8 + $0xb4] sm:$0xf0]  ;;  %2992 = vmatpush.bf16.msra.mxu3 %v4067_v12  ;;  %v4002_v12 = vld [vmem:[#allocation8 + $0x20] sm:$0xf] }
 0x959   : > { %v2354_v10 = vadd.f32 %v2338_v16, %v2048_v21  ;;  %v4071_v16 = vor.u32 %v4306_v41, %v4068_v19  ;;  %v4075_v21 = vor.u32 %v4309_v42, %v4074_v57  ;;  %v4031_v41 = vor.u32 %v4295_v58, %v4028_v60  ;;  %v4292_v19 = vld [vmem:[#allocation8 + $0x2c] sm:$0xf0]  ;;  %v4290_v57 = vld [vmem:[#allocation8 + $0x24] sm:$0xf] }
 0x95a   : > { %v2668_v37 = vmul.f32 %v6373_v30, %v6373_v30 }
 0x95b   : > { %3021 = vmatpush.bf16.msra.mxu0 %v4071_v16  ;;  %3050 = vmatpush.bf16.msrb.mxu1 %v4075_v21  ;;  %v4003_v16 = vor.u32 %v4292_v19, %v4002_v12  ;;  %v4004_v21 = vld [vmem:[#allocation8 + $0x30] sm:$0xf0] }
 0x95c   : > { %2678 = vadd.xlane.f32.xlu2 %v2668_v37  ;;  %v4307_v37 = vld [vmem:[#allocation8 + $0xac] sm:$0xf]  ;;  %v4007_v38 = vor.u32 %v4290_v57, %v4004_v21 }
 0x95d   : > { %v2637_v55 = vpop.f32.mrf.mxu2 }
 0x95e   : > { %v2653_v39 = vadd.f32 %v2637_v55, %v2354_v10  ;;  %v4076_v10 = vld [vmem:[#allocation8 + $0xb8] sm:$0xf0] }
 0x95f   : > { %v4079_v55 = vor.u32 %v4307_v37, %v4076_v10  ;;  %v4010_v37 = vld [vmem:[#allocation8 + $0x28] sm:$0xf]  ;;  %v4293_v10 = vld [vmem:[#allocation8 + $0x34] sm:$0xf0] }
 0x960   : > { %v6379_v33 = vadd.f32 %v4727_v25, %v2653_v39  ;;  %v4050_v25 = vld [vmem:[#allocation8 + $0x80] sm:$0xf]  ;;  %v4011_v17 = vor.u32 %v4293_v10, %v4010_v37 }
 0x961   : > { %3079 = vmatpush.bf16.msrb.mxu2 %v4079_v55 }
 0x962   : > { %v2669_v63 = vmul.f32 %v6379_v33, %v6379_v33 }
 0x964   : > { %2680 = vadd.xlane.f32.xlu1 %v2669_v63  ;;  %v4304_v63 = vld [vmem:[#allocation8 + $0x8c] sm:$0xf0] }
 0x965   : > { %v2640_v23 = vpop.f32.mrf.mxu2 }
 0x96d   : > { %v2642_v14 = vpop.f32.mrf.mxu2 }
 0x97e   : > { %v2341_v4 = vpop.f32.mrf.mxu3 }
 0x97f   : > { %v2355_v51 = vadd.f32 %v2341_v4, %v2051_v62  ;;  %v4302_v62 = vld [vmem:[#allocation8 + $0x84] sm:$0xf]  ;;  %v4052_v4 = vld [vmem:[#allocation8 + $0x90] sm:$0xf0] }
 0x981   : > { %v2654_v18 = vadd.f32 %v2640_v23, %v2355_v51  ;;  %v4051_v23 = vor.u32 %v4304_v63, %v4050_v25  ;;  %v4058_v51 = vld [vmem:[#allocation8 + $0x88] sm:$0xf]  ;;  %v4012_v25 = vld [vmem:[#allocation8 + $0x38] sm:$0xf0] }
 0x983   : > { %v6385_v6 = vadd.f32 %v4728_v47, %v2654_v18  ;;  %v4305_v18 = vld [vmem:[#allocation8 + $0x94] sm:$0xf0]  ;;  %v4055_v47 = vor.u32 %v4302_v62, %v4052_v4  ;;  %2993 = vmatpush.bf16.msra.mxu3 %v4051_v23  ;;  %v3986_v4 = vld [vmem:[#allocation8] sm:$0xf] }
 0x985   : > { %v2670_v54 = vmul.f32 %v6385_v6, %v6385_v6  ;;  %3022 = vmatpush.bf16.msra.mxu0 %v4055_v47  ;;  %v4731_v47 = vld [vmem:[%s5356_s18 + $0x38] sm:$0xff] }
 0x986   : > { %v2343_v1 = vpop.f32.mrf.mxu3 }
 0x987   : > { %v2356_v15 = vadd.f32 %v2343_v1, %v2053_v36  ;;  %2682 = vadd.xlane.f32.xlu0 %v2670_v54  ;;  %v4059_v36 = vor.u32 %v4305_v18, %v4058_v51  ;;  %v4303_v54 = vld [vmem:[#allocation8 + $0x8c] sm:$0xf]  ;;  %v4060_v1 = vld [vmem:[#allocation8 + $0x98] sm:$0xf0]  ;;  %v4288_v51 = vld [vmem:[#allocation8 + $0xc] sm:$0xf0] }
 0x988   : > { %v4286_v18 = vld [vmem:[#allocation8 + $0x4] sm:$0xf] }
 0x989   : > { %v2655_v2 = vadd.f32 %v2642_v14, %v2356_v15  ;;  %v2056_v15 = vadd.f32 %v6086_v50, %v6354_v34  ;;  %v4063_v14 = vor.u32 %v4303_v54, %v4060_v1  ;;  %3051 = vmatpush.bf16.msrb.mxu1 %v4059_v36  ;;  %v4047_v34 = vor.u32 %v4299_v59, %v4044_v7 }
 0x98a   : > { %v3987_v1 = vor.u32 %v4288_v51, %v3986_v4 }
 0x98b   : > { %v6391_v22 = vadd.f32 %v4729_v24, %v2655_v2  ;;  %v4034_v2 = vld [vmem:[#allocation8 + $0x60] sm:$0xf]  ;;  %v4300_v24 = vld [vmem:[#allocation8 + $0x6c] sm:$0xf0]  ;;  %3080 = vmatpush.bf16.msrb.mxu2 %v4063_v14  ;;  %v3994_v14 = vld [vmem:[#allocation8 + $0x8] sm:$0xf] }
 0x98c   : > { %v4035_v48 = vor.u32 %v4300_v24, %v4034_v2  ;;  %v4289_v2 = vld [vmem:[#allocation8 + $0x14] sm:$0xf0] }
 0x98d   : > { %v2671_v20 = vmul.f32 %v6391_v22, %v6391_v22  ;;  %3052 = vmatpush.bf16.msrb.mxu1 %v4043_v45 }
 0x98e   : > { %v2346_v39 = vpop.f32.mrf.mxu3  ;;  %2994 = vmatpush.bf16.msra.mxu3 %v4035_v48  ;;  %v3996_v48 = vld [vmem:[#allocation8 + $0x18] sm:$0xf0] }
 0x98f   : > { %2684 = vadd.xlane.f32.xlu2 %v2671_v20  ;;  %v4298_v20 = vld [vmem:[#allocation8 + $0x64] sm:$0xf]  ;;  %v2357_v11 = vadd.f32 %v2346_v39, %v2056_v15  ;;  %3081 = vmatpush.bf16.msrb.mxu2 %v4047_v34  ;;  %v4291_v39 = vld [vmem:[#allocation8 + $0x2c] sm:$0xf]  ;;  %v3988_v15 = vld [vmem:[#allocation8 + $0x10] sm:$0xf0] }
 0x990   : > { %v4039_v46 = vor.u32 %v4298_v20, %v4036_v3  ;;  %v4015_v62 = vor.u32 %v4291_v39, %v4012_v25  ;;  %v3991_v24 = vor.u32 %v4286_v18, %v3988_v15  ;;  %v3995_v20 = vor.u32 %v4289_v2, %v3994_v14 }
 0x991   : > { %3053 = vmatpush.bf16.msrb.mxu1 %v4027_v52 }
 0x992   : > { %3023 = vmatpush.bf16.msra.mxu0 %v4039_v46  ;;  %2995 = vmatpush.bf16.msra.mxu3 %v4019_v27 }
 0x993   : > { %3082 = vmatpush.bf16.msrb.mxu2 %v4031_v41 }
 0x995   : > { %3054 = vmatpush.bf16.msrb.mxu1 %v4011_v17 }
 0x996   : > { %v2348_v31 = vpop.f32.mrf.mxu3  ;;  %3024 = vmatpush.bf16.msra.mxu0 %v4023_v53  ;;  %2996 = vmatpush.bf16.msra.mxu3 %v4003_v16 }
 0x997   : > { %v2358_v42 = vadd.f32 %v2348_v31, %v2058_v49  ;;  %3083 = vmatpush.bf16.msrb.mxu2 %v4015_v62 }
 0x999   : > { %3055 = vmatpush.bf16.msrb.mxu1 %v3995_v20 }
 0x99a   : > { %3025 = vmatpush.bf16.msra.mxu0 %v4007_v38  ;;  %2997 = vmatpush.bf16.msra.mxu3 %v3987_v1 }
 0x99e   : > { %3026 = vmatpush.bf16.msra.mxu0 %v3991_v24 }
 0x9b5   : > { %v2645_v8 = vpop.f32.mrf.mxu2 }
 0x9b6   : > { %v2656_v50 = vadd.f32 %v2645_v8, %v2357_v11  ;;  %v4287_v11 = vld [vmem:[#allocation8 + $0xc] sm:$0xf] }
 0x9b7   : > { %v3999_v43 = vor.u32 %v4287_v11, %v3996_v48 }
 0x9b8   : > { %v6398_v5 = vadd.f32 %v4730_v9, %v2656_v50 }
 0x9b9   : > { %3084 = vmatpush.bf16.msrb.mxu2 %v3999_v43 }
 0x9ba   : > { %v2672_v26 = vmul.f32 %v6398_v5, %v6398_v5 }
 0x9bc   : > { %2686 = vadd.xlane.f32.xlu1 %v2672_v26 }
 0x9bd   : > { %v2647_v55 = vpop.f32.mrf.mxu2 }
 0x9be   : > { %v2657_v63 = vadd.f32 %v2647_v55, %v2358_v42 }
 0x9bf   : > { %v2675_v23 = vpop.xlane.xlu2 %2674 }
 0x9c0   : > { %v6405_v36 = vadd.f32 %v4731_v47, %v2657_v63  ;;  %v2690_v54 = vmul.f32 %v2675_v23, %v5429_v29 }
 0x9c2   : > { %v2698_v3 = vadd.f32 1.1920929e-07, %v2690_v54  ;;  %v2673_v40 = vmul.f32 %v6405_v36, %v6405_v36 }
 0x9c4   : > { %4708 = vrsqrt.f32 %v2698_v3  ;;  %2688 = vadd.xlane.f32.xlu0 %v2673_v40  ;;  %vm2712_vm12 = vweird.f32 %v2698_v3 }
 0x9c7   : > { %v2677_v8 = vpop.xlane.xlu0 %2676 }
 0x9c8   : > { %v2691_v46 = vmul.f32 %v2677_v8, %v5429_v29 }
 0x9ca   : > { %v4709_v45 = vpop.eup %4708  ;;  %v2699_v59 = vadd.f32 1.1920929e-07, %v2691_v46 }
 0x9cb   : > { %v2707_v7 = vmul.f32 %v4709_v45, %v2698_v3  ;;  %vm2713_vm11 = vweird.f32 %v4709_v45 }
 0x9cc   : > { %4710 = vrsqrt.f32 %v2699_v59  ;;  %vm2714_vm14 = vmor %vm2712_vm12, %vm2713_vm11  ;;  %vm2722_vm15 = vweird.f32 %v2699_v59 }
 0x9cd   : > { %v2708_v50 = vmul.f32 %v4709_v45, %v2707_v7 }
 0x9cf   : > { %v2709_v34 = vmul.f32 0.5, %v2708_v50  ;;  %v2679_v44 = vpop.xlane.xlu2 %2678 }
 0x9d0   : > { %v2692_v32 = vmul.f32 %v2679_v44, %v5429_v29 }
 0x9d1   : > { %v2710_v27 = vsub.f32 1.5, %v2709_v34 }
 0x9d2   : > { %v4711_v56 = vpop.eup %4710  ;;  %v2700_v9 = vadd.f32 1.1920929e-07, %v2692_v32 }
 0x9d3   : > { %v2717_v35 = vmul.f32 %v4711_v56, %v2699_v59  ;;  %v2711_v61 = vmul.f32 %v4709_v45, %v2710_v27  ;;  %vm2723_vm13 = vweird.f32 %v4711_v56  ;;  %v4333_v27 = vld [vmem:[#allocation10 + $0x78] sm:$0xff] }
 0x9d4   : > { %4712 = vrsqrt.f32 %v2700_v9  ;;  %vm2724_vm0 = vmor %vm2722_vm15, %vm2723_vm13  ;;  %vm2732_vm2 = vweird.f32 %v2700_v9  ;;  %3471 = vmatpush.bf16.msrb.mxu0 %v4333_v27 }
 0x9d5   : > { %v2718_v28 = vmul.f32 %v4711_v56, %v2717_v35  ;;  %v2715_v26 = vsel %vm2714_vm14, %v4709_v45, %v2711_v61  ;;  %v4341_v35 = vld [vmem:[#allocation10 + $0xb8] sm:$0xff] }
 0x9d6   : > { %v2786_v42 = vmul.f32 %v2715_v26, %v6361_v0  ;;  %3500 = vmatpush.bf16.msra.mxu1 %v4341_v35  ;;  %v4339_v26 = vld [vmem:[#allocation10 + $0xa8] sm:$0xff] }
 0x9d7   : > { %v2719_v31 = vmul.f32 0.5, %v2718_v28  ;;  %v2681_v53 = vpop.xlane.xlu1 %2680 }
 0x9d8   : > { %v2693_v52 = vmul.f32 %v2681_v53, %v5429_v29  ;;  %v4332_v53 = vld [vmem:[#allocation10 + $0x70] sm:$0xff] }
 0x9d9   : > { %v2720_v58 = vsub.f32 1.5, %v2719_v31  ;;  %3472 = vmatpush.bf16.msrb.mxu0 %v4332_v53 }
 0x9da   : > { %v4713_v60 = vpop.eup %4712  ;;  %v2701_v49 = vadd.f32 1.1920929e-07, %v2693_v52  ;;  %v4340_v52 = vld [vmem:[#allocation10 + $0xb0] sm:$0xff] }
 0x9db   : > { %v2721_v41 = vmul.f32 %v4711_v56, %v2720_v58  ;;  %v2727_v12 = vmul.f32 %v4713_v60, %v2700_v9  ;;  %vm2733_vm1 = vweird.f32 %v4713_v60  ;;  %v4325_v58 = vld [vmem:[#allocation10 + $0x38] sm:$0xff]  ;;  %3501 = vmatpush.bf16.msra.mxu1 %v4340_v52 }
 0x9dc   : > { %4714 = vrsqrt.f32 %v2701_v49  ;;  %vm2734_vm4 = vmor %vm2732_vm2, %vm2733_vm1  ;;  %vm2742_vm5 = vweird.f32 %v2701_v49  ;;  %3442 = vmatpush.bf16.msrb.mxu3 %v4325_v58 }
 0x9dd   : > { %v2725_v19 = vsel %vm2724_vm0, %v4711_v56, %v2721_v41  ;;  %v2728_v57 = vmul.f32 %v4713_v60, %v2727_v12  ;;  %v4324_v41 = vld [vmem:[#allocation10 + $0x30] sm:$0xff] }
 0x9de   : > { %v2787_v16 = vmul.f32 %v2725_v19, %v6367_v13  ;;  %v4348_v12 = vld [vmem:[#allocation10 + $0xf0] sm:$0xff] }
 0x9df   : > { %v2729_v21 = vmul.f32 0.5, %v2728_v57  ;;  %3502 = vmatpush.bf16.msra.mxu1 %v4339_v26 }
 0x9e0   : > { %v2794_v37 = vpack.c.bf16 %v2787_v16, %v2786_v42  ;;  %v4330_v42 = vld [vmem:[#allocation10 + $0x60] sm:$0xff]  ;;  %3443 = vmatpush.bf16.msrb.mxu3 %v4324_v41 }
 0x9e1   : > { %v2730_v55 = vsub.f32 1.5, %v2729_v21  ;;  %v4338_v16 = vld [vmem:[#allocation10 + $0xa0] sm:$0xff] }
 0x9e2   : > { %v4715_v10 = vpop.eup %4714  ;;  %2998 = vmatmul.bf16.vlgmr.msra.gmra.mxu3 %v2794_v37  ;;  %3027 = vmatmul.bf16.vlgmr.msra.gmra.mxu0 %v2794_v37 }
 0x9e3   : > { %v2737_v38 = vmul.f32 %v4715_v10, %v2701_v49  ;;  %3056 = vmatmul.bf16.vlgmr.msrb.gmra.mxu1 %v2794_v37  ;;  %3085 = vmatmul.bf16.vlgmr.msrb.gmra.mxu2 %v2794_v37  ;;  %v2731_v39 = vmul.f32 %v4713_v60, %v2730_v55  ;;  %vm2743_vm3 = vweird.f32 %v4715_v10  ;;  %v4331_v49 = vld [vmem:[#allocation10 + $0x68] sm:$0xff] }
 0x9e4   : > { %vm2744_vm6 = vmor %vm2742_vm5, %vm2743_vm3  ;;  %3473 = vmatpush.bf16.msrb.mxu0 %v4331_v49  ;;  %v4347_v55 = vld [vmem:[#allocation10 + $0xe8] sm:$0xff]  ;;  %3503 = vmatpush.bf16.msra.mxu1 %v4338_v16 }
 0x9e5   : > { %v2738_v17 = vmul.f32 %v4715_v10, %v2737_v38  ;;  %v2735_v62 = vsel %vm2734_vm4, %v4713_v60, %v2731_v39  ;;  %v4349_v60 = vld [vmem:[#allocation10 + $0xf8] sm:$0xff] }
 0x9e6   : > { %v2788_v51 = vmul.f32 %v2735_v62, %v6373_v30  ;;  %3529 = vmatpush.bf16.msra.mxu2 %v4349_v60  ;;  %v4322_v62 = vld [vmem:[#allocation10 + $0x20] sm:$0xff] }
 0x9e7   : > { %v2739_v25 = vmul.f32 0.5, %v2738_v17 }
 0x9e8   : > { %3474 = vmatpush.bf16.msrb.mxu0 %v4330_v42 }
 0x9e9   : > { %v2740_v63 = vsub.f32 1.5, %v2739_v25  ;;  %v4329_v25 = vld [vmem:[#allocation10 + $0x58] sm:$0xff] }
 0x9ea   : > { %3530 = vmatpush.bf16.msra.mxu2 %v4348_v12 }
 0x9eb   : > { %v2741_v23 = vmul.f32 %v4715_v10, %v2740_v63 }
 0x9ec   : > { %3475 = vmatpush.bf16.msrb.mxu0 %v4329_v25 }
 0x9ed   : > { %v2745_v4 = vsel %vm2744_vm6, %v4715_v10, %v2741_v23  ;;  %v4323_v10 = vld [vmem:[#allocation10 + $0x28] sm:$0xff]  ;;  %v4346_v23 = vld [vmem:[#allocation10 + $0xe0] sm:$0xff] }
 0x9ee   : > { %v2789_v18 = vmul.f32 %v2745_v4, %v6379_v33  ;;  %3444 = vmatpush.bf16.msrb.mxu3 %v4323_v10  ;;  %3531 = vmatpush.bf16.msra.mxu2 %v4347_v55 }
 0x9f0   : > { %v2795_v47 = vpack.c.bf16 %v2789_v18, %v2788_v51  ;;  %v4328_v18 = vld [vmem:[#allocation10 + $0x50] sm:$0xff] }
 0x9f1   : > { %3476 = vmatpush.bf16.msrb.mxu0 %v4328_v18 }
 0x9f2   : > { %3003 = vmatmul.bf16.gmra.mxu3 %v2795_v47  ;;  %3032 = vmatmul.bf16.gmra.mxu0 %v2795_v47 }
 0x9f3   : > { %3061 = vmatmul.bf16.gmra.mxu1 %v2795_v47  ;;  %3090 = vmatmul.bf16.gmra.mxu2 %v2795_v47  ;;  %v4336_v47 = vld [vmem:[#allocation10 + $0x90] sm:$0xff] }
 0x9f4   : > { %3445 = vmatpush.bf16.msrb.mxu3 %v4322_v62  ;;  %3532 = vmatpush.bf16.msra.mxu2 %v4346_v23 }
 0x9fa   : > { %v2683_v54 = vpop.xlane.xlu0 %2682 }
 0x9fb   : > { %v2694_v1 = vmul.f32 %v2683_v54, %v5429_v29 }
 0x9fd   : > { %v2702_v15 = vadd.f32 1.1920929e-07, %v2694_v1  ;;  %v4321_v1 = vld [vmem:[#allocation10 + $0x18] sm:$0xff] }
 0x9fe   : > { %3446 = vmatpush.bf16.msrb.mxu3 %v4321_v1 }
 0x9ff   : > { %4716 = vrsqrt.f32 %v2702_v15  ;;  %vm2752_vm8 = vweird.f32 %v2702_v15 }
 0xa02   : > { %v2685_v14 = vpop.xlane.xlu2 %2684 }
 0xa03   : > { %v2695_v2 = vmul.f32 %v2685_v14, %v5429_v29 }
 0xa05   : > { %v4717_v24 = vpop.eup %4716  ;;  %v2703_v20 = vadd.f32 1.1920929e-07, %v2695_v2 }
 0xa06   : > { %v2747_v11 = vmul.f32 %v4717_v24, %v2702_v15  ;;  %vm2753_vm7 = vweird.f32 %v4717_v24  ;;  %v4345_v15 = vld [vmem:[#allocation10 + $0xd8] sm:$0xff] }
 0xa07   : > { %4718 = vrsqrt.f32 %v2703_v20  ;;  %vm2754_vm10 = vmor %vm2752_vm8, %vm2753_vm7  ;;  %vm2762_vm11 = vweird.f32 %v2703_v20  ;;  %3533 = vmatpush.bf16.msra.mxu2 %v4345_v15 }
 0xa08   : > { %v2748_v48 = vmul.f32 %v4717_v24, %v2747_v11 }
 0xa0a   : > { %v2749_v3 = vmul.f32 0.5, %v2748_v48  ;;  %v4320_v48 = vld [vmem:[#allocation10 + $0x10] sm:$0xff] }
 0xa0b   : > { %3447 = vmatpush.bf16.msrb.mxu3 %v4320_v48 }
 0xa0c   : > { %v2750_v43 = vsub.f32 1.5, %v2749_v3  ;;  %v4344_v3 = vld [vmem:[#allocation10 + $0xd0] sm:$0xff] }
 0xa0d   : > { %v4719_v40 = vpop.eup %4718  ;;  %3534 = vmatpush.bf16.msra.mxu2 %v4344_v3 }
 0xa0e   : > { %v2757_v8 = vmul.f32 %v4719_v40, %v2703_v20  ;;  %v2751_v45 = vmul.f32 %v4717_v24, %v2750_v43  ;;  %vm2763_vm9 = vweird.f32 %v4719_v40  ;;  %v4335_v20 = vld [vmem:[#allocation10 + $0x88] sm:$0xff] }
 0xa0f   : > { %vm2764_vm12 = vmor %vm2762_vm11, %vm2763_vm9 }
 0xa10   : > { %v2758_v46 = vmul.f32 %v4719_v40, %v2757_v8  ;;  %v2755_v50 = vsel %vm2754_vm10, %v4717_v24, %v2751_v45  ;;  %v4327_v24 = vld [vmem:[#allocation10 + $0x48] sm:$0xff]  ;;  %v4326_v8 = vld [vmem:[#allocation10 + $0x40] sm:$0xff] }
 0xa11   : > { %v2790_v32 = vmul.f32 %v2755_v50, %v6385_v6  ;;  %3477 = vmatpush.bf16.msrb.mxu0 %v4327_v24  ;;  %v4319_v50 = vld [vmem:[#allocation10 + $0x8] sm:$0xff] }
 0xa12   : > { %v2759_v59 = vmul.f32 0.5, %v2758_v46  ;;  %v4334_v46 = vld [vmem:[#allocation10 + $0x80] sm:$0xff]  ;;  %3448 = vmatpush.bf16.msrb.mxu3 %v4319_v50 }
 0xa14   : > { %v2760_v7 = vsub.f32 1.5, %v2759_v59 }
 0xa15   : > { %3478 = vmatpush.bf16.msrb.mxu0 %v4326_v8 }
 0xa16   : > { %v2761_v34 = vmul.f32 %v4719_v40, %v2760_v7 }
 0xa18   : > { %v2765_v44 = vsel %vm2764_vm12, %v4719_v40, %v2761_v34  ;;  %v4343_v34 = vld [vmem:[#allocation10 + $0xc8] sm:$0xff] }
 0xa19   : > { %v2791_v56 = vmul.f32 %v2765_v44, %v6391_v22  ;;  %3535 = vmatpush.bf16.msra.mxu2 %v4343_v34 }
 0xa1b   : > { %v2796_v9 = vpack.c.bf16 %v2791_v56, %v2790_v32  ;;  %v4318_v32 = vld [vmem:[#allocation10] sm:$0xff] }
 0xa1c   : > { %v4342_v56 = vld [vmem:[#allocation10 + $0xc0] sm:$0xff]  ;;  %3449 = vmatpush.bf16.msrb.mxu3 %v4318_v32 }
 0xa1d   : > { %3008 = vmatmul.bf16.gmra.mxu3 %v2796_v9  ;;  %3037 = vmatmul.bf16.gmra.mxu0 %v2796_v9 }
 0xa1e   : > { %3066 = vmatmul.bf16.gmra.mxu1 %v2796_v9  ;;  %3095 = vmatmul.bf16.gmra.mxu2 %v2796_v9 }
 0xa1f   : > { %3536 = vmatpush.bf16.msra.mxu2 %v4342_v56 }
 0xa2f   : > { %v2687_v28 = vpop.xlane.xlu1 %2686 }
 0xa30   : > { %v2696_v61 = vmul.f32 %v2687_v28, %v5429_v29 }
 0xa32   : > { %v2704_v31 = vadd.f32 1.1920929e-07, %v2696_v61 }
 0xa34   : > { %4720 = vrsqrt.f32 %v2704_v31  ;;  %vm2772_vm14 = vweird.f32 %v2704_v31 }
 0xa37   : > { %v2689_v19 = vpop.xlane.xlu0 %2688 }
 0xa38   : > { %v2697_v57 = vmul.f32 %v2689_v19, %v5429_v29  ;;  %v4337_v29 = vld [vmem:[#allocation10 + $0x98] sm:$0xff] }
 0xa39   : > { %3504 = vmatpush.bf16.msra.mxu1 %v4337_v29 }
 0xa3a   : > { %v4721_v21 = vpop.eup %4720  ;;  %v2705_v37 = vadd.f32 1.1920929e-07, %v2697_v57 }
 0xa3b   : > { %v2767_v38 = vmul.f32 %v4721_v21, %v2704_v31  ;;  %vm2773_vm13 = vweird.f32 %v4721_v21 }
 0xa3c   : > { %4722 = vrsqrt.f32 %v2705_v37  ;;  %vm2774_vm0 = vmor %vm2772_vm14, %vm2773_vm13  ;;  %vm2782_vm1 = vweird.f32 %v2705_v37 }
 0xa3d   : > { %v2768_v17 = vmul.f32 %v4721_v21, %v2767_v38  ;;  %3505 = vmatpush.bf16.msra.mxu1 %v4336_v47 }
 0xa3f   : > { %v2769_v39 = vmul.f32 0.5, %v2768_v17 }
 0xa41   : > { %v2770_v4 = vsub.f32 1.5, %v2769_v39  ;;  %3506 = vmatpush.bf16.msra.mxu1 %v4335_v20 }
 0xa42   : > { %v4723_v63 = vpop.eup %4722 }
 0xa43   : > { %v2777_v51 = vmul.f32 %v4723_v63, %v2705_v37  ;;  %v2771_v14 = vmul.f32 %v4721_v21, %v2770_v4  ;;  %vm2783_vm15 = vweird.f32 %v4723_v63 }
 0xa44   : > { %vm2784_vm2 = vmor %vm2782_vm1, %vm2783_vm15 }
 0xa45   : > { %v2778_v54 = vmul.f32 %v4723_v63, %v2777_v51  ;;  %v2775_v40 = vsel %vm2774_vm0, %v4721_v21, %v2771_v14  ;;  %3507 = vmatpush.bf16.msra.mxu1 %v4334_v46 }
 0xa46   : > { %v2792_v59 = vmul.f32 %v2775_v40, %v6398_v5 }
 0xa47   : > { %v2779_v2 = vmul.f32 0.5, %v2778_v54 }
 0xa49   : > { %v2780_v11 = vsub.f32 1.5, %v2779_v2 }
 0xa4b   : > { %v2781_v43 = vmul.f32 %v4723_v63, %v2780_v11 }
 0xa4d   : > { %v2785_v45 = vsel %vm2784_vm2, %v4723_v63, %v2781_v43 }
 0xa4e   : > { %v2793_v7 = vmul.f32 %v2785_v45, %v6405_v36 }
 0xa50   : > { %v2797_v44 = vpack.c.bf16 %v2793_v7, %v2792_v59 }
 0xa52   : > { %3013 = vmatmul.bf16.gmra.mxu3 %v2797_v44  ;;  %3042 = vmatmul.bf16.gmra.mxu0 %v2797_v44 }
 0xa53   : > { %3071 = vmatmul.bf16.gmra.mxu1 %v2797_v44  ;;  %3100 = vmatmul.bf16.gmra.mxu2 %v2797_v44 }
 0xa5f   : > { %v3028_v9 = vpop.f32.mrf.mxu0 }
 0xa60   : > { %v3057_v27 = vpop.f32.mrf.mxu1  ;;  %v3107_v28 = vmax.f32 %v3028_v9, 0.0 }
 0xa61   : > { %v3108_v31 = vmax.f32 %v3057_v27, 0.0 }
 0xa62   : > { %v3139_v49 = vmul.f32 %v3107_v28, %v3107_v28 }
 0xa63   : > { %v3140_v41 = vmul.f32 %v3108_v31, %v3108_v31 }
 0xa65   : > { %v2999_v35 = vpop.f32.mrf.mxu3 }
 0xa66   : > { %v3086_v61 = vpop.f32.mrf.mxu2  ;;  %v3106_v19 = vmax.f32 %v2999_v35, 0.0 }
 0xa67   : > { %v3030_v53 = vpop.f32.mrf.mxu0  ;;  %v3109_v42 = vmax.f32 %v3086_v61, 0.0 }
 0xa68   : > { %v3111_v52 = vmax.f32 %v3030_v53, 0.0  ;;  %v3059_v58 = vpop.f32.mrf.mxu1  ;;  %v3138_v17 = vmul.f32 %v3106_v19, %v3106_v19 }
 0xa69   : > { %v3112_v60 = vmax.f32 %v3059_v58, 0.0  ;;  %v3141_v29 = vmul.f32 %v3109_v42, %v3109_v42 }
 0xa6a   : > { %v3143_v26 = vmul.f32 %v3111_v52, %v3111_v52 }
 0xa6b   : > { %v3144_v12 = vmul.f32 %v3112_v60, %v3112_v60 }
 0xa6c   : > { %v3171_v57 = vpack.c.bf16 %v3143_v26, %v3139_v49 }
 0xa6d   : > { %v3172_v16 = vpack.c.bf16 %v3144_v12, %v3140_v41  ;;  %v3001_v21 = vpop.f32.mrf.mxu3 }
 0xa6e   : > { %v3110_v37 = vmax.f32 %v3001_v21, 0.0  ;;  %v3088_v10 = vpop.f32.mrf.mxu2  ;;  %3479 = vmatmul.bf16.vlgmr.msrb.gmra.mxu0 %v3171_v57 }
 0xa6f   : > { %v3113_v55 = vmax.f32 %v3088_v10, 0.0  ;;  %3508 = vmatmul.bf16.vlgmr.msra.gmra.mxu1 %v3172_v16  ;;  %v3033_v38 = vpop.f32.mrf.mxu0 }
 0xa70   : > { %v3142_v39 = vmul.f32 %v3110_v37, %v3110_v37  ;;  %v3062_v25 = vpop.f32.mrf.mxu1  ;;  %v3115_v51 = vmax.f32 %v3033_v38, 0.0 }
 0xa71   : > { %v3145_v63 = vmul.f32 %v3113_v55, %v3113_v55  ;;  %v3116_v47 = vmax.f32 %v3062_v25, 0.0 }
 0xa72   : > { %v3170_v62 = vpack.c.bf16 %v3142_v39, %v3138_v17  ;;  %v3147_v2 = vmul.f32 %v3115_v51, %v3115_v51 }
 0xa73   : > { %v3173_v23 = vpack.c.bf16 %v3145_v63, %v3141_v29  ;;  %v3148_v20 = vmul.f32 %v3116_v47, %v3116_v47 }
 0xa74   : > { %3450 = vmatmul.bf16.vlgmr.msrb.gmra.mxu3 %v3170_v62 }
 0xa75   : > { %3537 = vmatmul.bf16.vlgmr.msra.gmra.mxu2 %v3173_v23  ;;  %v3004_v4 = vpop.f32.mrf.mxu3 }
 0xa76   : > { %v3091_v18 = vpop.f32.mrf.mxu2  ;;  %v3114_v48 = vmax.f32 %v3004_v4, 0.0 }
 0xa77   : > { %v3035_v54 = vpop.f32.mrf.mxu0  ;;  %v3117_v40 = vmax.f32 %v3091_v18, 0.0 }
 0xa78   : > { %v3119_v1 = vmax.f32 %v3035_v54, 0.0  ;;  %v3064_v15 = vpop.f32.mrf.mxu1  ;;  %v3146_v7 = vmul.f32 %v3114_v48, %v3114_v48 }
 0xa79   : > { %v3120_v14 = vmax.f32 %v3064_v15, 0.0  ;;  %v3149_v34 = vmul.f32 %v3117_v40, %v3117_v40 }
 0xa7a   : > { %v3151_v24 = vmul.f32 %v3119_v1, %v3119_v1 }
 0xa7b   : > { %v3152_v11 = vmul.f32 %v3120_v14, %v3120_v14 }
 0xa7c   : > { %v3175_v3 = vpack.c.bf16 %v3151_v24, %v3147_v2 }
 0xa7d   : > { %v3176_v43 = vpack.c.bf16 %v3152_v11, %v3148_v20  ;;  %v3006_v8 = vpop.f32.mrf.mxu3 }
 0xa7e   : > { %v3118_v46 = vmax.f32 %v3006_v8, 0.0  ;;  %v3093_v45 = vpop.f32.mrf.mxu2  ;;  %3484 = vmatmul.bf16.gmra.mxu0 %v3175_v3 }
 0xa7f   : > { %v3121_v59 = vmax.f32 %v3093_v45, 0.0  ;;  %3513 = vmatmul.bf16.gmra.mxu1 %v3176_v43 }
 0xa80   : > { %v3150_v50 = vmul.f32 %v3118_v46, %v3118_v46 }
 0xa81   : > { %v3153_v44 = vmul.f32 %v3121_v59, %v3121_v59 }
 0xa82   : > { %v3174_v32 = vpack.c.bf16 %v3150_v50, %v3146_v7 }
 0xa83   : > { %v3177_v56 = vpack.c.bf16 %v3153_v44, %v3149_v34 }
 0xa84   : > { %3455 = vmatmul.bf16.gmra.mxu3 %v3174_v32 }
 0xa85   : > { %3542 = vmatmul.bf16.gmra.mxu2 %v3177_v56 }
 0xa9a   : > { %v3038_v9 = vpop.f32.mrf.mxu0 }
 0xa9b   : > { %v3067_v27 = vpop.f32.mrf.mxu1  ;;  %v3123_v28 = vmax.f32 %v3038_v9, 0.0 }
 0xa9c   : > { %v3124_v31 = vmax.f32 %v3067_v27, 0.0 }
 0xa9d   : > { %v3155_v49 = vmul.f32 %v3123_v28, %v3123_v28 }
 0xa9e   : > { %v3156_v41 = vmul.f32 %v3124_v31, %v3124_v31 }
 0xaa0   : > { %v3009_v35 = vpop.f32.mrf.mxu3 }
 0xaa1   : > { %v3096_v61 = vpop.f32.mrf.mxu2  ;;  %v3122_v19 = vmax.f32 %v3009_v35, 0.0 }
 0xaa2   : > { %v3040_v53 = vpop.f32.mrf.mxu0  ;;  %v3125_v42 = vmax.f32 %v3096_v61, 0.0 }
 0xaa3   : > { %v3127_v52 = vmax.f32 %v3040_v53, 0.0  ;;  %v3069_v58 = vpop.f32.mrf.mxu1  ;;  %v3154_v38 = vmul.f32 %v3122_v19, %v3122_v19 }
 0xaa4   : > { %v3128_v60 = vmax.f32 %v3069_v58, 0.0  ;;  %v3157_v39 = vmul.f32 %v3125_v42, %v3125_v42 }
 0xaa5   : > { %v3159_v26 = vmul.f32 %v3127_v52, %v3127_v52 }
 0xaa6   : > { %v3160_v12 = vmul.f32 %v3128_v60, %v3128_v60 }
 0xaa7   : > { %v3179_v57 = vpack.c.bf16 %v3159_v26, %v3155_v49 }
 0xaa8   : > { %v3180_v16 = vpack.c.bf16 %v3160_v12, %v3156_v41  ;;  %v3011_v21 = vpop.f32.mrf.mxu3 }
 0xaa9   : > { %v3126_v37 = vmax.f32 %v3011_v21, 0.0  ;;  %v3098_v10 = vpop.f32.mrf.mxu2  ;;  %3489 = vmatmul.bf16.gmra.mxu0 %v3179_v57 }
 0xaaa   : > { %v3129_v55 = vmax.f32 %v3098_v10, 0.0  ;;  %3518 = vmatmul.bf16.gmra.mxu1 %v3180_v16 }
 0xaab   : > { %v3158_v17 = vmul.f32 %v3126_v37, %v3126_v37 }
 0xaac   : > { %v3161_v25 = vmul.f32 %v3129_v55, %v3129_v55 }
 0xaad   : > { %v3178_v29 = vpack.c.bf16 %v3158_v17, %v3154_v38 }
 0xaae   : > { %v3181_v63 = vpack.c.bf16 %v3161_v25, %v3157_v39 }
 0xaaf   : > { %3460 = vmatmul.bf16.gmra.mxu3 %v3178_v29 }
 0xab0   : > { %3547 = vmatmul.bf16.gmra.mxu2 %v3181_v63 }
 0xacf   : > { %v3043_v62 = vpop.f32.mrf.mxu0 }
 0xad0   : > { %v3072_v23 = vpop.f32.mrf.mxu1  ;;  %v3131_v51 = vmax.f32 %v3043_v62, 0.0 }
 0xad1   : > { %v3132_v47 = vmax.f32 %v3072_v23, 0.0 }
 0xad2   : > { %v3163_v2 = vmul.f32 %v3131_v51, %v3131_v51 }
 0xad3   : > { %v3164_v20 = vmul.f32 %v3132_v47, %v3132_v47 }
 0xad5   : > { %v3014_v4 = vpop.f32.mrf.mxu3 }
 0xad6   : > { %v3101_v18 = vpop.f32.mrf.mxu2  ;;  %v3130_v48 = vmax.f32 %v3014_v4, 0.0 }
 0xad7   : > { %v3045_v54 = vpop.f32.mrf.mxu0  ;;  %v3133_v40 = vmax.f32 %v3101_v18, 0.0 }
 0xad8   : > { %v3135_v1 = vmax.f32 %v3045_v54, 0.0  ;;  %v3074_v15 = vpop.f32.mrf.mxu1  ;;  %v3162_v7 = vmul.f32 %v3130_v48, %v3130_v48 }
 0xad9   : > { %v3136_v14 = vmax.f32 %v3074_v15, 0.0  ;;  %v3165_v34 = vmul.f32 %v3133_v40, %v3133_v40 }
 0xada   : > { %v3167_v24 = vmul.f32 %v3135_v1, %v3135_v1 }
 0xadb   : > { %v3168_v11 = vmul.f32 %v3136_v14, %v3136_v14 }
 0xadc   : > { %v3183_v3 = vpack.c.bf16 %v3167_v24, %v3163_v2 }
 0xadd   : > { %v3184_v43 = vpack.c.bf16 %v3168_v11, %v3164_v20  ;;  %v3016_v8 = vpop.f32.mrf.mxu3 }
 0xade   : > { %v3134_v46 = vmax.f32 %v3016_v8, 0.0  ;;  %v3103_v45 = vpop.f32.mrf.mxu2  ;;  %3494 = vmatmul.bf16.gmra.mxu0 %v3183_v3 }
 0xadf   : > { %v3137_v59 = vmax.f32 %v3103_v45, 0.0  ;;  %3523 = vmatmul.bf16.gmra.mxu1 %v3184_v43 }
 0xae0   : > { %v3166_v50 = vmul.f32 %v3134_v46, %v3134_v46 }
 0xae1   : > { %v3169_v44 = vmul.f32 %v3137_v59, %v3137_v59 }
 0xae2   : > { %v3182_v32 = vpack.c.bf16 %v3166_v50, %v3162_v7 }
 0xae3   : > { %v3185_v56 = vpack.c.bf16 %v3169_v44, %v3165_v34 }
 0xae4   : > { %3465 = vmatmul.bf16.gmra.mxu3 %v3182_v32 }
 0xae5   : > { %3552 = vmatmul.bf16.gmra.mxu2 %v3185_v56 }
 0xaeb   : > { %v3480_v9 = vpop.f32.mrf.mxu0 }
 0xaec   : > { %v3509_v27 = vpop.f32.mrf.mxu1 }
 0xaf3   : > { %v3482_v53 = vpop.f32.mrf.mxu0 }
 0xaf4   : > { %v3511_v58 = vpop.f32.mrf.mxu1 }
 0xaf7   : > { %v3451_v35 = vpop.f32.mrf.mxu3 }
 0xaf8   : > { %v3481_v28 = vadd.f32 %v3480_v9, %v3451_v35  ;;  %v3538_v61 = vpop.f32.mrf.mxu2 }
 0xafa   : > { %v3510_v31 = vadd.f32 %v3509_v27, %v3481_v28 }
 0xafb   : > { %v3485_v57 = vpop.f32.mrf.mxu0 }
 0xafc   : > { %v3539_v52 = vadd.f32 %v3538_v61, %v3510_v31  ;;  %v3514_v16 = vpop.f32.mrf.mxu1 }
 0xafe   : > { %v3558_v60 = vadd.f32 %v3539_v52, %v6361_v0 }
 0xaff   : > { %v3453_v49 = vpop.f32.mrf.mxu3 }
 0xb00   : > { %3566 = vst [vmem:[%s6428_s10] sm:$0xff] %v3558_v60  ;;  %v3483_v26 = vadd.f32 %v3482_v53, %v3453_v49  ;;  %v3540_v41 = vpop.f32.mrf.mxu2 }
 0xb02   : > { %v3512_v12 = vadd.f32 %v3511_v58, %v3483_v26 }
 0xb03   : > { %v3487_v17 = vpop.f32.mrf.mxu0 }
 0xb04   : > { %v3541_v19 = vadd.f32 %v3540_v41, %v3512_v12  ;;  %v3516_v29 = vpop.f32.mrf.mxu1 }
 0xb06   : > { %v3559_v42 = vadd.f32 %v3541_v19, %v6367_v13 }
 0xb07   : > { %v3456_v21 = vpop.f32.mrf.mxu3 }
 0xb08   : > { %3567 = vst [vmem:[%s6428_s10 + $0x8] sm:$0xff] %v3559_v42  ;;  %v3486_v0 = vadd.f32 %v3485_v57, %v3456_v21  ;;  %v3543_v37 = vpop.f32.mrf.mxu2 }
 0xb0a   : > { %v3515_v10 = vadd.f32 %v3514_v16, %v3486_v0 }
 0xb0c   : > { %v3544_v55 = vadd.f32 %v3543_v37, %v3515_v10 }
 0xb0e   : > { %v3560_v38 = vadd.f32 %v3544_v55, %v6373_v30 }
 0xb0f   : > { %v3458_v39 = vpop.f32.mrf.mxu3 }
 0xb10   : > { %3568 = vst [vmem:[%s6428_s10 + $0x10] sm:$0xff] %v3560_v38  ;;  %v3488_v25 = vadd.f32 %v3487_v17, %v3458_v39  ;;  %v3545_v62 = vpop.f32.mrf.mxu2 }
 0xb12   : > { %v3517_v63 = vadd.f32 %v3516_v29, %v3488_v25 }
 0xb14   : > { %v3546_v23 = vadd.f32 %v3545_v62, %v3517_v63 }
 0xb16   : > { %v3561_v13 = vadd.f32 %v3546_v23, %v6379_v33 }
 0xb18   : > { %3569 = vst [vmem:[%s6428_s10 + $0x18] sm:$0xff] %v3561_v13 }
 0xb26   : > { %v3490_v4 = vpop.f32.mrf.mxu0 }
 0xb27   : > { %v3519_v51 = vpop.f32.mrf.mxu1 }
 0xb2e   : > { %v3492_v14 = vpop.f32.mrf.mxu0 }
 0xb2f   : > { %v3521_v20 = vpop.f32.mrf.mxu1 }
 0xb32   : > { %v3461_v18 = vpop.f32.mrf.mxu3 }
 0xb33   : > { %v3491_v47 = vadd.f32 %v3490_v4, %v3461_v18  ;;  %v3548_v54 = vpop.f32.mrf.mxu2 }
 0xb35   : > { %v3520_v1 = vadd.f32 %v3519_v51, %v3491_v47 }
 0xb37   : > { %v3549_v30 = vadd.f32 %v3548_v54, %v3520_v1 }
 0xb39   : > { %v3562_v15 = vadd.f32 %v3549_v30, %v6385_v6 }
 0xb3a   : > { %v3463_v2 = vpop.f32.mrf.mxu3 }
 0xb3b   : > { %3570 = vst [vmem:[%s6428_s10 + $0x20] sm:$0xff] %v3562_v15  ;;  %v3493_v24 = vadd.f32 %v3492_v14, %v3463_v2  ;;  %v3550_v33 = vpop.f32.mrf.mxu2 }
 0xb3d   : > { %v3522_v11 = vadd.f32 %v3521_v20, %v3493_v24 }
 0xb3f   : > { %v3551_v48 = vadd.f32 %v3550_v33, %v3522_v11 }
 0xb41   : > { %v3563_v3 = vadd.f32 %v3551_v48, %v6391_v22 }
 0xb43   : > { %3571 = vst [vmem:[%s6428_s10 + $0x28] sm:$0xff] %v3563_v3 }
 0xb5b   : > { %v3495_v40 = vpop.f32.mrf.mxu0 }
 0xb5c   : > { %v3524_v43 = vpop.f32.mrf.mxu1 }
 0xb63   : > { %v3497_v50 = vpop.f32.mrf.mxu0 }
 0xb64   : > { %v3526_v22 = vpop.f32.mrf.mxu1 }
 0xb67   : > { %v3466_v8 = vpop.f32.mrf.mxu3 }
 0xb68   : > { %v3496_v46 = vadd.f32 %v3495_v40, %v3466_v8  ;;  %v3553_v45 = vpop.f32.mrf.mxu2 }
 0xb6a   : > { %v3525_v6 = vadd.f32 %v3524_v43, %v3496_v46 }
 0xb6c   : > { %v3554_v59 = vadd.f32 %v3553_v45, %v3525_v6 }
 0xb6e   : > { %v3564_v7 = vadd.f32 %v3554_v59, %v6398_v5 }
 0xb6f   : > { %v3468_v34 = vpop.f32.mrf.mxu3 }
 0xb70   : > { %3572 = vst [vmem:[%s6428_s10 + $0x30] sm:$0xff] %v3564_v7  ;;  %v3498_v44 = vadd.f32 %v3497_v50, %v3468_v34  ;;  %v3555_v56 = vpop.f32.mrf.mxu2 }
 0xb72   : > { %v3527_v32 = vadd.f32 %v3526_v22, %v3498_v44 }
 0xb74   : > { %v3556_v9 = vadd.f32 %v3555_v56, %v3527_v32 }
 0xb76   : > { %v3565_v27 = vadd.f32 %v3556_v9, %v6405_v36 }
 0xb78   : > { %3573 = vst [vmem:[%s6428_s10 + $0x38] sm:$0xff] %v3565_v27 }
 0xb79   : > { %5059 = shalt.err (!%p5056_p9)
}
 0xb7a   : > { %s5141_s1 = smov 128   ;;  %s5142_s10 = smov 8  }
 0xb7b   : > { %4417 = dma.vmem_to_hbm [thread:$0]  (%p5316_p13), %s3588_s17, 1024, %s3590_s24, %s3575_s20, %s5141_s1, %s5141_s1, %s5142_s10  }
 0xb7c PF: > { %s3604_s26 = sand.u32 1, %s5106_s13   ;;  %p6518_p10 = scmp.ge.s32.totalorder %s5118_s16, 2 }
 0xb7d   : > { %s3605_s12 = scalar_lea.sflag [#allocation4], %s3604_s26 }
 0xb7e   : > { %p4452_p11 = pnand %p6518_p10, %p5321_p4 }
 0xb80   : > { %p4453_p0 = pneg %p4452_p11 }
 0xb82   : > { %5101 = dma.done.wait (%p4453_p0), %s3605_s12, 1024  }
 0xb83   : > { %5103 = vsyncadd (%p4453_p0), %s3605_s12, 4294966272  ;;  %p28_p2 = scmp.ge.s32.totalorder %s5296_s29, 4   ;;  %s6519_s13 = smov %s5110_s14 }
 0xb84   : > { %s6520_s14 = smov %s5114_s15  ;;  %s6521_s15 = smov %s5308_s30 }
 0xb85   : > { %s6522_s16 = smov %s5296_s29  ;;  %30 = sbr.rel (!%p28_p2) target bundleno = 15 (0xf), region = 141 }
 0xb8a   :  { %3611 = vsyncpa [#allocation3], 1 }
 0xb8b   :  { %3613 = vsyncpa [#allocation3 + $0x1], 1 }
 0xb8c   :  { %3614 = vsyncpa [#allocation6], 1 }
 0xb8d   :  { %3615 = vsyncpa [#allocation9], 1 }
 0xb8e   :  { %3616 = vsyncpa [#allocation12], 1 }
 0xb8f   :  { %3617 = vsyncpa [#allocation15], 1 }
 0xb90   :  { %3618 = vsyncpa [#allocation18], 1 }
 0xb91   :  { %3619 = vsyncpa [#allocation4], 1 }
 0xb92   :  { %3621 = vsyncpa [#allocation4 + $0x1], 1 }

</bundles_post_ra>
